<compile_context>
chip_gen: v7x
topology: tpu7x:2x2x1
jax: 0.10.0
libtpu: 0.0.40
codegen_flags: <defaults>
</compile_context>

<pallas_src>
import jax
import jax.numpy as jnp
from jax.experimental import pallas as pl
from jax.experimental.pallas import tpu as pltpu

# ----------------------------- model dims (small stand-ins) -------------------
VIT_DIM = 32          # ViT pooler hidden size stand-in
BERT_DIM = 32         # BERT pooler hidden size stand-in
FORMAT_DIM = 4
NUM_JOBS = 8
NUM_CLASSES = 4
H1, H2 = 512, 256     # visual / semantic branch hidden sizes
FH1, FH2 = 32, 64     # format / job branch hidden sizes
CH = 256              # classifier hidden size

VOCAB = 100
IMG_C, IMG_H, IMG_W = 3, 16, 16
PIX_FLAT = IMG_C * IMG_H * IMG_W      # 768
SEQ = 8
BATCH = 2

# packed / padded layout constants
X0_W = PIX_FLAT + 128                 # 896  = [pix 768 | bert_pre 32 | 0 96]
X1_W = 128                            # [vit_f 32 | bert_f 32 | fmt 4 | job 8 | 0 52]
A1_W = 2 * H1 + 128                   # 1152 = [vh 512 | sh 512 | f_h 32 | j_h 32 | 0 64]
COMB = 2 * H2 + 256                   # 768  = [v 256 | s 256 | f 64 | 0 | j 64 | 0]
HEAD_W = 128                          # head cols: attn 0..3, vscore 4, sscore 5
OUT_W = 128                           # packed output lanes

# packed bias layout: one f32 (1, BIAS_TOTAL) array, 128-aligned slots
_BIAS_SLOTS = (("b1", A1_W), ("b2", COMB), ("bhead", HEAD_W), ("cb1", CH), ("cb2", 128))
_BIAS_OFF, _BIAS_W = {}, {}
_o = 0
for _n, _w in _BIAS_SLOTS:
    _BIAS_OFF[_n], _BIAS_W[_n] = _o, _w
    _o += _w
BIAS_TOTAL = _o                       # 2432


# ------------------------------- Pallas kernel --------------------------------
def _fused_kernel(x0_ref, fj_ref, W0_ref, W1_ref, W2_ref, Whc_ref, cW2_ref,
                  bias_ref, out_ref):
    f32, bf16 = jnp.float32, jnp.bfloat16

    def bdot(a, w):                       # bf16 MXU matmul, f32 accumulation
        return jnp.dot(a.astype(bf16), w, preferred_element_type=f32)

    def bias(name):
        lo = _BIAS_OFF[name]
        return bias_ref[:, lo:lo + _BIAS_W[name]]          # (1, width) f32

    relu = lambda x: jnp.maximum(x, 0.0)

    # stage 0: both backbone pooler stubs in ONE block-diag matmul + tanh
    pool = jnp.tanh(bdot(x0_ref[...], W0_ref[...]))        # (TM,128) = [vit_f|bert_f|0]
    # raw format/job features occupy lanes 64:76; pooler lanes there are exactly 0
    x1 = pool + fj_ref[...].astype(f32)                    # (TM,128)

    # stages 1+2: all four branch MLPs as TWO block-diagonal matmuls
    a1 = relu(bdot(x1, W1_ref[...]) + bias("b1"))          # (TM,1152) = [vh|sh|fh|jh|0]
    comb = relu(bdot(a1, W2_ref[...]) + bias("b2"))        # (TM, 768) = [v|s|f|0|j|0]

    # fused head: attention logits + visual/semantic scores (ONE matmul)
    head = bdot(comb, Whc_ref[:, CH:CH + HEAD_W]) + bias("bhead")   # (TM,128)
    attn_logits = head[:, 0:4]
    m = jnp.max(attn_logits, axis=-1, keepdims=True)
    e = jnp.exp(attn_logits - m)
    w = e * pl.reciprocal(jnp.sum(e, axis=-1, keepdims=True), approx=False)  # (TM,4)

    # attention weighting via per-lane select (no lane concat; padded lanes stay 0)
    lane = jax.lax.broadcasted_iota(jnp.int32, comb.shape, 1)
    sel = jnp.where(lane < 2 * H2,
                    jnp.where(lane < H2, w[:, 0:1], w[:, 1:2]),
                    jnp.where(lane < 2 * H2 + 128, w[:, 2:3], w[:, 3:4]))
    weighted = comb * sel                                   # (TM,768)

    # classifier: ONE 768x256 matmul + zero-padded 256x128 final layer
    h = relu(bdot(weighted, Whc_ref[:, 0:CH]) + bias("cb1"))        # (TM,256)
    logits_full = bdot(h, cW2_ref[...]) + bias("cb2")               # (TM,128)

    # compose packed row [logits 0:4 | vscore | sscore | attn 6:10 | 0...] in
    # registers -> exactly ONE unmasked store
    packed = jnp.concatenate(
        [logits_full[:, 0:NUM_CLASSES], head[:, 4:6], w,
         jnp.zeros((logits_full.shape[0], OUT_W - NUM_CLASSES - 6), f32)], axis=-1)
    out_ref[...] = packed


def _fusion_pallas(pix_flat, bert_pre, format_features, job_one_hot, packed):
    B = pix_flat.shape[0]
    TM = min(256, ((B + 7) // 8) * 8)        # one tile for small batch, 256 for large
    Bp = ((B + TM - 1) // TM) * TM
    bf16 = jnp.bfloat16

    def pad_rows(x):
        return jnp.pad(x, ((0, Bp - B), (0, 0)))

    x0 = jnp.concatenate(
        [pix_flat, bert_pre,
         jnp.zeros((B, X0_W - PIX_FLAT - BERT_DIM), jnp.float32)], axis=-1)
    fj = jnp.concatenate(
        [jnp.zeros((B, VIT_DIM + BERT_DIM), jnp.float32), format_features, job_one_hot,
         jnp.zeros((B, X1_W - VIT_DIM - BERT_DIM - FORMAT_DIM - NUM_JOBS), jnp.float32)],
        axis=-1)

    acts = (pad_rows(x0).astype(bf16), pad_rows(fj).astype(bf16))

    act_specs = [pl.BlockSpec((TM, a.shape[1]), lambda i: (i, 0)) for a in acts]
    # full-array blocks + constant index_map -> weights DMA'd once, VMEM-resident
    w_specs = [pl.BlockSpec(p.shape, lambda i: (0, 0)) for p in packed]

    out = pl.pallas_call(
        _fused_kernel,
        out_shape=jax.ShapeDtypeStruct((Bp, OUT_W), jnp.float32),
        grid=(Bp // TM,),
        in_specs=act_specs + w_specs,
        out_specs=pl.BlockSpec((TM, OUT_W), lambda i: (i, 0)),
        compiler_params=pltpu.CompilerParams(
            dimension_semantics=("parallel",)),
    )(*acts, *packed)

    c = NUM_CLASSES
    return {"logits": out[:B, 0:c],
            "visual_score": out[:B, c:c + 1],
            "semantic_score": out[:B, c + 1:c + 2],
            "attention_weights": out[:B, c + 2:c + 6]}


# ------------------------- parameter init & packing glue -----------------------
def init_raw_params(key):
    def lin(k, din, dout, scale=0.02):
        kw, kb = jax.random.split(k)
        return (scale * jax.random.normal(kw, (din, dout), jnp.float32),
                scale * jax.random.normal(kb, (dout,), jnp.float32))

    ks = jax.random.split(key, 16)
    raw = {}
    raw["vW1"], raw["vb1"] = lin(ks[0], VIT_DIM, H1)
    raw["vW2"], raw["vb2"] = lin(ks[1], H1, H2)
    raw["vWs"], raw["vbs"] = lin(ks[2], H2, 1)
    raw["sW1"], raw["sb1"] = lin(ks[3], BERT_DIM, H1)
    raw["sW2"], raw["sb2"] = lin(ks[4], H1, H2)
    raw["sWs"], raw["sbs"] = lin(ks[5], H2, 1)
    raw["fW1"], raw["fb1"] = lin(ks[6], FORMAT_DIM, FH1)
    raw["fW2"], raw["fb2"] = lin(ks[7], FH1, FH2)
    raw["jW1"], raw["jb1"] = lin(ks[8], NUM_JOBS, FH1)
    raw["jW2"], raw["jb2"] = lin(ks[9], FH1, FH2)
    combined = 2 * H2 + 2 * FH2                              # 640
    raw["aW"], raw["ab"] = lin(ks[10], combined, 4)
    raw["cW1"], raw["cb1"] = lin(ks[11], combined, CH)
    raw["cW2"], raw["cb2"] = lin(ks[12], CH, NUM_CLASSES)
    backbone = {
        "vit_Wp": 0.02 * jax.random.normal(ks[13], (PIX_FLAT, VIT_DIM), jnp.float32),
        "bert_emb": 0.02 * jax.random.normal(ks[14], (VOCAB, BERT_DIM), jnp.float32),
        "bert_Wp": 0.02 * jax.random.normal(ks[15], (BERT_DIM, BERT_DIM), jnp.float32),
    }
    return raw, backbone


def pack_params(raw, backbone):
    bf16, f32 = jnp.bfloat16, jnp.float32

    def pad_rows_640_to_768(W):
        # original concat rows: [v 0:256 | s 256:512 | f 512:576 | j 576:640]
        # padded  concat rows:  [v 0:256 | s 256:512 | f 512:576 | 0 | j 640:704 | 0]
        z = jnp.zeros((128 - FH2, W.shape[1]), W.dtype)
        return jnp.concatenate([W[0:2 * H2], W[2 * H2:2 * H2 + FH2], z,
                                W[2 * H2 + FH2:2 * H2 + 2 * FH2], z], axis=0)

    # stage 0: fused pooler weight (896, 128)
    W0 = jnp.zeros((X0_W, X1_W), f32)
    W0 = W0.at[0:PIX_FLAT, 0:VIT_DIM].set(backbone["vit_Wp"])
    W0 = W0.at[PIX_FLAT:PIX_FLAT + BERT_DIM, VIT_DIM:VIT_DIM + BERT_DIM].set(backbone["bert_Wp"])

    # stage 1: all four branch layer-1's as one block-diagonal weight (128, 1152)
    W1 = jnp.zeros((X1_W, A1_W), f32)
    W1 = W1.at[0:VIT_DIM, 0:H1].set(raw["vW1"])
    W1 = W1.at[VIT_DIM:VIT_DIM + BERT_DIM, H1:2 * H1].set(raw["sW1"])
    W1 = W1.at[64:64 + FORMAT_DIM, 2 * H1:2 * H1 + FH1].set(raw["fW1"])
    W1 = W1.at[64 + FORMAT_DIM:64 + FORMAT_DIM + NUM_JOBS,
               2 * H1 + FH1:2 * H1 + 2 * FH1].set(raw["jW1"])

    # stage 2: all four branch layer-2's as one block-diagonal weight (1152, 768)
    W2 = jnp.zeros((A1_W, COMB), f32)
    W2 = W2.at[0:H1, 0:H2].set(raw["vW2"])
    W2 = W2.at[H1:2 * H1, H2:2 * H2].set(raw["sW2"])
    W2 = W2.at[2 * H1:2 * H1 + FH1, 2 * H2:2 * H2 + FH2].set(raw["fW2"])
    W2 = W2.at[2 * H1 + FH1:2 * H1 + 2 * FH1,
               2 * H2 + 128:2 * H2 + 128 + FH2].set(raw["jW2"])

    # classifier-1 + (attention, visual_score, semantic_score) packed into one array
    cW1p = pad_rows_640_to_768(raw["cW1"])                           # (768, 256)
    headW = jnp.zeros((COMB, HEAD_W), f32)
    headW = headW.at[:, 0:4].set(pad_rows_640_to_768(raw["aW"]))
    headW = headW.at[0:H2, 4].set(raw["vWs"][:, 0])
    headW = headW.at[H2:2 * H2, 5].set(raw["sWs"][:, 0])
    W_hc = jnp.concatenate([cW1p, headW], axis=1)                    # (768, 384)

    cW2p = jnp.zeros((CH, OUT_W), f32).at[:, 0:NUM_CLASSES].set(raw["cW2"])

    # biases (kept f32), packed into one lane-aligned (1, 2432) array
    b1 = (jnp.zeros((A1_W,), f32)
          .at[0:H1].set(raw["vb1"]).at[H1:2 * H1].set(raw["sb1"])
          .at[2 * H1:2 * H1 + FH1].set(raw["fb1"])
          .at[2 * H1 + FH1:2 * H1 + 2 * FH1].set(raw["jb1"]))
    b2 = (jnp.zeros((COMB,), f32)
          .at[0:H2].set(raw["vb2"]).at[H2:2 * H2].set(raw["sb2"])
          .at[2 * H2:2 * H2 + FH2].set(raw["fb2"])
          .at[2 * H2 + 128:2 * H2 + 128 + FH2].set(raw["jb2"]))
    b_head = (jnp.zeros((HEAD_W,), f32).at[0:4].set(raw["ab"])
              .at[4].set(raw["vbs"][0]).at[5].set(raw["sbs"][0]))
    cb2p = jnp.zeros((128,), f32).at[0:NUM_CLASSES].set(raw["cb2"])
    slot_vals = {"b1": b1, "b2": b2, "bhead": b_head, "cb1": raw["cb1"], "cb2": cb2p}
    for name, width in _BIAS_SLOTS:
        assert slot_vals[name].shape == (width,)
    bias_pack = jnp.concatenate([slot_vals[n] for n, _ in _BIAS_SLOTS]).reshape(1, BIAS_TOTAL)

    return (W0.astype(bf16), W1.astype(bf16), W2.astype(bf16),
            W_hc.astype(bf16), cW2p.astype(bf16), bias_pack.astype(f32))


# -------------------------------- full forward ---------------------------------
def _preprocess(pixel_values, input_ids, attention_mask, token_type_ids, bert_emb):
    # TODO(synk): pretrained ViTModel / BertModel backbones have no clean Pallas
    # equivalent; deterministic pooler stubs stand in (flatten->dense->tanh for ViT,
    # embed->masked-mean->dense->tanh for BERT).  The dense+tanh halves run inside the
    # Pallas kernel; the embedding gather / masked mean stays in XLA (same jit).
    B = pixel_values.shape[0]
    pix_flat = pixel_values.reshape(B, -1).astype(jnp.float32)
    tok = bert_emb[input_ids] + bert_emb[token_type_ids]
    mask = attention_mask[..., None].astype(jnp.float32)
    bert_pre = (tok * mask).sum(1) / jnp.maximum(mask.sum(1), 1.0)
    return pix_flat, bert_pre


@jax.jit
def _forward_jit(pixel_values, input_ids, attention_mask, token_type_ids,
                 format_features, job_one_hot, packed_params, bert_emb):
    pix_flat, bert_pre = _preprocess(pixel_values, input_ids, attention_mask,
                                     token_type_ids, bert_emb)
    return _fusion_pallas(pix_flat, bert_pre, format_features, job_one_hot, packed_params)


def multimodal_cv_classifier_forward(pixel_values, input_ids, attention_mask,
                                     token_type_ids, format_features, job_one_hot,
                                     packed_params, bert_emb):
    B = pixel_values.shape[0]
    if format_features is None:
        format_features = jnp.zeros((B, FORMAT_DIM), jnp.float32)
    if job_one_hot is None:
        job_one_hot = jnp.zeros((B, NUM_JOBS), jnp.float32)
    return _forward_jit(pixel_values, input_ids, attention_mask, token_type_ids,
                        format_features, job_one_hot, packed_params, bert_emb)


# --------------------------- pure-JAX reference (check) -------------------------
def _reference_forward(pixel_values, input_ids, attention_mask, token_type_ids,
                       fmt, job, raw, backbone):
    """Original (unfused, unpacked) module semantics, mirroring the kernel's dtype
    policy: bf16 weights/activations on every dot, f32 accumulation, f32 biases."""
    bf16, f32 = jnp.bfloat16, jnp.float32

    def d(a, W):
        return jnp.dot(a.astype(bf16), W.astype(bf16), preferred_element_type=f32)

    relu = lambda x: jnp.maximum(x, 0.0)
    pix_flat, bert_pre = _preprocess(pixel_values, input_ids, attention_mask,
                                     token_type_ids, backbone["bert_emb"])
    vit_f = jnp.tanh(d(pix_flat, backbone["vit_Wp"]))
    bert_f = jnp.tanh(d(bert_pre, backbone["bert_Wp"]))
    v = relu(d(relu(d(vit_f, raw["vW1"]) + raw["vb1"]), raw["vW2"]) + raw["vb2"])
    s = relu(d(relu(d(bert_f, raw["sW1"]) + raw["sb1"]), raw["sW2"]) + raw["sb2"])
    f = relu(d(relu(d(fmt, raw["fW1"]) + raw["fb1"]), raw["fW2"]) + raw["fb2"])
    j = relu(d(relu(d(job, raw["jW1"]) + raw["jb1"]), raw["jW2"]) + raw["jb2"])
    vscore = d(v, raw["vWs"]) + raw["vbs"]
    sscore = d(s, raw["sWs"]) + raw["sbs"]
    comb = jnp.concatenate([v, s, f, j], axis=-1)
    w = jax.nn.softmax(d(comb, raw["aW"]) + raw["ab"], axis=1)
    weighted = jnp.concatenate([v * w[:, 0:1], s * w[:, 1:2],
                                f * w[:, 2:3], j * w[:, 3:4]], axis=-1)
    h = relu(d(weighted, raw["cW1"]) + raw["cb1"])
    logits = d(h, raw["cW2"]) + raw["cb2"]
    return logits, vscore, sscore, w


# ------------------------------------ main --------------------------------------
if __name__ == "__main__":
    key = jax.random.PRNGKey(0)
    k_param, k_px, k_ids, k_fmt, k_job = jax.random.split(key, 5)

    raw_params, backbone = init_raw_params(k_param)
    packed_params = pack_params(raw_params, backbone)

    pixel_values = jax.random.normal(k_px, (BATCH, IMG_C, IMG_H, IMG_W), jnp.float32)
    input_ids = jax.random.randint(k_ids, (BATCH, SEQ), 0, VOCAB, jnp.int32)
    attention_mask = jnp.ones((BATCH, SEQ), jnp.int32)
    token_type_ids = jnp.zeros((BATCH, SEQ), jnp.int32)
    format_features = jax.random.normal(k_fmt, (BATCH, FORMAT_DIM), jnp.float32)
    job_one_hot = jax.nn.one_hot(jax.random.randint(k_job, (BATCH,), 0, NUM_JOBS),
                                 NUM_JOBS, dtype=jnp.float32)

    out = multimodal_cv_classifier_forward(
        pixel_values, input_ids, attention_mask, token_type_ids,
        format_features, job_one_hot, packed_params, backbone["bert_emb"])
    jax.block_until_ready(out)

    ref_logits, ref_vs, ref_ss, ref_w = _reference_forward(
        pixel_values, input_ids, attention_mask, token_type_ids,
        format_features, job_one_hot, raw_params, backbone)

    assert jnp.allclose(out["logits"], ref_logits, atol=3e-4, rtol=3e-3)
    assert jnp.allclose(out["visual_score"], ref_vs, atol=3e-4, rtol=3e-3)
    assert jnp.allclose(out["semantic_score"], ref_ss, atol=3e-4, rtol=3e-3)
    assert jnp.allclose(out["attention_weights"], ref_w, atol=3e-4, rtol=3e-3)

    print("KERNEL_OK")
</pallas_src>

<mosaic_0001>
module attributes {stable_mosaic.version = 11 : i64} {
  func.func @_fused_kernel(%arg0: i32, %arg1: memref<8x896xbf16, #tpu.memory_space<vmem>>, %arg2: memref<8x128xbf16, #tpu.memory_space<vmem>>, %arg3: memref<896x128xbf16, #tpu.memory_space<vmem>>, %arg4: memref<128x1152xbf16, #tpu.memory_space<vmem>>, %arg5: memref<1152x768xbf16, #tpu.memory_space<vmem>>, %arg6: memref<768x384xbf16, #tpu.memory_space<vmem>>, %arg7: memref<256x128xbf16, #tpu.memory_space<vmem>>, %arg8: memref<1x2432xf32, #tpu.memory_space<vmem>>, %arg9: memref<8x128xf32, #tpu.memory_space<vmem>>) attributes {dimension_semantics = [#tpu.dimension_semantics<parallel>], iteration_bounds = array<i64: 1>, scalar_prefetch = 0 : i64, scratch_operands = 0 : i64, tpu.core_type = #tpu.core_type<tc>, window_params = [{transform_indices = @transform_0, window_bounds = array<i64: 8, 896>}, {transform_indices = @transform_1, window_bounds = array<i64: 8, 128>}, {pipeline_mode = #tpu.pipeline_mode<synchronous>, transform_indices = @transform_2, window_bounds = array<i64: 896, 128>}, {pipeline_mode = #tpu.pipeline_mode<synchronous>, transform_indices = @transform_3, window_bounds = array<i64: 128, 1152>}, {pipeline_mode = #tpu.pipeline_mode<synchronous>, transform_indices = @transform_4, window_bounds = array<i64: 1152, 768>}, {pipeline_mode = #tpu.pipeline_mode<synchronous>, transform_indices = @transform_5, window_bounds = array<i64: 768, 384>}, {pipeline_mode = #tpu.pipeline_mode<synchronous>, transform_indices = @transform_6, window_bounds = array<i64: 256, 128>}, {pipeline_mode = #tpu.pipeline_mode<synchronous>, transform_indices = @transform_7, window_bounds = array<i64: 1, 2432>}, {transform_indices = @transform_8, window_bounds = array<i64: 8, 128>}]} {
    %c0 = arith.constant 0 : index
    %c0_0 = arith.constant 0 : index
    %0 = vector.load %arg1[%c0, %c0_0] : memref<8x896xbf16, #tpu.memory_space<vmem>>, vector<8x896xbf16>
    %c0_1 = arith.constant 0 : index
    %c0_2 = arith.constant 0 : index
    %1 = vector.load %arg3[%c0_1, %c0_2] : memref<896x128xbf16, #tpu.memory_space<vmem>>, vector<896x128xbf16>
    %cst = arith.constant dense<0.000000e+00> : vector<8x128xf32>
    %2 = tpu.matmul %0, %1, %cst {dimension_numbers = #tpu.dot_dimension_numbers<[1], [0], [0], [1], [0, 0, 1, 1], [], []>} : vector<8x896xbf16>, vector<896x128xbf16>, vector<8x128xf32> -> vector<8x128xf32>
    %3 = math.tanh %2 : vector<8x128xf32>
    %c0_3 = arith.constant 0 : index
    %c0_4 = arith.constant 0 : index
    %4 = vector.load %arg2[%c0_3, %c0_4] : memref<8x128xbf16, #tpu.memory_space<vmem>>, vector<8x128xbf16>
    %5 = arith.extf %4 : vector<8x128xbf16> to vector<8x128xf32>
    %6 = arith.addf %3, %5 : vector<8x128xf32>
    %c0_5 = arith.constant 0 : index
    %c0_6 = arith.constant 0 : index
    %7 = vector.load %arg4[%c0_5, %c0_6] : memref<128x1152xbf16, #tpu.memory_space<vmem>>, vector<128x1152xbf16>
    %8 = arith.truncf %6 : vector<8x128xf32> to vector<8x128xbf16>
    %cst_7 = arith.constant dense<0.000000e+00> : vector<8x1152xf32>
    %9 = tpu.matmul %8, %7, %cst_7 {dimension_numbers = #tpu.dot_dimension_numbers<[1], [0], [0], [1], [0, 0, 1, 1], [], []>} : vector<8x128xbf16>, vector<128x1152xbf16>, vector<8x1152xf32> -> vector<8x1152xf32>
    %c0_8 = arith.constant 0 : index
    %c0_9 = arith.constant 0 : index
    %10 = vector.load %arg8[%c0_8, %c0_9] : memref<1x2432xf32, #tpu.memory_space<vmem>>, vector<1x1152xf32>
    %11 = vector.broadcast %10 : vector<1x1152xf32> to vector<8x1152xf32>
    %12 = arith.addf %9, %11 : vector<8x1152xf32>
    %cst_10 = arith.constant 0.000000e+00 : f32
    %13 = vector.broadcast %cst_10 : f32 to vector<8x1152xf32>
    %14 = arith.maximumf %12, %13 : vector<8x1152xf32>
    %c0_11 = arith.constant 0 : index
    %c0_12 = arith.constant 0 : index
    %15 = vector.load %arg5[%c0_11, %c0_12] : memref<1152x768xbf16, #tpu.memory_space<vmem>>, vector<1152x768xbf16>
    %16 = arith.truncf %14 : vector<8x1152xf32> to vector<8x1152xbf16>
    %cst_13 = arith.constant dense<0.000000e+00> : vector<8x768xf32>
    %17 = tpu.matmul %16, %15, %cst_13 {dimension_numbers = #tpu.dot_dimension_numbers<[1], [0], [0], [1], [0, 0, 1, 1], [], []>} : vector<8x1152xbf16>, vector<1152x768xbf16>, vector<8x768xf32> -> vector<8x768xf32>
    %c0_14 = arith.constant 0 : index
    %c1152 = arith.constant 1152 : index
    %18 = vector.load %arg8[%c0_14, %c1152] : memref<1x2432xf32, #tpu.memory_space<vmem>>, vector<1x768xf32>
    %19 = vector.broadcast %18 : vector<1x768xf32> to vector<8x768xf32>
    %20 = arith.addf %17, %19 : vector<8x768xf32>
    %cst_15 = arith.constant 0.000000e+00 : f32
    %21 = vector.broadcast %cst_15 : f32 to vector<8x768xf32>
    %22 = arith.maximumf %20, %21 : vector<8x768xf32>
    %c0_16 = arith.constant 0 : index
    %c256 = arith.constant 256 : index
    %23 = vector.load %arg6[%c0_16, %c256] : memref<768x384xbf16, #tpu.memory_space<vmem>>, vector<768x128xbf16>
    %24 = arith.truncf %22 : vector<8x768xf32> to vector<8x768xbf16>
    %cst_17 = arith.constant dense<0.000000e+00> : vector<8x128xf32>
    %25 = tpu.matmul %24, %23, %cst_17 {dimension_numbers = #tpu.dot_dimension_numbers<[1], [0], [0], [1], [0, 0, 1, 1], [], []>} : vector<8x768xbf16>, vector<768x128xbf16>, vector<8x128xf32> -> vector<8x128xf32>
    %c0_18 = arith.constant 0 : index
    %c1920 = arith.constant 1920 : index
    %26 = vector.load %arg8[%c0_18, %c1920] : memref<1x2432xf32, #tpu.memory_space<vmem>>, vector<1x128xf32>
    %27 = vector.broadcast %26 : vector<1x128xf32> to vector<8x128xf32>
    %28 = arith.addf %25, %27 : vector<8x128xf32>
    %29 = vector.extract_strided_slice %28 {offsets = [0, 0], sizes = [8, 4], strides = [1, 1]} : vector<8x128xf32> to vector<8x4xf32>
    %cst_19 = arith.constant dense<0xFF800000> : vector<8xf32>
    %30 = vector.multi_reduction <maximumf>, %29, %cst_19 [1] : vector<8x4xf32> to vector<8xf32>
    %31 = vector.shape_cast %30 : vector<8xf32> to vector<8x1xf32>
    %32 = vector.broadcast %31 : vector<8x1xf32> to vector<8x4xf32>
    %33 = arith.subf %29, %32 : vector<8x4xf32>
    %34 = math.exp %33 : vector<8x4xf32>
    %cst_20 = arith.constant dense<0.000000e+00> : vector<8xf32>
    %35 = vector.multi_reduction <add>, %34, %cst_20 [1] : vector<8x4xf32> to vector<8xf32>
    %36 = vector.shape_cast %35 : vector<8xf32> to vector<8x1xf32>
    %37 = tpu.reciprocal %36 : vector<8x1xf32> -> vector<8x1xf32>
    %38 = vector.broadcast %37 : vector<8x1xf32> to vector<8x4xf32>
    %39 = arith.mulf %34, %38 : vector<8x4xf32>
    %40 = tpu.iota {dimensions = array<i32: 1>} : vector<8x768xi32>
    %c512_i32 = arith.constant 512 : i32
    %41 = vector.broadcast %c512_i32 : i32 to vector<8x768xi32>
    %42 = arith.cmpi slt, %40, %41 : vector<8x768xi32>
    %c256_i32 = arith.constant 256 : i32
    %43 = vector.broadcast %c256_i32 : i32 to vector<8x768xi32>
    %44 = arith.cmpi slt, %40, %43 : vector<8x768xi32>
    %45 = vector.extract_strided_slice %39 {offsets = [0, 0], sizes = [8, 1], strides = [1, 1]} : vector<8x4xf32> to vector<8x1xf32>
    %46 = vector.extract_strided_slice %39 {offsets = [0, 1], sizes = [8, 1], strides = [1, 1]} : vector<8x4xf32> to vector<8x1xf32>
    %47 = vector.shape_cast %45 : vector<8x1xf32> to vector<8x1xf32>
    %48 = vector.broadcast %47 : vector<8x1xf32> to vector<8x768xf32>
    %49 = vector.shape_cast %46 : vector<8x1xf32> to vector<8x1xf32>
    %50 = vector.broadcast %49 : vector<8x1xf32> to vector<8x768xf32>
    %51 = arith.select %44, %48, %50 : vector<8x768xi1>, vector<8x768xf32>
    %c640_i32 = arith.constant 640 : i32
    %52 = vector.broadcast %c640_i32 : i32 to vector<8x768xi32>
    %53 = arith.cmpi slt, %40, %52 : vector<8x768xi32>
    %54 = vector.extract_strided_slice %39 {offsets = [0, 2], sizes = [8, 1], strides = [1, 1]} : vector<8x4xf32> to vector<8x1xf32>
    %55 = vector.extract_strided_slice %39 {offsets = [0, 3], sizes = [8, 1], strides = [1, 1]} : vector<8x4xf32> to vector<8x1xf32>
    %56 = vector.shape_cast %54 : vector<8x1xf32> to vector<8x1xf32>
    %57 = vector.broadcast %56 : vector<8x1xf32> to vector<8x768xf32>
    %58 = vector.shape_cast %55 : vector<8x1xf32> to vector<8x1xf32>
    %59 = vector.broadcast %58 : vector<8x1xf32> to vector<8x768xf32>
    %60 = arith.select %53, %57, %59 : vector<8x768xi1>, vector<8x768xf32>
    %61 = arith.select %42, %51, %60 : vector<8x768xi1>, vector<8x768xf32>
    %62 = arith.mulf %22, %61 : vector<8x768xf32>
    %c0_21 = arith.constant 0 : index
    %c0_22 = arith.constant 0 : index
    %63 = vector.load %arg6[%c0_21, %c0_22] : memref<768x384xbf16, #tpu.memory_space<vmem>>, vector<768x256xbf16>
    %64 = arith.truncf %62 : vector<8x768xf32> to vector<8x768xbf16>
    %cst_23 = arith.constant dense<0.000000e+00> : vector<8x256xf32>
    %65 = tpu.matmul %64, %63, %cst_23 {dimension_numbers = #tpu.dot_dimension_numbers<[1], [0], [0], [1], [0, 0, 1, 1], [], []>} : vector<8x768xbf16>, vector<768x256xbf16>, vector<8x256xf32> -> vector<8x256xf32>
    %c0_24 = arith.constant 0 : index
    %c2048 = arith.constant 2048 : index
    %66 = vector.load %arg8[%c0_24, %c2048] : memref<1x2432xf32, #tpu.memory_space<vmem>>, vector<1x256xf32>
    %67 = vector.broadcast %66 : vector<1x256xf32> to vector<8x256xf32>
    %68 = arith.addf %65, %67 : vector<8x256xf32>
    %cst_25 = arith.constant 0.000000e+00 : f32
    %69 = vector.broadcast %cst_25 : f32 to vector<8x256xf32>
    %70 = arith.maximumf %68, %69 : vector<8x256xf32>
    %c0_26 = arith.constant 0 : index
    %c0_27 = arith.constant 0 : index
    %71 = vector.load %arg7[%c0_26, %c0_27] : memref<256x128xbf16, #tpu.memory_space<vmem>>, vector<256x128xbf16>
    %72 = arith.truncf %70 : vector<8x256xf32> to vector<8x256xbf16>
    %cst_28 = arith.constant dense<0.000000e+00> : vector<8x128xf32>
    %73 = tpu.matmul %72, %71, %cst_28 {dimension_numbers = #tpu.dot_dimension_numbers<[1], [0], [0], [1], [0, 0, 1, 1], [], []>} : vector<8x256xbf16>, vector<256x128xbf16>, vector<8x128xf32> -> vector<8x128xf32>
    %c0_29 = arith.constant 0 : index
    %c2304 = arith.constant 2304 : index
    %74 = vector.load %arg8[%c0_29, %c2304] : memref<1x2432xf32, #tpu.memory_space<vmem>>, vector<1x128xf32>
    %75 = vector.broadcast %74 : vector<1x128xf32> to vector<8x128xf32>
    %76 = arith.addf %73, %75 : vector<8x128xf32>
    %77 = vector.extract_strided_slice %76 {offsets = [0, 0], sizes = [8, 4], strides = [1, 1]} : vector<8x128xf32> to vector<8x4xf32>
    %78 = vector.extract_strided_slice %28 {offsets = [0, 4], sizes = [8, 2], strides = [1, 1]} : vector<8x128xf32> to vector<8x2xf32>
    %cst_30 = arith.constant 0.000000e+00 : f32
    %79 = vector.broadcast %cst_30 : f32 to vector<8x118xf32>
    %80 = tpu.concatenate %77, %78, %39, %79 in 1 : vector<8x4xf32>, vector<8x2xf32>, vector<8x4xf32>, vector<8x118xf32> -> vector<8x128xf32>
    %c0_31 = arith.constant 0 : index
    %c0_32 = arith.constant 0 : index
    %81 = vector.load %arg9[%c0_31, %c0_32] : memref<8x128xf32, #tpu.memory_space<vmem>>, vector<8x128xf32>
    tpu.vector_store %arg9[%c0_31, %c0_32], %80 {strides = array<i32>} : memref<8x128xf32, #tpu.memory_space<vmem>>, vector<8x128xf32>,
    return
  }
  func.func @transform_0(%arg0: i32) -> (i32, i32) {
    %c0_i32 = arith.constant 0 : i32
    %c0_i32_0 = arith.constant 0 : i32
    return %arg0, %c0_i32 : i32, i32
  }
  func.func @transform_1(%arg0: i32) -> (i32, i32) {
    %c0_i32 = arith.constant 0 : i32
    %c0_i32_0 = arith.constant 0 : i32
    return %arg0, %c0_i32 : i32, i32
  }
  func.func @transform_2(%arg0: i32) -> (i32, i32) {
    %c0_i32 = arith.constant 0 : i32
    %c0_i32_0 = arith.constant 0 : i32
    %c0_i32_1 = arith.constant 0 : i32
    return %c0_i32, %c0_i32_0 : i32, i32
  }
  func.func @transform_3(%arg0: i32) -> (i32, i32) {
    %c0_i32 = arith.constant 0 : i32
    %c0_i32_0 = arith.constant 0 : i32
    %c0_i32_1 = arith.constant 0 : i32
    return %c0_i32, %c0_i32_0 : i32, i32
  }
  func.func @transform_4(%arg0: i32) -> (i32, i32) {
    %c0_i32 = arith.constant 0 : i32
    %c0_i32_0 = arith.constant 0 : i32
    %c0_i32_1 = arith.constant 0 : i32
    return %c0_i32, %c0_i32_0 : i32, i32
  }
  func.func @transform_5(%arg0: i32) -> (i32, i32) {
    %c0_i32 = arith.constant 0 : i32
    %c0_i32_0 = arith.constant 0 : i32
    %c0_i32_1 = arith.constant 0 : i32
    return %c0_i32, %c0_i32_0 : i32, i32
  }
  func.func @transform_6(%arg0: i32) -> (i32, i32) {
    %c0_i32 = arith.constant 0 : i32
    %c0_i32_0 = arith.constant 0 : i32
    %c0_i32_1 = arith.constant 0 : i32
    return %c0_i32, %c0_i32_0 : i32, i32
  }
  func.func @transform_7(%arg0: i32) -> (i32, i32) {
    %c0_i32 = arith.constant 0 : i32
    %c0_i32_0 = arith.constant 0 : i32
    %c0_i32_1 = arith.constant 0 : i32
    return %c0_i32, %c0_i32_0 : i32, i32
  }
  func.func @transform_8(%arg0: i32) -> (i32, i32) {
    %c0_i32 = arith.constant 0 : i32
    %c0_i32_0 = arith.constant 0 : i32
    return %arg0, %c0_i32 : i32, i32
  }
}

</mosaic_0001>

<bundles_post_ra>
// kernel: _forward_jit.1
= control target key start
LH: loop header
LB: loop body
LE: loop exit
PB: predicated region body
PF: predicated region fallthrough
CT: control target
= control target key end

     0   :  { %13 = vsyncpa [#allocation3], 0  ;;  %s8787_s0 = inlined_call_operand.vmem [shape: bf16[8,896], index: 0, kind: input, shape index: {}]   ;;  %s8788_s1 = inlined_call_operand.vmem [shape: bf16[8,128], index: 1, kind: input, shape index: {}]   ;;  %s8789_s2 = inlined_call_operand.hbm [shape: bf16[896,128], index: 2, kind: input, shape index: {}]   ;;  %s8790_s3 = inlined_call_operand.hbm [shape: bf16[128,1152], index: 3, kind: input, shape index: {}]   ;;  %s8791_s4 = inlined_call_operand.hbm [shape: bf16[1152,768], index: 4, kind: input, shape index: {}]   ;;  %s8792_s5 = inlined_call_operand.hbm [shape: bf16[768,384], index: 5, kind: input, shape index: {}]   ;;  %s8793_s6 = inlined_call_operand.hbm [shape: bf16[256,128], index: 6, kind: input, shape index: {}]   ;;  %s8794_s7 = inlined_call_operand.hbm [shape: f32[1,2432], index: 7, kind: input, shape index: {}]   ;;  %s8795_s8 = inlined_call_operand.vmem [shape: f32[8,128], index: 8, kind: output, shape index: {}]  }
   0x1   :  { %14 = vsyncpa [#allocation5], 0 }
   0x2   :  { %15 = vsyncpa [#allocation8], 0 }
   0x3   :  { %16 = vsyncpa [#allocation11], 0  ;;  %s8424_s27 = smov [#allocation4]   ;;  %s8284_s9 = scalar_lea.hbm %s8790_s3, 9216 }
   0x4   :  { %s38_s28 = sshll.u32 %s8424_s27, 4  ;;  %p8285_p0 = scmp.ne.s32.totalorder %s8790_s3, %s8284_s9  ;;  %s39_s28 = int_to_ptr.vmem [resolvable:$true] %s38_s28 }
   0x5   :  { %p8288_p1 = scmp.lt.u32.totalorder %s8284_s9, %s8790_s3 }
   0x7   :  { %p8290_p2 = pnand %p8288_p1, %p8285_p0 }
   0x9   :  { %8293 = shalt.err (!%p8290_p2)
}
   0xa   :  { %s8294_s14 = scalar_lea.vmem %s39_s28, 9216  ;;  %p8299_p4 = scmp.lt.s32.totalorder %s39_s28, %s39_s28 }
   0xb   :  { %p8295_p3 = scmp.ne.s32.totalorder %s39_s28, %s8294_s14  ;;  %p8300_p5 = scmp.lt.s32.totalorder %s8294_s14, %s8294_s14 }
   0xd   :  { %p8301_p6 = por %p8300_p5, %p8299_p4 }
   0xf   :  { %p8302_p7 = pnand %p8301_p6, %p8295_p3 }
  0x11   :  { %8305 = shalt.err (!%p8302_p7)
}
  0x12   :  { %s8425_s15 = smov 576   ;;  %s8426_s16 = smov 36  }
  0x13   :  { %44 = dma.hbm_to_vmem [thread:$0]  %s8790_s3, 9216, %s39_s28, [#allocation5], %s8425_s15, %s8425_s15, %s8426_s16  }
  0x14   :  { %s8427_s19 = smov [#allocation7]   ;;  %s8306_s23 = scalar_lea.hbm %s8792_s5, 18432 }
  0x15   :  { %s62_s20 = sshll.u32 %s8427_s19, 4  ;;  %p8307_p8 = scmp.ne.s32.totalorder %s8792_s5, %s8306_s23  ;;  %s63_s20 = int_to_ptr.vmem [resolvable:$true] %s62_s20 }
  0x16   :  { %p8310_p9 = scmp.lt.u32.totalorder %s8306_s23, %s8792_s5 }
  0x18   :  { %p8312_p10 = pnand %p8310_p9, %p8307_p8 }
  0x1a   :  { %8315 = shalt.err (!%p8312_p10)
}
  0x1b   :  { %s8316_s29 = scalar_lea.vmem %s63_s20, 18432  ;;  %p8321_p12 = scmp.lt.s32.totalorder %s63_s20, %s63_s20 }
  0x1c   :  { %p8317_p11 = scmp.ne.s32.totalorder %s63_s20, %s8316_s29  ;;  %p8322_p13 = scmp.lt.s32.totalorder %s8316_s29, %s8316_s29 }
  0x1e   :  { %p8323_p0 = por %p8322_p13, %p8321_p12 }
  0x20   :  { %p8324_p1 = pnand %p8323_p0, %p8317_p11 }
  0x22   :  { %8327 = shalt.err (!%p8324_p1)
}
  0x23   :  { %s8428_s3 = smov 192   ;;  %s8429_s28 = smov 12  }
  0x24   :  { %68 = dma.hbm_to_vmem [thread:$0]  %s8792_s5, 18432, %s63_s20, [#allocation8], %s8428_s3, %s8428_s3, %s8429_s28  }
  0x25   :  { %s8430_s10 = smov [#allocation2]   ;;  %s8328_s14 = scalar_lea.hbm %s8789_s2, 7168 }
  0x26   :  { %s26_s11 = sshll.u32 %s8430_s10, 4  ;;  %p8329_p2 = scmp.ne.s32.totalorder %s8789_s2, %s8328_s14  ;;  %s27_s11 = int_to_ptr.vmem [resolvable:$true] %s26_s11 }
  0x27   :  { %p8332_p3 = scmp.lt.u32.totalorder %s8328_s14, %s8789_s2 }
  0x29   :  { %p8334_p4 = pnand %p8332_p3, %p8329_p2 }
  0x2b   :  { %8337 = shalt.err (!%p8334_p4)
}
  0x2c   :  { %s8338_s19 = scalar_lea.vmem %s27_s11, 7168  ;;  %p8343_p6 = scmp.lt.s32.totalorder %s27_s11, %s27_s11 }
  0x2d   :  { %p8339_p5 = scmp.ne.s32.totalorder %s27_s11, %s8338_s19  ;;  %p8344_p7 = scmp.lt.s32.totalorder %s8338_s19, %s8338_s19 }
  0x2f   :  { %p8345_p8 = por %p8344_p7, %p8343_p6 }
  0x31   :  { %p8346_p9 = pnand %p8345_p8, %p8339_p5 }
  0x33   :  { %8349 = shalt.err (!%p8346_p9)
}
  0x34   :  { %s8431_s5 = smov 64   ;;  %s8432_s20 = smov 4  }
  0x35   :  { %32 = dma.hbm_to_vmem [thread:$0]  %s8789_s2, 7168, %s27_s11, [#allocation3], %s8431_s5, %s8431_s5, %s8432_s20  }
  0x36   :  { %s8433_s23 = smov [#allocation6]   ;;  %s8350_s27 = scalar_lea.hbm %s8791_s4, 55296 }
  0x37   :  { %s50_s24 = sshll.u32 %s8433_s23, 4  ;;  %p8351_p10 = scmp.ne.s32.totalorder %s8791_s4, %s8350_s27  ;;  %s51_s24 = int_to_ptr.vmem [resolvable:$true] %s50_s24 }
  0x38   :  { %p8354_p11 = scmp.lt.u32.totalorder %s8350_s27, %s8791_s4 }
  0x3a   :  { %p8356_p12 = pnand %p8354_p11, %p8351_p10 }
  0x3c   :  { %8359 = shalt.err (!%p8356_p12)
}
  0x3d   :  { %s8360_s9 = scalar_lea.vmem %s51_s24, 55296  ;;  %p8365_p0 = scmp.lt.s32.totalorder %s51_s24, %s51_s24 }
  0x3e   :  { %p8361_p13 = scmp.ne.s32.totalorder %s51_s24, %s8360_s9  ;;  %p8366_p1 = scmp.lt.s32.totalorder %s8360_s9, %s8360_s9 }
  0x40   :  { %p8367_p2 = por %p8366_p1, %p8365_p0 }
  0x42   :  { %p8368_p3 = pnand %p8367_p2, %p8361_p13 }
  0x44   :  { %8371 = shalt.err (!%p8368_p3)
}
  0x45   :  { %s8434_s2 = smov 384   ;;  %s8435_s10 = smov 24  }
  0x46   :  { %56 = dma.hbm_to_vmem [thread:$0]  %s8791_s4, 55296, %s51_s24, [#allocation5], %s8434_s2, %s8434_s2, %s8435_s10  }
  0x47   :  { %s8436_s13 = smov [#allocation9]   ;;  %s8437_s15 = smov [#allocation10]  }
  0x48   :  { %s74_s14 = sshll.u32 %s8436_s13, 4  ;;  %s87_s16 = sshll.u32 %s8437_s15, 4  ;;  %s75_s14 = int_to_ptr.vmem [resolvable:$true] %s74_s14  ;;  %s88_s16 = int_to_ptr.vmem [resolvable:$true] %s87_s16 }
  0x49   :  { %s8372_s19 = scalar_lea.hbm %s8793_s6, 2048 }
  0x4a   :  { %p8373_p4 = scmp.ne.s32.totalorder %s8793_s6, %s8372_s19  ;;  %p8376_p5 = scmp.lt.u32.totalorder %s8372_s19, %s8793_s6 }
  0x4c   :  { %p8378_p6 = pnand %p8376_p5, %p8373_p4 }
  0x4e   :  { %8381 = shalt.err (!%p8378_p6)
}
  0x4f   :  { %s8382_s4 = scalar_lea.vmem %s75_s14, 2048  ;;  %p8387_p8 = scmp.lt.s32.totalorder %s75_s14, %s75_s14 }
  0x50   :  { %p8383_p7 = scmp.ne.s32.totalorder %s75_s14, %s8382_s4  ;;  %p8388_p9 = scmp.lt.s32.totalorder %s8382_s4, %s8382_s4 }
  0x52   :  { %p8389_p10 = por %p8388_p9, %p8387_p8 }
  0x54   :  { %p8390_p11 = pnand %p8389_p10, %p8383_p7 }
  0x56   :  { %8393 = shalt.err (!%p8390_p11)
}
  0x57   :  { %80 = dma.hbm_to_vmem [thread:$0]  %s8793_s6, 2048, %s75_s14, [#allocation8], %s8431_s5, %s8431_s5, %s8432_s20  }
  0x58   :  { %s8394_s3 = scalar_lea.hbm %s8794_s7, 304 }
  0x59   :  { %p8395_p12 = scmp.ne.s32.totalorder %s8794_s7, %s8394_s3  ;;  %p8398_p13 = scmp.lt.u32.totalorder %s8394_s3, %s8794_s7 }
  0x5b   :  { %p8400_p0 = pnand %p8398_p13, %p8395_p12 }
  0x5d   :  { %8403 = shalt.err (!%p8400_p0)
}
  0x5e   :  { %s8404_s10 = scalar_lea.vmem %s88_s16, 304  ;;  %s8408_s11 = scalar_lea.vmem %s88_s16, 320 }
  0x5f   :  { %p8405_p1 = scmp.ne.s32.totalorder %s88_s16, %s8404_s10  ;;  %p8409_p2 = scmp.lt.s32.totalorder %s88_s16, %s88_s16 }
  0x60   :  { %p8410_p3 = scmp.lt.s32.totalorder %s8408_s11, %s8404_s10 }
  0x62   :  { %p8411_p4 = por %p8410_p3, %p8409_p2 }
  0x64   :  { %p8412_p5 = pnand %p8411_p4, %p8405_p1 }
  0x66   :  { %8415 = shalt.err (!%p8412_p5)
}
  0x67   :  { %90 = dma.hbm_to_vmem [thread:$0]  %s8794_s7, 304, %s88_s16, [#allocation11]  }
  0x68   :  { %8416 = dma.done.wait [#allocation3], 7168  }
  0x69   :  { %8417 = vsyncadd [#allocation3], 4294960128 }
  0x6a   :  { %8418 = dma.done.wait [#allocation5], 64512  }
  0x6b   :  { %8419 = vsyncadd [#allocation5], 4294902784 }
  0x6c   :  { %8420 = dma.done.wait [#allocation8], 20480  }
  0x6d   :  { %8421 = vsyncadd [#allocation8], 4294946816 }
  0x6e   :  { %8422 = dma.done.wait [#allocation11], 304  }
  0x6f   :  { %8423 = vsyncadd [#allocation11], 4294966992  ;;  %v7255_v0 = vld [vmem:[#allocation2 + $0x40] sm:$0xff]   ;;  %v7259_v4 = vld [vmem:[#allocation2 + $0x48] sm:$0xff]   ;;  %v8438_v40 = vmov 0.0   ;;  %vm8439_vm0 = vmmov 0  }
  0x70   :  { %v7256_v1 = vld [vmem:[#allocation2 + $0xc0] sm:$0xff]   ;;  %6954 = vmatprep.subr.bf16.mxu0 %v7255_v0  ;;  %v7260_v5 = vld [vmem:[#allocation2 + $0xc8] sm:$0xff]   ;;  %v7263_v8 = vld [vmem:[#allocation2 + $0x50] sm:$0xff]   ;;  %vm5233_vm1 = vcmask 31744   ;;  %vm6211_vm2 = vcmask 48128   ;;  %vm6213_vm3 = vcmask 80896  }
  0x71   :  { %v7257_v2 = vld [vmem:[#allocation2] sm:$0xff]   ;;  %6976 = vmatprep.subr.bf16.mxu1 %v7256_v1  ;;  %v7261_v6 = vld [vmem:[#allocation2 + $0x8] sm:$0xff]   ;;  %v7264_v9 = vld [vmem:[#allocation2 + $0xd0] sm:$0xff]  }
  0x72   :  { %v7258_v3 = vld [vmem:[#allocation2 + $0x80] sm:$0xff]   ;;  %6955 = vmatpush3.bf16.msra.mxu0 %v7257_v2  ;;  %v7262_v7 = vld [vmem:[#allocation2 + $0x88] sm:$0xff]   ;;  %v7265_v10 = vld [vmem:[#allocation2 + $0x10] sm:$0xff]  }
  0x73   :  { %6977 = vmatpush3.bf16.msra.mxu1 %v7258_v3  ;;  %6956 = vmatprep.subr.bf16.mxu0 %v7259_v4  ;;  %v7266_v11 = vld [vmem:[#allocation2 + $0x90] sm:$0xff]   ;;  %v7267_v12 = vld [vmem:[#allocation2 + $0x58] sm:$0xff]   ;;  %v7271_v16 = vld [vmem:[#allocation2 + $0x60] sm:$0xff]  }
  0x74   :  { %6978 = vmatprep.subr.bf16.mxu1 %v7260_v5  ;;  %v7268_v13 = vld [vmem:[#allocation2 + $0xd8] sm:$0xff]   ;;  %v7272_v17 = vld [vmem:[#allocation2 + $0xe0] sm:$0xff]   ;;  %v7275_v20 = vld [vmem:[#allocation2 + $0x68] sm:$0xff]  }
  0x75   :  { %v7269_v14 = vld [vmem:[#allocation2 + $0x18] sm:$0xff]   ;;  %v7273_v18 = vld [vmem:[#allocation2 + $0x20] sm:$0xff]   ;;  %v7276_v21 = vld [vmem:[#allocation2 + $0xe8] sm:$0xff]  }
  0x76   :  { %6957 = vmatpush3.bf16.msra.mxu0 %v7261_v6  ;;  %v7270_v15 = vld [vmem:[#allocation2 + $0x98] sm:$0xff]   ;;  %v7274_v19 = vld [vmem:[#allocation2 + $0xa0] sm:$0xff]   ;;  %v7277_v22 = vld [vmem:[#allocation2 + $0x28] sm:$0xff]  }
  0x77   :  { %6979 = vmatpush3.bf16.msra.mxu1 %v7262_v7  ;;  %6958 = vmatprep.subr.bf16.mxu0 %v7263_v8  ;;  %v7278_v23 = vld [vmem:[#allocation2 + $0xa8] sm:$0xff]   ;;  %v7279_v24 = vld [vmem:[#allocation2 + $0x70] sm:$0xff]   ;;  %v7283_v28 = vld [vmem:[#allocation2 + $0x78] sm:$0xff]  }
  0x78   :  { %6980 = vmatprep.subr.bf16.mxu1 %v7264_v9  ;;  %v7280_v25 = vld [vmem:[#allocation2 + $0xf0] sm:$0xff]   ;;  %v7284_v29 = vld [vmem:[#allocation2 + $0xf8] sm:$0xff]   ;;  %v110_v32 = vld [vmem:[%s8787_s0] sm:$0xff] }
  0x79   :  { %v7281_v26 = vld [vmem:[#allocation2 + $0x30] sm:$0xff]   ;;  %v7285_v30 = vld [vmem:[#allocation2 + $0x38] sm:$0xff]   ;;  %v111_v33 = vld [vmem:[%s8787_s0 + $0x8] sm:$0xff]  ;;  %v6224_v34 = vcombine.low %v110_v32, %v110_v32  ;;  %v6225_v35 = vcombine.high %v110_v32, %v110_v32 }
  0x7a   :  { %6959 = vmatpush3.bf16.msra.mxu0 %v7265_v10  ;;  %v7282_v27 = vld [vmem:[#allocation2 + $0xb0] sm:$0xff]   ;;  %v7286_v31 = vld [vmem:[#allocation2 + $0xb8] sm:$0xff]   ;;  %v6226_v36 = vcombine.low %v111_v33, %v111_v33  ;;  %v6227_v37 = vcombine.high %v111_v33, %v111_v33  ;;  %v7291_v38 = vld [vmem:[#allocation2 + $0x140] sm:$0xff]  }
  0x7b   :  { %6981 = vmatpush3.bf16.msra.mxu1 %v7266_v11  ;;  %6960 = vmatprep.subr.bf16.mxu0 %v7267_v12  ;;  %v7292_v39 = vld [vmem:[#allocation2 + $0x100] sm:$0xff]   ;;  %v7294_v42 = vld [vmem:[#allocation2 + $0x148] sm:$0xff]   ;;  %v7297_v45 = vld [vmem:[#allocation2 + $0x150] sm:$0xff]  }
  0x7c   :  { %6982 = vmatprep.subr.bf16.mxu1 %v7268_v13  ;;  %619 = vmatprep.mubr.bf16.mxu0 %v6225_v35  ;;  %v7293_v41 = vld [vmem:[#allocation2 + $0x180] sm:$0xff]   ;;  %v7295_v43 = vld [vmem:[#allocation2 + $0x108] sm:$0xff]   ;;  %v7299_v46 = vld [vmem:[#allocation2 + $0x190] sm:$0xff]  }
  0x7d   :  { %659 = vmatprep.mubr.bf16.mxu1 %v6227_v37  ;;  %v7296_v44 = vld [vmem:[#allocation2 + $0x188] sm:$0xff]   ;;  %v7298_v47 = vld [vmem:[#allocation2 + $0x110] sm:$0xff]   ;;  %v7300_v48 = vld [vmem:[#allocation2 + $0x158] sm:$0xff]  }
  0x7e   :  { %6961 = vmatpush3.bf16.msra.mxu0 %v7269_v14  ;;  %v7302_v49 = vld [vmem:[#allocation2 + $0x198] sm:$0xff]   ;;  %v7303_v51 = vld [vmem:[#allocation2 + $0x160] sm:$0xff]   ;;  %v7306_v54 = vld [vmem:[#allocation2 + $0x168] sm:$0xff]  }
  0x7f   :  { %6983 = vmatpush3.bf16.msra.mxu1 %v7270_v15  ;;  %6962 = vmatprep.subr.bf16.mxu0 %v7271_v16  ;;  %v7301_v50 = vld [vmem:[#allocation2 + $0x118] sm:$0xff]   ;;  %v7305_v52 = vld [vmem:[#allocation2 + $0x1a0] sm:$0xff]   ;;  %v7308_v55 = vld [vmem:[#allocation2 + $0x1a8] sm:$0xff]  }
  0x80   :  { %6984 = vmatprep.subr.bf16.mxu1 %v7272_v17  ;;  %v7304_v53 = vld [vmem:[#allocation2 + $0x120] sm:$0xff]   ;;  %v7307_v56 = vld [vmem:[#allocation2 + $0x128] sm:$0xff]   ;;  %v7309_v57 = vld [vmem:[#allocation2 + $0x170] sm:$0xff]  }
  0x81   :  { %v112_v58 = vld [vmem:[%s8787_s0 + $0x10] sm:$0xff]  ;;  %v7312_v62 = vld [vmem:[#allocation2 + $0x178] sm:$0xff]   ;;  %v7318_v3 = vld [vmem:[#allocation4] ss:$36 sps:$4 sm:$0xff]  }
  0x82   :  { %6963 = vmatpush3.bf16.msra.mxu0 %v7273_v18  ;;  %v7310_v59 = vld [vmem:[#allocation2 + $0x130] sm:$0xff]   ;;  %v6229_v61 = vcombine.high %v112_v58, %v112_v58  ;;  %v7316_v63 = vld [vmem:[#allocation2 + $0x1b8] sm:$0xff]   ;;  %v6228_v2 = vcombine.low %v112_v58, %v112_v58  ;;  %v7320_v4 = vld [vmem:[#allocation4 + $0x4] ss:$36 sps:$4 sm:$0xff]  }
  0x83   :  { %6985 = vmatpush3.bf16.msra.mxu1 %v7274_v19  ;;  %6964 = vmatprep.subr.bf16.mxu0 %v7275_v20  ;;  %v7311_v60 = vld [vmem:[#allocation2 + $0x1b0] sm:$0xff]   ;;  %v7313_v0 = vld [vmem:[#allocation2 + $0x138] sm:$0xff]   ;;  %v7321_v5 = vld [vmem:[#allocation4 + $0x8] ss:$36 sps:$4 sm:$0xff]  }
  0x84   :  { %6986 = vmatprep.subr.bf16.mxu1 %v7276_v21  ;;  %v7317_v1 = vld [vmem:[%s8787_s0 + $0x18] ss:$0 sps:$4 sm:$0xff]   ;;  %v7323_v6 = vld [vmem:[#allocation4 + $0xc] ss:$36 sps:$4 sm:$0xff]   ;;  %v7335_v12 = vld [vmem:[#allocation4 + $0x9c] ss:$36 sps:$4 sm:$0xff]  }
  0x85   :  { %v7326_v7 = vld [vmem:[#allocation4 + $0x4c] ss:$36 sps:$4 sm:$0xff]   ;;  %v7329_v9 = vld [vmem:[#allocation4 + $0x54] ss:$36 sps:$4 sm:$0xff]   ;;  %v7338_v15 = vld [vmem:[#allocation4 + $0xdc] ss:$36 sps:$4 sm:$0xff]  }
  0x86   :  { %6965 = vmatpush3.bf16.msra.mxu0 %v7277_v22  ;;  %v7324_v8 = vld [vmem:[#allocation4 + $0x48] ss:$36 sps:$4 sm:$0xff]   ;;  %v7327_v10 = vld [vmem:[#allocation4 + $0x50] ss:$36 sps:$4 sm:$0xff]   ;;  %v7333_v14 = vld [vmem:[#allocation4 + $0x98] ss:$36 sps:$4 sm:$0xff]  }
  0x87   :  { %6987 = vmatpush3.bf16.msra.mxu1 %v7278_v23  ;;  %6966 = vmatprep.subr.bf16.mxu0 %v7279_v24  ;;  %v7332_v11 = vld [vmem:[#allocation4 + $0x94] ss:$36 sps:$4 sm:$0xff]   ;;  %v7341_v16 = vld [vmem:[#allocation4 + $0xe4] ss:$36 sps:$4 sm:$0xff]   ;;  %v7347_v20 = vld [vmem:[#allocation4 + $0x12c] ss:$36 sps:$4 sm:$0xff]  }
  0x88   :  { %6988 = vmatprep.subr.bf16.mxu1 %v7280_v25  ;;  %v7330_v13 = vld [vmem:[#allocation4 + $0x90] ss:$36 sps:$4 sm:$0xff]   ;;  %v7336_v17 = vld [vmem:[#allocation4 + $0xd8] ss:$36 sps:$4 sm:$0xff]   ;;  %v7339_v18 = vld [vmem:[#allocation4 + $0xe0] ss:$36 sps:$4 sm:$0xff]  }
  0x89   :  { %v7344_v19 = vld [vmem:[#allocation4 + $0x124] ss:$36 sps:$4 sm:$0xff]   ;;  %v7350_v23 = vld [vmem:[#allocation4 + $0x16c] ss:$36 sps:$4 sm:$0xff]   ;;  %v7353_v24 = vld [vmem:[#allocation4 + $0x174] ss:$36 sps:$4 sm:$0xff]  }
  0x8a   :  { %6967 = vmatpush3.bf16.msra.mxu0 %v7281_v26  ;;  %v7342_v21 = vld [vmem:[#allocation4 + $0x120] ss:$36 sps:$4 sm:$0xff]   ;;  %v7345_v22 = vld [vmem:[#allocation4 + $0x128] ss:$36 sps:$4 sm:$0xff]   ;;  %v7351_v26 = vld [vmem:[#allocation4 + $0x170] ss:$36 sps:$4 sm:$0xff]  }
  0x8b   :  { %6989 = vmatpush3.bf16.msra.mxu1 %v7282_v27  ;;  %6968 = vmatprep.subr.bf16.mxu0 %v7283_v28  ;;  %v7348_v25 = vld [vmem:[#allocation4 + $0x168] ss:$36 sps:$4 sm:$0xff]   ;;  %v7356_v27 = vld [vmem:[#allocation4 + $0x1b4] ss:$36 sps:$4 sm:$0xff]   ;;  %v7359_v28 = vld [vmem:[#allocation4 + $0x1bc] ss:$36 sps:$4 sm:$0xff]  }
  0x8c   :  { %6990 = vmatprep.subr.bf16.mxu1 %v7284_v29  ;;  %v7354_v29 = vld [vmem:[#allocation4 + $0x1b0] ss:$36 sps:$4 sm:$0xff]   ;;  %v7365_v32 = vld [vmem:[#allocation4 + $0x204] ss:$36 sps:$4 sm:$0xff]   ;;  %v7360_v33 = vld [vmem:[#allocation4 + $0x1f8] ss:$36 sps:$4 sm:$0xff]  }
  0x8d   :  { %v7368_v35 = vld [vmem:[#allocation4 + $0x14] ss:$36 sps:$4 sm:$0xff]   ;;  %v7371_v37 = vld [vmem:[#allocation4 + $0x1c] ss:$36 sps:$4 sm:$0xff]  }
  0x8e   :  { %6969 = vmatpush3.bf16.msra.mxu0 %v7285_v30  ;;  %v7357_v30 = vld [vmem:[#allocation4 + $0x1b8] ss:$36 sps:$4 sm:$0xff]  }
  0x8f   :  { %6991 = vmatpush3.bf16.msra.mxu1 %v7286_v31  ;;  %6998 = vmatprep.subr.bf16.mxu0 %v7291_v38  ;;  %v7362_v31 = vld [vmem:[#allocation4 + $0x1fc] ss:$36 sps:$4 sm:$0xff]  }
  0x90   :  { %7126 = vmatprep.subr.bf16.mxu1 %v8438_v40 }
  0x91   :  { %620 = vmatmul.mubr.bf16.vlgmr.msra.gmra.mrb[0].mxu0 %v6224_v34  ;;  %v7363_v34 = vld [vmem:[#allocation4 + $0x200] ss:$36 sps:$4 sm:$0xff]  }
  0x92   :  { %660 = vmatmul.mubr.bf16.vlgmr.msra.gmra.mrb[0].mxu1 %v6226_v36  ;;  %6999 = vmatpush3.bf16.msra.mxu0 %v7292_v39  ;;  %v8440_v36 = vmov 0  }
  0x93   :  { %7127 = vmatpush3.bf16.msra.mxu1 %v7293_v41  ;;  %7000 = vmatprep.subr.bf16.mxu0 %v7294_v42 }
  0x94   :  { %7128 = vmatprep.subr.bf16.mxu1 %v8438_v40  ;;  %7142 = vmatprep.mubr.msk.bf16.mxu1 %vm8439_vm0, %v8438_v40 }
  0x95   :  { %699 = vmatprep.mubr.bf16.mxu0 %v6229_v61  ;;  %7251 = vset.pattern.permute.xlu1 %v8440_v36  ;;  %v748_v61 = vld [vmem:[%s8788_s1] sm:$0xf]  ;;  %s8444_s1 = smov 6  }
  0x96   :  { %7001 = vmatpush3.bf16.msra.mxu0 %v7295_v43 }
  0x97   :  { %7129 = vmatpush3.bf16.msra.mxu1 %v7296_v44  ;;  %7002 = vmatprep.subr.bf16.mxu0 %v7297_v45 }
  0x98   :  { %7130 = vmatprep.subr.bf16.mxu1 %v8438_v40 }
  0x9a   :  { %7003 = vmatpush3.bf16.msra.mxu0 %v7298_v47 }
  0x9b   :  { %7131 = vmatpush3.bf16.msra.mxu1 %v7299_v46  ;;  %7004 = vmatprep.subr.bf16.mxu0 %v7300_v48 }
  0x9c   :  { %7132 = vmatprep.subr.bf16.mxu1 %v8438_v40 }
  0x9e   :  { %7005 = vmatpush3.bf16.msra.mxu0 %v7301_v50 }
  0x9f   :  { %7133 = vmatpush3.bf16.msra.mxu1 %v7302_v49  ;;  %7006 = vmatprep.subr.bf16.mxu0 %v7303_v51 }
  0xa0   :  { %7134 = vmatprep.subr.bf16.mxu1 %v8438_v40 }
  0xa2   :  { %7007 = vmatpush3.bf16.msra.mxu0 %v7304_v53 }
  0xa3   :  { %7135 = vmatpush3.bf16.msra.mxu1 %v7305_v52  ;;  %7008 = vmatprep.subr.bf16.mxu0 %v7306_v54 }
  0xa4   :  { %7136 = vmatprep.subr.bf16.mxu1 %v8438_v40 }
  0xa6   :  { %7009 = vmatpush3.bf16.msra.mxu0 %v7307_v56 }
  0xa7   :  { %7137 = vmatpush3.bf16.msra.mxu1 %v7308_v55  ;;  %7010 = vmatprep.subr.bf16.mxu0 %v7309_v57 }
  0xa8   :  { %7138 = vmatprep.subr.bf16.mxu1 %v8438_v40 }
  0xaa   :  { %7011 = vmatpush3.bf16.msra.mxu0 %v7310_v59 }
  0xab   :  { %7139 = vmatpush3.bf16.msra.mxu1 %v7311_v60  ;;  %7012 = vmatprep.subr.bf16.mxu0 %v7312_v62  ;;  %v749_v62 = vunpack.c.l.bf16 %v748_v61  ;;  %v7433_v61 = vld [vmem:[#allocation6 + $0x3c] ss:$24 sps:$4 sm:$0xff]  }
  0xac   :  { %7140 = vmatprep.subr.bf16.mxu1 %v8438_v40 }
  0xae   :  { %7013 = vmatpush3.bf16.msra.mxu0 %v7313_v0  ;;  %v7366_v0 = vld [vmem:[#allocation4 + $0x10] ss:$36 sps:$4 sm:$0xff]  }
  0xaf   :  { %7141 = vmatpush3.bf16.msra.mxu1 %v7316_v63  ;;  %1249 = vmatprep.subr.bf16.mxu0 %v7320_v4  ;;  %v7377_v4 = vld [vmem:[#allocation4 + $0x64] ss:$36 sps:$4 sm:$0xff]  }
  0xb0   :  { %1290 = vmatprep.subr.bf16.mxu1 %v7323_v6  ;;  %v7372_v6 = vld [vmem:[#allocation4 + $0x58] ss:$36 sps:$4 sm:$0xff]  }
  0xb1   :  { %700 = vmatmul.mubr.bf16.vlgmr.msra.gmra.mrb[4].mxu0 %v6228_v2 }
  0xb2   :  { %7143 = vmatmul.mubr.bf16.vlgmr.msra.gmra.mrb[4].mxu1 %v7317_v1  ;;  %1250 = vmatpush1.bf16.msra.mxu0 %v7318_v3  ;;  %v7369_v1 = vld [vmem:[#allocation4 + $0x18] ss:$36 sps:$4 sm:$0xff]  }
  0xb3   :  { %1291 = vmatpush1.bf16.msra.mxu1 %v7321_v5  ;;  %1251 = vmatprep.subr.bf16.mxu0 %v7326_v7  ;;  %v7374_v3 = vld [vmem:[#allocation4 + $0x5c] ss:$36 sps:$4 sm:$0xff]  }
  0xb4   :  { %1292 = vmatprep.subr.bf16.mxu1 %v7329_v9  ;;  %1281 = vmatprep.mubr.bf16.mxu0 %v8440_v36  ;;  %v7375_v7 = vld [vmem:[#allocation4 + $0x60] ss:$36 sps:$4 sm:$0xff]   ;;  %v7383_v9 = vld [vmem:[#allocation4 + $0xac] ss:$36 sps:$4 sm:$0xff]  }
  0xb5   :  { %1322 = vmatprep.mubr.bf16.mxu1 %v8440_v36 }
  0xb6   :  { %1252 = vmatpush1.bf16.msra.mxu0 %v7324_v8  ;;  %v7380_v8 = vld [vmem:[#allocation4 + $0xa4] ss:$36 sps:$4 sm:$0xff]  }
  0xb7   :  { %1293 = vmatpush1.bf16.msra.mxu1 %v7327_v10  ;;  %1253 = vmatprep.subr.bf16.mxu0 %v7332_v11  ;;  %v7378_v10 = vld [vmem:[#allocation4 + $0xa0] ss:$36 sps:$4 sm:$0xff]   ;;  %v7381_v11 = vld [vmem:[#allocation4 + $0xa8] ss:$36 sps:$4 sm:$0xff]  }
  0xb8   :  { %1294 = vmatprep.subr.bf16.mxu1 %v7335_v12  ;;  %v7386_v12 = vld [vmem:[#allocation4 + $0xec] ss:$36 sps:$4 sm:$0xff]  }
  0xba   :  { %1254 = vmatpush1.bf16.msra.mxu0 %v7330_v13  ;;  %v7389_v13 = vld [vmem:[#allocation4 + $0xf4] ss:$36 sps:$4 sm:$0xff]  }
  0xbb   :  { %1295 = vmatpush1.bf16.msra.mxu1 %v7333_v14  ;;  %1255 = vmatprep.subr.bf16.mxu0 %v7338_v15  ;;  %v7384_v14 = vld [vmem:[#allocation4 + $0xe8] ss:$36 sps:$4 sm:$0xff]   ;;  %v7387_v15 = vld [vmem:[#allocation4 + $0xf0] ss:$36 sps:$4 sm:$0xff]  }
  0xbc   :  { %1296 = vmatprep.subr.bf16.mxu1 %v7341_v16  ;;  %v7392_v16 = vld [vmem:[#allocation4 + $0x134] ss:$36 sps:$4 sm:$0xff]  }
  0xbe   :  { %1256 = vmatpush1.bf16.msra.mxu0 %v7336_v17  ;;  %v7395_v17 = vld [vmem:[#allocation4 + $0x13c] ss:$36 sps:$4 sm:$0xff]  }
  0xbf   :  { %1297 = vmatpush1.bf16.msra.mxu1 %v7339_v18  ;;  %1257 = vmatprep.subr.bf16.mxu0 %v7344_v19  ;;  %v7390_v18 = vld [vmem:[#allocation4 + $0x130] ss:$36 sps:$4 sm:$0xff]   ;;  %v7393_v19 = vld [vmem:[#allocation4 + $0x138] ss:$36 sps:$4 sm:$0xff]  }
  0xc0   :  { %1298 = vmatprep.subr.bf16.mxu1 %v7347_v20  ;;  %v7398_v20 = vld [vmem:[#allocation4 + $0x17c] ss:$36 sps:$4 sm:$0xff]  }
  0xc2   :  { %1258 = vmatpush1.bf16.msra.mxu0 %v7342_v21  ;;  %v7401_v21 = vld [vmem:[#allocation4 + $0x184] ss:$36 sps:$4 sm:$0xff]  }
  0xc3   :  { %1299 = vmatpush1.bf16.msra.mxu1 %v7345_v22  ;;  %1259 = vmatprep.subr.bf16.mxu0 %v7350_v23  ;;  %v7396_v22 = vld [vmem:[#allocation4 + $0x178] ss:$36 sps:$4 sm:$0xff]   ;;  %v7399_v23 = vld [vmem:[#allocation4 + $0x180] ss:$36 sps:$4 sm:$0xff]  }
  0xc4   :  { %1300 = vmatprep.subr.bf16.mxu1 %v7353_v24  ;;  %v7404_v24 = vld [vmem:[#allocation4 + $0x1c4] ss:$36 sps:$4 sm:$0xff]  }
  0xc6   :  { %1260 = vmatpush1.bf16.msra.mxu0 %v7348_v25  ;;  %v7407_v25 = vld [vmem:[#allocation4 + $0x1cc] ss:$36 sps:$4 sm:$0xff]  }
  0xc7   :  { %1301 = vmatpush1.bf16.msra.mxu1 %v7351_v26  ;;  %1261 = vmatprep.subr.bf16.mxu0 %v7356_v27  ;;  %v7402_v26 = vld [vmem:[#allocation4 + $0x1c0] ss:$36 sps:$4 sm:$0xff]   ;;  %v7405_v27 = vld [vmem:[#allocation4 + $0x1c8] ss:$36 sps:$4 sm:$0xff]  }
  0xc8   :  { %1302 = vmatprep.subr.bf16.mxu1 %v7359_v28  ;;  %v7410_v28 = vld [vmem:[#allocation4 + $0x20c] ss:$36 sps:$4 sm:$0xff]  }
  0xca   :  { %1262 = vmatpush1.bf16.msra.mxu0 %v7354_v29  ;;  %v7413_v29 = vld [vmem:[#allocation4 + $0x214] ss:$36 sps:$4 sm:$0xff]  }
  0xcb   :  { %1303 = vmatpush1.bf16.msra.mxu1 %v7357_v30  ;;  %1263 = vmatprep.subr.bf16.mxu0 %v7362_v31  ;;  %v7408_v30 = vld [vmem:[#allocation4 + $0x208] ss:$36 sps:$4 sm:$0xff]   ;;  %v7411_v31 = vld [vmem:[#allocation4 + $0x210] ss:$36 sps:$4 sm:$0xff]  }
  0xcc   :  { %1304 = vmatprep.subr.bf16.mxu1 %v7365_v32  ;;  %v7424_v32 = vld [vmem:[#allocation6 + $0x4] ss:$24 sps:$4 sm:$0xff]  }
  0xce   :  { %1264 = vmatpush1.bf16.msra.mxu0 %v7360_v33  ;;  %v7414_v33 = vld [vmem:[#allocation4 + $0x20] ss:$36 sps:$4 sm:$0xff]  }
  0xcf   :  { %1305 = vmatpush1.bf16.msra.mxu1 %v7363_v34  ;;  %1331 = vmatprep.subr.bf16.mxu0 %v7368_v35  ;;  %v7422_v34 = vld [vmem:[#allocation6] ss:$24 sps:$4 sm:$0xff]   ;;  %v7430_v35 = vld [vmem:[#allocation6 + $0x34] ss:$24 sps:$4 sm:$0xff]  }
  0xd0   :  { %1372 = vmatprep.subr.bf16.mxu1 %v7371_v37  ;;  %v7415_v37 = vld [vmem:[#allocation4 + $0x68] ss:$36 sps:$4 sm:$0xff]  }
 0x164   :  { %v6970_v38 = vpop.f32.mrb[0].mxu0 }
 0x165   :  { %v6992_v39 = vpop.f32.mrb[0].mxu1  ;;  %v6971_v41 = vpop.f32.mrb[1].mxu0 }
 0x166   :  { %v6993_v42 = vpop.f32.mrb[1].mxu1  ;;  %v6972_v43 = vadd.f32 %v6971_v41, %v6970_v38  ;;  %v6973_v45 = vpop.f32.mrb[2].mxu0  ;;  %v7428_v38 = vld [vmem:[#allocation6 + $0x30] ss:$24 sps:$4 sm:$0xff]  }
 0x167   :  { %v6994_v44 = vadd.f32 %v6993_v42, %v6992_v39  ;;  %v6995_v46 = vpop.f32.mrb[2].mxu1  ;;  %v6974_v47 = vpop.f32.mrb[3].mxu0  ;;  %v7436_v39 = vld [vmem:[#allocation6 + $0x64] ss:$24 sps:$4 sm:$0xff]   ;;  %v7416_v41 = vld [vmem:[#allocation4 + $0xb0] ss:$36 sps:$4 sm:$0xff]  }
 0x168   :  { %v6996_v48 = vpop.f32.mrb[3].mxu1  ;;  %v7434_v42 = vld [vmem:[#allocation6 + $0x60] ss:$24 sps:$4 sm:$0xff]   ;;  %v7440_v45 = vld [vmem:[#allocation6 + $0x90] ss:$24 sps:$4 sm:$0xff]  }
 0x169   :  { %v662_v49 = vadd.f32 %v6994_v44, %v6972_v43  ;;  %v7442_v43 = vld [vmem:[#allocation6 + $0x94] ss:$24 sps:$4 sm:$0xff]   ;;  %v7417_v44 = vld [vmem:[#allocation4 + $0xf8] ss:$36 sps:$4 sm:$0xff]   ;;  %v7418_v47 = vld [vmem:[#allocation4 + $0x140] ss:$36 sps:$4 sm:$0xff]  }
 0x16a   :  { %v7448_v46 = vld [vmem:[#allocation6 + $0xc4] ss:$24 sps:$4 sm:$0xff]   ;;  %v7446_v48 = vld [vmem:[#allocation6 + $0xc0] ss:$24 sps:$4 sm:$0xff]  }
 0x184   :  { %v7014_v51 = vpop.f32.mrb[4].mxu0 }
 0x185   :  { %v741_v50 = vpop.f32.mrb[4].mxu1  ;;  %v7015_v53 = vpop.f32.mrb[5].mxu0 }
 0x186   :  { %v7144_v52 = vpop.f32.mrb[5].mxu1  ;;  %v7016_v55 = vadd.f32 %v7015_v53, %v7014_v51  ;;  %v7017_v56 = vpop.f32.mrb[6].mxu0  ;;  %v7452_v51 = vld [vmem:[#allocation6 + $0xf0] ss:$24 sps:$4 sm:$0xff]  }
 0x187   :  { %v744_v54 = vpop.f32.mrb[6].mxu1  ;;  %v7018_v58 = vpop.f32.mrb[7].mxu0  ;;  %v7460_v52 = vld [vmem:[#allocation6 + $0x124] ss:$24 sps:$4 sm:$0xff]   ;;  %v7420_v53 = vld [vmem:[#allocation4 + $0x1d0] ss:$36 sps:$4 sm:$0xff]  }
 0x188   :  { %v7145_v57 = vpop.f32.mrb[7].mxu1  ;;  %v702_v59 = vadd.f32 %v7016_v55, %v662_v49  ;;  %v7454_v49 = vld [vmem:[#allocation6 + $0xf4] ss:$24 sps:$4 sm:$0xff]   ;;  %v7458_v54 = vld [vmem:[#allocation6 + $0x120] ss:$24 sps:$4 sm:$0xff]  }
 0x189   :  { %v7466_v55 = vld [vmem:[#allocation6 + $0x154] ss:$24 sps:$4 sm:$0xff]   ;;  %v7421_v56 = vld [vmem:[#allocation4 + $0x218] ss:$36 sps:$4 sm:$0xff]   ;;  %v7464_v58 = vld [vmem:[#allocation6 + $0x150] ss:$24 sps:$4 sm:$0xff]  }
 0x18a   :  { %v742_v60 = vadd.f32 %v741_v50, %v702_v59  ;;  %v7419_v50 = vld [vmem:[#allocation4 + $0x188] ss:$36 sps:$4 sm:$0xff]   ;;  %v7472_v59 = vld [vmem:[#allocation6 + $0x184] ss:$24 sps:$4 sm:$0xff]  }
 0x18b   :  { %v7427_v57 = vld [vmem:[#allocation6 + $0xc] ss:$24 sps:$4 sm:$0xff]  }
 0x18c   :  { %8278 = vtanh.f32 %v742_v60  ;;  %v7425_v60 = vld [vmem:[#allocation6 + $0x8] ss:$24 sps:$4 sm:$0xff]  }
 0x196   :  { %v8279_v63 = vpop.eup %8278 }
 0x197   :  { %v750_v2 = vadd.f32 %v8279_v63, %v749_v62  ;;  %v7470_v62 = vld [vmem:[#allocation6 + $0x180] ss:$24 sps:$4 sm:$0xff]   ;;  %v7478_v63 = vld [vmem:[#allocation6 + $0x1b4] ss:$24 sps:$4 sm:$0xff]  }
 0x199   :  { %v8596_v5 = vpack.c.bf16 %v750_v2, %v750_v2  ;;  %v7484_v2 = vld [vmem:[#allocation6 + $0x1e4] ss:$24 sps:$4 sm:$0xff]  }
 0x19b   :  { %1282 = vmatmul.mubr.bf16.vlgmr.msra.gmra.mrb[8].mxu0 %v8596_v5  ;;  %1323 = vmatmul.mubr.bf16.vlgmr.msra.gmra.mrb[8].mxu1 %v8596_v5 }
 0x19c   :  { %1332 = vmatpush1.bf16.msra.mxu0 %v7366_v0  ;;  %1373 = vmatpush1.bf16.msra.mxu1 %v7369_v1  ;;  %v7431_v0 = vld [vmem:[#allocation6 + $0x38] ss:$24 sps:$4 sm:$0xff]   ;;  %v7439_v1 = vld [vmem:[#allocation6 + $0x6c] ss:$24 sps:$4 sm:$0xff]  }
 0x19d   :  { %1333 = vmatprep.subr.bf16.mxu0 %v7374_v3  ;;  %1374 = vmatprep.subr.bf16.mxu1 %v7377_v4  ;;  %v7437_v3 = vld [vmem:[#allocation6 + $0x68] ss:$24 sps:$4 sm:$0xff]   ;;  %v7445_v4 = vld [vmem:[#allocation6 + $0x9c] ss:$24 sps:$4 sm:$0xff]  }
 0x19e   :  { %1363 = vmatprep.mubr.bf16.mxu0 %v8440_v36  ;;  %1404 = vmatprep.mubr.bf16.mxu1 %v8440_v36 }
 0x1a0   :  { %1334 = vmatpush1.bf16.msra.mxu0 %v7372_v6  ;;  %1375 = vmatpush1.bf16.msra.mxu1 %v7375_v7  ;;  %v7482_v6 = vld [vmem:[#allocation6 + $0x1e0] ss:$24 sps:$4 sm:$0xff]   ;;  %v7490_v7 = vld [vmem:[#allocation6 + $0x214] ss:$24 sps:$4 sm:$0xff]  }
 0x1a1   :  { %1335 = vmatprep.subr.bf16.mxu0 %v7380_v8  ;;  %1376 = vmatprep.subr.bf16.mxu1 %v7383_v9  ;;  %v7443_v8 = vld [vmem:[#allocation6 + $0x98] ss:$24 sps:$4 sm:$0xff]  }
 0x1a2   :  { %v7488_v9 = vld [vmem:[#allocation6 + $0x210] ss:$24 sps:$4 sm:$0xff]  }
 0x1a4   :  { %1336 = vmatpush1.bf16.msra.mxu0 %v7378_v10  ;;  %1377 = vmatpush1.bf16.msra.mxu1 %v7381_v11  ;;  %v7496_v10 = vld [vmem:[#allocation6 + $0x244] ss:$24 sps:$4 sm:$0xff]   ;;  %v7449_v11 = vld [vmem:[#allocation6 + $0xc8] ss:$24 sps:$4 sm:$0xff]  }
 0x1a5   :  { %1337 = vmatprep.subr.bf16.mxu0 %v7386_v12  ;;  %1378 = vmatprep.subr.bf16.mxu1 %v7389_v13  ;;  %v7457_v12 = vld [vmem:[#allocation6 + $0xfc] ss:$24 sps:$4 sm:$0xff]   ;;  %v7494_v13 = vld [vmem:[#allocation6 + $0x240] ss:$24 sps:$4 sm:$0xff]  }
 0x1a8   :  { %1338 = vmatpush1.bf16.msra.mxu0 %v7384_v14  ;;  %1379 = vmatpush1.bf16.msra.mxu1 %v7387_v15  ;;  %v7502_v14 = vld [vmem:[#allocation6 + $0x274] ss:$24 sps:$4 sm:$0xff]   ;;  %v7455_v15 = vld [vmem:[#allocation6 + $0xf8] ss:$24 sps:$4 sm:$0xff]  }
 0x1a9   :  { %1339 = vmatprep.subr.bf16.mxu0 %v7392_v16  ;;  %1380 = vmatprep.subr.bf16.mxu1 %v7395_v17  ;;  %v7463_v16 = vld [vmem:[#allocation6 + $0x12c] ss:$24 sps:$4 sm:$0xff]   ;;  %v7500_v17 = vld [vmem:[#allocation6 + $0x270] ss:$24 sps:$4 sm:$0xff]  }
 0x1ac   :  { %1340 = vmatpush1.bf16.msra.mxu0 %v7390_v18  ;;  %1381 = vmatpush1.bf16.msra.mxu1 %v7393_v19  ;;  %v7508_v18 = vld [vmem:[#allocation6 + $0x2a4] ss:$24 sps:$4 sm:$0xff]   ;;  %v7461_v19 = vld [vmem:[#allocation6 + $0x128] ss:$24 sps:$4 sm:$0xff]  }
 0x1ad   :  { %1341 = vmatprep.subr.bf16.mxu0 %v7398_v20  ;;  %1382 = vmatprep.subr.bf16.mxu1 %v7401_v21  ;;  %v7469_v20 = vld [vmem:[#allocation6 + $0x15c] ss:$24 sps:$4 sm:$0xff]   ;;  %v7506_v21 = vld [vmem:[#allocation6 + $0x2a0] ss:$24 sps:$4 sm:$0xff]  }
 0x1b0   :  { %1342 = vmatpush1.bf16.msra.mxu0 %v7396_v22  ;;  %1383 = vmatpush1.bf16.msra.mxu1 %v7399_v23  ;;  %v7514_v22 = vld [vmem:[#allocation6 + $0x2d4] ss:$24 sps:$4 sm:$0xff]   ;;  %v7467_v23 = vld [vmem:[#allocation6 + $0x158] ss:$24 sps:$4 sm:$0xff]  }
 0x1b1   :  { %1343 = vmatprep.subr.bf16.mxu0 %v7404_v24  ;;  %1384 = vmatprep.subr.bf16.mxu1 %v7407_v25  ;;  %v7475_v24 = vld [vmem:[#allocation6 + $0x18c] ss:$24 sps:$4 sm:$0xff]   ;;  %v7512_v25 = vld [vmem:[#allocation6 + $0x2d0] ss:$24 sps:$4 sm:$0xff]  }
 0x1b4   :  { %1344 = vmatpush1.bf16.msra.mxu0 %v7402_v26  ;;  %1385 = vmatpush1.bf16.msra.mxu1 %v7405_v27  ;;  %v7520_v26 = vld [vmem:[#allocation6 + $0x304] ss:$24 sps:$4 sm:$0xff]   ;;  %v7473_v27 = vld [vmem:[#allocation6 + $0x188] ss:$24 sps:$4 sm:$0xff]  }
 0x1b5   :  { %1345 = vmatprep.subr.bf16.mxu0 %v7410_v28  ;;  %1386 = vmatprep.subr.bf16.mxu1 %v7413_v29  ;;  %v7481_v28 = vld [vmem:[#allocation6 + $0x1bc] ss:$24 sps:$4 sm:$0xff]   ;;  %v7479_v29 = vld [vmem:[#allocation6 + $0x1b8] ss:$24 sps:$4 sm:$0xff]  }
 0x1b8   :  { %1346 = vmatpush1.bf16.msra.mxu0 %v7408_v30  ;;  %1387 = vmatpush1.bf16.msra.mxu1 %v7411_v31  ;;  %v7487_v30 = vld [vmem:[#allocation6 + $0x1ec] ss:$24 sps:$4 sm:$0xff]   ;;  %v7485_v31 = vld [vmem:[#allocation6 + $0x1e8] ss:$24 sps:$4 sm:$0xff]  }
 0x1b9   :  { %7146 = vmatprep.subr.bf16.mxu0 %v8438_v40  ;;  %4095 = vmatprep.subr.bf16.mxu1 %v7424_v32  ;;  %v7493_v32 = vld [vmem:[#allocation6 + $0x21c] ss:$24 sps:$4 sm:$0xff]  }
 0x1bb   :  { %1364 = vmatmul.mubr.bf16.vlgmr.msra.gmra.mrb[12].mxu0 %v8596_v5  ;;  %1405 = vmatmul.mubr.bf16.vlgmr.msra.gmra.mrb[12].mxu1 %v8596_v5 }
 0x1bc   :  { %7147 = vmatpush3.bf16.msra.mxu0 %v7414_v33  ;;  %7162 = vmatprep.mubr.msk.bf16.mxu0 %vm8439_vm0, %v8438_v40  ;;  %v7491_v33 = vld [vmem:[#allocation6 + $0x218] ss:$24 sps:$4 sm:$0xff]  }
 0x1bd   :  { %7148 = vmatprep.subr.bf16.mxu0 %v8438_v40  ;;  %4096 = vmatpush1.bf16.msra.mxu1 %v7422_v34  ;;  %v7499_v34 = vld [vmem:[#allocation6 + $0x24c] ss:$24 sps:$4 sm:$0xff]  }
 0x1be   :  { %4097 = vmatprep.subr.bf16.mxu1 %v7430_v35  ;;  %v7497_v35 = vld [vmem:[#allocation6 + $0x248] ss:$24 sps:$4 sm:$0xff]  }
 0x1c0   :  { %7149 = vmatpush3.bf16.msra.mxu0 %v7415_v37  ;;  %v7505_v37 = vld [vmem:[#allocation6 + $0x27c] ss:$24 sps:$4 sm:$0xff]  }
 0x1c1   :  { %7150 = vmatprep.subr.bf16.mxu0 %v8438_v40  ;;  %4098 = vmatpush1.bf16.msra.mxu1 %v7428_v38  ;;  %v7503_v38 = vld [vmem:[#allocation6 + $0x278] ss:$24 sps:$4 sm:$0xff]  }
 0x1c2   :  { %4099 = vmatprep.subr.bf16.mxu1 %v7436_v39  ;;  %v7511_v39 = vld [vmem:[#allocation6 + $0x2ac] ss:$24 sps:$4 sm:$0xff]  }
 0x1c4   :  { %7151 = vmatpush3.bf16.msra.mxu0 %v7416_v41  ;;  %v7509_v41 = vld [vmem:[#allocation6 + $0x2a8] ss:$24 sps:$4 sm:$0xff]  }
 0x1c5   :  { %7152 = vmatprep.subr.bf16.mxu0 %v8438_v40  ;;  %4100 = vmatpush1.bf16.msra.mxu1 %v7434_v42  ;;  %v7517_v42 = vld [vmem:[#allocation6 + $0x2dc] ss:$24 sps:$4 sm:$0xff]  }
 0x1c6   :  { %4101 = vmatprep.subr.bf16.mxu1 %v7442_v43  ;;  %v7515_v43 = vld [vmem:[#allocation6 + $0x2d8] ss:$24 sps:$4 sm:$0xff]  }
 0x1c8   :  { %7153 = vmatpush3.bf16.msra.mxu0 %v7417_v44  ;;  %v7523_v44 = vld [vmem:[#allocation6 + $0x30c] ss:$24 sps:$4 sm:$0xff]  }
 0x1c9   :  { %7154 = vmatprep.subr.bf16.mxu0 %v8438_v40  ;;  %4102 = vmatpush1.bf16.msra.mxu1 %v7440_v45  ;;  %v836_v45 = vlaneseq }
 0x1ca   :  { %4103 = vmatprep.subr.bf16.mxu1 %v7448_v46 }
 0x1cb   :  { %v8615_v46 = vshrl.u32 %v836_v45, 7 }
 0x1cc   :  { %7155 = vmatpush3.bf16.msra.mxu0 %v7418_v47 }
 0x1cd   :  { %7156 = vmatprep.subr.bf16.mxu0 %v8438_v40  ;;  %4104 = vmatpush1.bf16.msra.mxu1 %v7446_v48  ;;  %v8618_v47 = vsub.s32 0, %v8615_v46  ;;  %v8620_v48 = vld [vmem:[#allocation10] sm:$0xff] }
 0x1ce   :  { %4105 = vmatprep.subr.bf16.mxu1 %v7454_v49  ;;  %v8623_v49 = vsub.s32 1, %v8615_v46 }
 0x1d0   :  { %7157 = vmatpush3.bf16.msra.mxu0 %v7419_v50  ;;  %v850_v50 = vsub.s32 3, %v8615_v46 }
 0x1d1   :  { %7158 = vmatprep.subr.bf16.mxu0 %v8438_v40  ;;  %4106 = vmatpush1.bf16.msra.mxu1 %v7452_v51  ;;  %v839_v51 = vrot.slane %v8620_v48, %v8618_v47 }
 0x1d2   :  { %4107 = vmatprep.subr.bf16.mxu1 %v7460_v52  ;;  %v843_v52 = vrot.slane %v8620_v48, %v8623_v49 }
 0x1d4   :  { %7159 = vmatpush3.bf16.msra.mxu0 %v7420_v53  ;;  %v851_v53 = vrot.slane %v8620_v48, %v850_v50 }
 0x1d5   :  { %7160 = vmatprep.subr.bf16.mxu0 %v8438_v40  ;;  %4108 = vmatpush1.bf16.msra.mxu1 %v7458_v54  ;;  %v7476_v40 = vld [vmem:[#allocation6 + $0x1b0] ss:$24 sps:$4 sm:$0xff]  }
 0x1d6   :  { %4109 = vmatprep.subr.bf16.mxu1 %v7466_v55 }
 0x1d8   :  { %7161 = vmatpush3.bf16.msra.mxu0 %v7421_v56 }
 0x1d9   :  { %4300 = vmatprep.subr.bf16.mxu0 %v7427_v57  ;;  %4110 = vmatpush1.bf16.msra.mxu1 %v7464_v58 }
 0x1da   :  { %4111 = vmatprep.subr.bf16.mxu1 %v7472_v59 }
 0x1db   :  { %7163 = vmatmul.mubr.bf16.vlgmr.msra.gmra.mrb[16].mxu0 %v8596_v5  ;;  %v7451_v5 = vld [vmem:[#allocation6 + $0xcc] ss:$24 sps:$4 sm:$0xff]  }
 0x1dc   :  { %4301 = vmatpush1.bf16.msra.mxu0 %v7425_v60 }
 0x1dd   :  { %4302 = vmatprep.subr.bf16.mxu0 %v7433_v61  ;;  %4112 = vmatpush1.bf16.msra.mxu1 %v7470_v62 }
 0x1de   :  { %4113 = vmatprep.subr.bf16.mxu1 %v7478_v63 }
 0x1e0   :  { %4303 = vmatpush1.bf16.msra.mxu0 %v7431_v0 }
 0x1e1   :  { %4304 = vmatprep.subr.bf16.mxu0 %v7439_v1  ;;  %4114 = vmatpush1.bf16.msra.mxu1 %v7476_v40 }
 0x1e2   :  { %4115 = vmatprep.subr.bf16.mxu1 %v7484_v2 }
 0x1e4   :  { %4305 = vmatpush1.bf16.msra.mxu0 %v7437_v3 }
 0x1e5   :  { %4306 = vmatprep.subr.bf16.mxu0 %v7445_v4  ;;  %4116 = vmatpush1.bf16.msra.mxu1 %v7482_v6  ;;  %v7518_v4 = vld [vmem:[#allocation6 + $0x300] ss:$24 sps:$4 sm:$0xff]  }
 0x1e6   :  { %4117 = vmatprep.subr.bf16.mxu1 %v7490_v7  ;;  %v7521_v6 = vld [vmem:[#allocation6 + $0x308] ss:$24 sps:$4 sm:$0xff]  }
 0x1e8   :  { %4307 = vmatpush1.bf16.msra.mxu0 %v7443_v8  ;;  %v7526_v8 = vld [vmem:[#allocation6 + $0x334] ss:$24 sps:$4 sm:$0xff]  }
 0x1e9   :  { %4308 = vmatprep.subr.bf16.mxu0 %v7451_v5  ;;  %4118 = vmatpush1.bf16.msra.mxu1 %v7488_v9  ;;  %v7529_v5 = vld [vmem:[#allocation6 + $0x33c] ss:$24 sps:$4 sm:$0xff]  }
 0x1ea   :  { %4119 = vmatprep.subr.bf16.mxu1 %v7496_v10  ;;  %v7524_v10 = vld [vmem:[#allocation6 + $0x330] ss:$24 sps:$4 sm:$0xff]  }
 0x1ec   :  { %4309 = vmatpush1.bf16.msra.mxu0 %v7449_v11  ;;  %v7527_v11 = vld [vmem:[#allocation6 + $0x338] ss:$24 sps:$4 sm:$0xff]  }
 0x1ed   :  { %4310 = vmatprep.subr.bf16.mxu0 %v7457_v12  ;;  %4120 = vmatpush1.bf16.msra.mxu1 %v7494_v13  ;;  %v7532_v12 = vld [vmem:[#allocation6 + $0x364] ss:$24 sps:$4 sm:$0xff]  }
 0x1ee   :  { %4121 = vmatprep.subr.bf16.mxu1 %v7502_v14  ;;  %v7535_v13 = vld [vmem:[#allocation6 + $0x36c] ss:$24 sps:$4 sm:$0xff]   ;;  %v7530_v14 = vld [vmem:[#allocation6 + $0x360] ss:$24 sps:$4 sm:$0xff]  }
 0x1f0   :  { %4311 = vmatpush1.bf16.msra.mxu0 %v7455_v15  ;;  %v7533_v15 = vld [vmem:[#allocation6 + $0x368] ss:$24 sps:$4 sm:$0xff]  }
 0x1f1   :  { %4312 = vmatprep.subr.bf16.mxu0 %v7463_v16  ;;  %4122 = vmatpush1.bf16.msra.mxu1 %v7500_v17  ;;  %v7538_v16 = vld [vmem:[#allocation6 + $0x394] ss:$24 sps:$4 sm:$0xff]  }
 0x1f2   :  { %4123 = vmatprep.subr.bf16.mxu1 %v7508_v18  ;;  %v7541_v17 = vld [vmem:[#allocation6 + $0x39c] ss:$24 sps:$4 sm:$0xff]   ;;  %v7536_v18 = vld [vmem:[#allocation6 + $0x390] ss:$24 sps:$4 sm:$0xff]  }
 0x1f4   :  { %4313 = vmatpush1.bf16.msra.mxu0 %v7461_v19  ;;  %v7539_v19 = vld [vmem:[#allocation6 + $0x398] ss:$24 sps:$4 sm:$0xff]  }
 0x1f5   :  { %4314 = vmatprep.subr.bf16.mxu0 %v7469_v20  ;;  %4124 = vmatpush1.bf16.msra.mxu1 %v7506_v21  ;;  %v7544_v20 = vld [vmem:[#allocation6 + $0x3c4] ss:$24 sps:$4 sm:$0xff]  }
 0x1f6   :  { %4125 = vmatprep.subr.bf16.mxu1 %v7514_v22  ;;  %v7547_v21 = vld [vmem:[#allocation6 + $0x3cc] ss:$24 sps:$4 sm:$0xff]   ;;  %v7542_v22 = vld [vmem:[#allocation6 + $0x3c0] ss:$24 sps:$4 sm:$0xff]  }
 0x1f8   :  { %4315 = vmatpush1.bf16.msra.mxu0 %v7467_v23  ;;  %v7545_v23 = vld [vmem:[#allocation6 + $0x3c8] ss:$24 sps:$4 sm:$0xff]  }
 0x1f9   :  { %4316 = vmatprep.subr.bf16.mxu0 %v7475_v24  ;;  %4126 = vmatpush1.bf16.msra.mxu1 %v7512_v25  ;;  %v7550_v24 = vld [vmem:[#allocation6 + $0x3f4] ss:$24 sps:$4 sm:$0xff]  }
 0x1fa   :  { %4136 = vmatprep.subr.bf16.mxu1 %v7520_v26  ;;  %v7553_v25 = vld [vmem:[#allocation6 + $0x3fc] ss:$24 sps:$4 sm:$0xff]   ;;  %v7548_v26 = vld [vmem:[#allocation6 + $0x3f0] ss:$24 sps:$4 sm:$0xff]  }
 0x1fc   :  { %4317 = vmatpush1.bf16.msra.mxu0 %v7473_v27  ;;  %v7551_v27 = vld [vmem:[#allocation6 + $0x3f8] ss:$24 sps:$4 sm:$0xff]  }
 0x1fd   :  { %4318 = vmatprep.subr.bf16.mxu0 %v7481_v28  ;;  %v7556_v28 = vld [vmem:[#allocation6 + $0x424] ss:$24 sps:$4 sm:$0xff]  }
 0x200   :  { %4319 = vmatpush1.bf16.msra.mxu0 %v7479_v29  ;;  %v7559_v29 = vld [vmem:[#allocation6 + $0x42c] ss:$24 sps:$4 sm:$0xff]  }
 0x201   :  { %4320 = vmatprep.subr.bf16.mxu0 %v7487_v30  ;;  %v7554_v30 = vld [vmem:[#allocation6 + $0x420] ss:$24 sps:$4 sm:$0xff]  }
 0x204   :  { %4321 = vmatpush1.bf16.msra.mxu0 %v7485_v31  ;;  %v7557_v31 = vld [vmem:[#allocation6 + $0x428] ss:$24 sps:$4 sm:$0xff]  }
 0x205   :  { %4322 = vmatprep.subr.bf16.mxu0 %v7493_v32  ;;  %v7562_v32 = vld [vmem:[#allocation6 + $0x454] ss:$24 sps:$4 sm:$0xff]  }
 0x208   :  { %4323 = vmatpush1.bf16.msra.mxu0 %v7491_v33  ;;  %v7565_v33 = vld [vmem:[#allocation6 + $0x45c] ss:$24 sps:$4 sm:$0xff]  }
 0x209   :  { %4324 = vmatprep.subr.bf16.mxu0 %v7499_v34 }
 0x20c   :  { %4325 = vmatpush1.bf16.msra.mxu0 %v7497_v35 }
 0x20d   :  { %4326 = vmatprep.subr.bf16.mxu0 %v7505_v37 }
 0x210   :  { %4327 = vmatpush1.bf16.msra.mxu0 %v7503_v38 }
 0x211   :  { %4328 = vmatprep.subr.bf16.mxu0 %v7511_v39 }
 0x214   :  { %4329 = vmatpush1.bf16.msra.mxu0 %v7509_v41 }
 0x215   :  { %4330 = vmatprep.subr.bf16.mxu0 %v7517_v42  ;;  %v7560_v42 = vld [vmem:[#allocation6 + $0x450] ss:$24 sps:$4 sm:$0xff]  }
 0x218   :  { %4331 = vmatpush1.bf16.msra.mxu0 %v7515_v43  ;;  %v7563_v43 = vld [vmem:[#allocation6 + $0x458] ss:$24 sps:$4 sm:$0xff]  }
 0x219   :  { %4341 = vmatprep.subr.bf16.mxu0 %v7523_v44 }
 0x26e   :  { %v1283_v54 = vpop.f32.mrb[8].mxu0  ;;  %v8633_v55 = vpop.f32.mrb[8].mxu1 }
 0x26f   :  { %v1284_v56 = vadd.f32 %v1283_v54, %v839_v51  ;;  %v1285_v57 = vpop.f32.mrb[9].mxu0  ;;  %v1326_v58 = vpop.f32.mrb[9].mxu1  ;;  %v7568_v51 = vld [vmem:[#allocation6 + $0x484] ss:$24 sps:$4 sm:$0xff]   ;;  %v7569_v54 = vld [vmem:[#allocation6 + $0x488] ss:$24 sps:$4 sm:$0xff]  }
 0x270   :  { %v1286_v59 = vadd.f32 %v1285_v57, %v843_v52  ;;  %v1327_v60 = vadd.f32 %v1326_v58, %v851_v53  ;;  %v1287_v61 = vpop.f32.mrb[10].mxu0  ;;  %v1328_v62 = vpop.f32.mrb[10].mxu1  ;;  %v7571_v52 = vld [vmem:[#allocation6 + $0x48c] ss:$24 sps:$4 sm:$0xff]   ;;  %v7566_v53 = vld [vmem:[#allocation6 + $0x480] ss:$24 sps:$4 sm:$0xff]  }
 0x271   :  { %v1453_v63 = vmax.f32 %v1284_v56, 0.0  ;;  %v1288_v0 = vpop.f32.mrb[11].mxu0  ;;  %v1329_v1 = vpop.f32.mrb[11].mxu1  ;;  %v7574_v56 = vld [vmem:[#allocation6 + $0x4b4] ss:$24 sps:$4 sm:$0xff]  }
 0x272   :  { %v1454_v40 = vmax.f32 %v1286_v59, 0.0  ;;  %v1456_v2 = vmax.f32 %v1327_v60, 0.0  ;;  %v7577_v57 = vld [vmem:[#allocation6 + $0x4bc] ss:$24 sps:$4 sm:$0xff]   ;;  %v7572_v58 = vld [vmem:[#allocation6 + $0x4b0] ss:$24 sps:$4 sm:$0xff]  }
 0x273   :  { %v8637_v7 = vpack.c.bf16 %v1453_v63, %v1453_v63  ;;  %v7575_v59 = vld [vmem:[#allocation6 + $0x4b8] ss:$24 sps:$4 sm:$0xff]   ;;  %v7580_v60 = vld [vmem:[#allocation6 + $0x4e4] ss:$24 sps:$4 sm:$0xff]   ;;  %v7581_v63 = vld [vmem:[#allocation6 + $0x4e8] ss:$24 sps:$4 sm:$0xff]  }
 0x274   :  { %v8635_v3 = vpack.c.bf16 %v1454_v40, %v1454_v40  ;;  %v8641_v9 = vpack.c.bf16 %v1456_v2, %v1456_v2  ;;  %v7583_v61 = vld [vmem:[#allocation6 + $0x4ec] ss:$24 sps:$4 sm:$0xff]   ;;  %v7578_v62 = vld [vmem:[#allocation6 + $0x4e0] ss:$24 sps:$4 sm:$0xff]   ;;  %v7589_v1 = vld [vmem:[#allocation6 + $0x51c] ss:$24 sps:$4 sm:$0xff]  }
 0x275   :  { %v7586_v0 = vld [vmem:[#allocation6 + $0x514] ss:$24 sps:$4 sm:$0xff]   ;;  %v7584_v40 = vld [vmem:[#allocation6 + $0x510] ss:$24 sps:$4 sm:$0xff]  }
 0x276   :  { %4127 = vmatprep.mubr.bf16.mxu1 %v8635_v3  ;;  %4332 = vmatprep.mubr.bf16.mxu0 %v8635_v3  ;;  %v7587_v2 = vld [vmem:[#allocation6 + $0x518] ss:$24 sps:$4 sm:$0xff]  }
 0x277   :  { %4128 = vmatmul.mubr.bf16.vlgmr.msra.gmra.mrb[16].mxu1 %v8637_v7  ;;  %4333 = vmatmul.mubr.bf16.vlgmr.msra.gmra.mrb[20].mxu0 %v8637_v7 }
 0x278   :  { %4137 = vmatpush1.bf16.msra.mxu1 %v7518_v4  ;;  %4342 = vmatpush1.bf16.msra.mxu0 %v7521_v6  ;;  %v7592_v4 = vld [vmem:[#allocation6 + $0x544] ss:$24 sps:$4 sm:$0xff]  }
 0x279   :  { %4168 = vmatprep.mubr.bf16.mxu1 %v8641_v9  ;;  %4373 = vmatprep.mubr.bf16.mxu0 %v8641_v9  ;;  %v7595_v6 = vld [vmem:[#allocation6 + $0x54c] ss:$24 sps:$4 sm:$0xff]  }
 0x27a   :  { %4138 = vmatprep.subr.bf16.mxu1 %v7526_v8  ;;  %4343 = vmatprep.subr.bf16.mxu0 %v7529_v5  ;;  %v7590_v8 = vld [vmem:[#allocation6 + $0x540] ss:$24 sps:$4 sm:$0xff]  }
 0x27b   :  { %v7593_v5 = vld [vmem:[#allocation6 + $0x548] ss:$24 sps:$4 sm:$0xff]  }
 0x27c   :  { %4139 = vmatpush1.bf16.msra.mxu1 %v7524_v10  ;;  %4344 = vmatpush1.bf16.msra.mxu0 %v7527_v11  ;;  %v846_v10 = vsub.s32 2, %v8615_v46  ;;  %v7598_v11 = vld [vmem:[#allocation6 + $0x574] ss:$24 sps:$4 sm:$0xff]  }
 0x27d   :  { %4140 = vmatprep.subr.bf16.mxu1 %v7532_v12  ;;  %4345 = vmatprep.subr.bf16.mxu0 %v7535_v13  ;;  %v7601_v12 = vld [vmem:[#allocation6 + $0x57c] ss:$24 sps:$4 sm:$0xff]   ;;  %v858_v13 = vsub.s32 5, %v8615_v46 }
 0x280   :  { %4141 = vmatpush1.bf16.msra.mxu1 %v7530_v14  ;;  %4346 = vmatpush1.bf16.msra.mxu0 %v7533_v15  ;;  %v7596_v14 = vld [vmem:[#allocation6 + $0x570] ss:$24 sps:$4 sm:$0xff]  }
 0x281   :  { %4142 = vmatprep.subr.bf16.mxu1 %v7538_v16  ;;  %4347 = vmatprep.subr.bf16.mxu0 %v7541_v17  ;;  %v7599_v15 = vld [vmem:[#allocation6 + $0x578] ss:$24 sps:$4 sm:$0xff]   ;;  %v847_v16 = vrot.slane %v8620_v48, %v846_v10  ;;  %v7604_v17 = vld [vmem:[#allocation6 + $0x5a4] ss:$24 sps:$4 sm:$0xff]  }
 0x284   :  { %4143 = vmatpush1.bf16.msra.mxu1 %v7536_v18  ;;  %4348 = vmatpush1.bf16.msra.mxu0 %v7539_v19  ;;  %v7607_v18 = vld [vmem:[#allocation6 + $0x5ac] ss:$24 sps:$4 sm:$0xff]   ;;  %v859_v19 = vrot.slane %v8620_v48, %v858_v13 }
 0x285   :  { %4144 = vmatprep.subr.bf16.mxu1 %v7544_v20  ;;  %4349 = vmatprep.subr.bf16.mxu0 %v7547_v21  ;;  %v7602_v20 = vld [vmem:[#allocation6 + $0x5a0] ss:$24 sps:$4 sm:$0xff]  }
 0x286   :  { %v7605_v21 = vld [vmem:[#allocation6 + $0x5a8] ss:$24 sps:$4 sm:$0xff]  }
 0x288   :  { %4145 = vmatpush1.bf16.msra.mxu1 %v7542_v22  ;;  %4350 = vmatpush1.bf16.msra.mxu0 %v7545_v23  ;;  %v1325_v22 = vadd.f32 %v8633_v55, %v847_v16  ;;  %v7610_v23 = vld [vmem:[#allocation6 + $0x5d4] ss:$24 sps:$4 sm:$0xff]   ;;  %v7656_v16 = vld [vmem:[#allocation6 + $0x750] ss:$24 sps:$4 sm:$0xff]  }
 0x289   :  { %4146 = vmatprep.subr.bf16.mxu1 %v7550_v24  ;;  %4351 = vmatprep.subr.bf16.mxu0 %v7553_v25  ;;  %v7613_v24 = vld [vmem:[#allocation6 + $0x5dc] ss:$24 sps:$4 sm:$0xff]   ;;  %v7619_v55 = vld [vmem:[#allocation6 + $0x60c] ss:$24 sps:$4 sm:$0xff]  }
 0x28c   :  { %4147 = vmatpush1.bf16.msra.mxu1 %v7548_v26  ;;  %4352 = vmatpush1.bf16.msra.mxu0 %v7551_v27 }
 0x28d   :  { %4148 = vmatprep.subr.bf16.mxu1 %v7556_v28  ;;  %4353 = vmatprep.subr.bf16.mxu0 %v7559_v29  ;;  %v7608_v29 = vld [vmem:[#allocation6 + $0x5d0] ss:$24 sps:$4 sm:$0xff]  }
 0x28e   :  { %v8647_v34 = vpop.f32.mrb[12].mxu0  ;;  %v8649_v35 = vpop.f32.mrb[12].mxu1 }
 0x28f   :  { %v8651_v37 = vpop.f32.mrb[13].mxu0  ;;  %v8653_v38 = vpop.f32.mrb[13].mxu1 }
 0x290   :  { %v1369_v39 = vpop.f32.mrb[14].mxu0  ;;  %v1410_v41 = vpop.f32.mrb[14].mxu1  ;;  %4149 = vmatpush1.bf16.msra.mxu1 %v7554_v30  ;;  %4354 = vmatpush1.bf16.msra.mxu0 %v7557_v31  ;;  %v1368_v25 = vadd.f32 %v8651_v37, %v859_v19  ;;  %v7611_v30 = vld [vmem:[#allocation6 + $0x5d8] ss:$24 sps:$4 sm:$0xff]   ;;  %v1455_v31 = vmax.f32 %v1325_v22, 0.0 }
 0x291   :  { %v1370_v44 = vpop.f32.mrb[15].mxu0  ;;  %v1411_v45 = vpop.f32.mrb[15].mxu1  ;;  %4150 = vmatprep.subr.bf16.mxu1 %v7562_v32  ;;  %4355 = vmatprep.subr.bf16.mxu0 %v7565_v33  ;;  %v7616_v33 = vld [vmem:[#allocation6 + $0x604] ss:$24 sps:$4 sm:$0xff]   ;;  %v7614_v41 = vld [vmem:[#allocation6 + $0x600] ss:$24 sps:$4 sm:$0xff]  }
 0x292   :  { %v1458_v39 = vmax.f32 %v1368_v25, 0.0  ;;  %v7617_v37 = vld [vmem:[#allocation6 + $0x608] ss:$24 sps:$4 sm:$0xff]   ;;  %v7622_v44 = vld [vmem:[#allocation6 + $0x634] ss:$24 sps:$4 sm:$0xff]  }
 0x293   :  { %v7625_v45 = vld [vmem:[#allocation6 + $0x63c] ss:$24 sps:$4 sm:$0xff]   ;;  %v7667_v19 = vld [vmem:[#allocation6 + $0x78c] ss:$24 sps:$4 sm:$0xff]   ;;  %v7671_v25 = vld [vmem:[#allocation6 + $0x7b8] ss:$24 sps:$4 sm:$0xff]  }
 0x294   :  { %4151 = vmatpush1.bf16.msra.mxu1 %v7560_v42  ;;  %4356 = vmatpush1.bf16.msra.mxu0 %v7563_v43  ;;  %v8667_v42 = vpack.c.bf16 %v1455_v31, %v1455_v31  ;;  %v8669_v43 = vpack.c.bf16 %v1458_v39, %v1458_v39  ;;  %v7670_v22 = vld [vmem:[#allocation6 + $0x7b4] ss:$24 sps:$4 sm:$0xff]   ;;  %v7688_v39 = vld [vmem:[#allocation6 + $0x844] ss:$24 sps:$4 sm:$0xff]  }
 0x295   :  { %4152 = vmatprep.subr.bf16.mxu1 %v7568_v51  ;;  %4357 = vmatprep.subr.bf16.mxu0 %v7571_v52  ;;  %v7620_v51 = vld [vmem:[#allocation6 + $0x630] ss:$24 sps:$4 sm:$0xff]   ;;  %v7682_v31 = vld [vmem:[#allocation6 + $0x814] ss:$24 sps:$4 sm:$0xff]  }
 0x296   :  { %v7623_v52 = vld [vmem:[#allocation6 + $0x638] ss:$24 sps:$4 sm:$0xff]  }
 0x298   :  { %4153 = vmatpush1.bf16.msra.mxu1 %v7566_v53  ;;  %4358 = vmatpush1.bf16.msra.mxu0 %v7569_v54  ;;  %v7628_v53 = vld [vmem:[#allocation6 + $0x664] ss:$24 sps:$4 sm:$0xff]  }
 0x299   :  { %4154 = vmatprep.subr.bf16.mxu1 %v7574_v56  ;;  %4359 = vmatprep.subr.bf16.mxu0 %v7577_v57  ;;  %v7631_v54 = vld [vmem:[#allocation6 + $0x66c] ss:$24 sps:$4 sm:$0xff]   ;;  %v7626_v56 = vld [vmem:[#allocation6 + $0x660] ss:$24 sps:$4 sm:$0xff]  }
 0x29a   :  { %v7629_v57 = vld [vmem:[#allocation6 + $0x668] ss:$24 sps:$4 sm:$0xff]  }
 0x29c   :  { %4155 = vmatpush1.bf16.msra.mxu1 %v7572_v58  ;;  %4360 = vmatpush1.bf16.msra.mxu0 %v7575_v59  ;;  %v7634_v58 = vld [vmem:[#allocation6 + $0x694] ss:$24 sps:$4 sm:$0xff]  }
 0x29d   :  { %4156 = vmatprep.subr.bf16.mxu1 %v7580_v60  ;;  %4361 = vmatprep.subr.bf16.mxu0 %v7583_v61  ;;  %v7637_v59 = vld [vmem:[#allocation6 + $0x69c] ss:$24 sps:$4 sm:$0xff]   ;;  %v7632_v60 = vld [vmem:[#allocation6 + $0x690] ss:$24 sps:$4 sm:$0xff]  }
 0x29e   :  { %v7635_v61 = vld [vmem:[#allocation6 + $0x698] ss:$24 sps:$4 sm:$0xff]  }
 0x2a0   :  { %4157 = vmatpush1.bf16.msra.mxu1 %v7578_v62  ;;  %4362 = vmatpush1.bf16.msra.mxu0 %v7581_v63  ;;  %v7640_v62 = vld [vmem:[#allocation6 + $0x6c4] ss:$24 sps:$4 sm:$0xff]  }
 0x2a1   :  { %4158 = vmatprep.subr.bf16.mxu1 %v7586_v0  ;;  %4363 = vmatprep.subr.bf16.mxu0 %v7589_v1  ;;  %v7643_v63 = vld [vmem:[#allocation6 + $0x6cc] ss:$24 sps:$4 sm:$0xff]   ;;  %v7638_v0 = vld [vmem:[#allocation6 + $0x6c0] ss:$24 sps:$4 sm:$0xff]  }
 0x2a2   :  { %v7641_v1 = vld [vmem:[#allocation6 + $0x6c8] ss:$24 sps:$4 sm:$0xff]  }
 0x2a4   :  { %4159 = vmatpush1.bf16.msra.mxu1 %v7584_v40  ;;  %4364 = vmatpush1.bf16.msra.mxu0 %v7587_v2  ;;  %v7646_v40 = vld [vmem:[#allocation6 + $0x6f4] ss:$24 sps:$4 sm:$0xff]  }
 0x2a5   :  { %4160 = vmatprep.subr.bf16.mxu1 %v7592_v4  ;;  %4365 = vmatprep.subr.bf16.mxu0 %v7595_v6  ;;  %v7649_v2 = vld [vmem:[#allocation6 + $0x6fc] ss:$24 sps:$4 sm:$0xff]   ;;  %v7644_v4 = vld [vmem:[#allocation6 + $0x6f0] ss:$24 sps:$4 sm:$0xff]  }
 0x2a6   :  { %v7647_v6 = vld [vmem:[#allocation6 + $0x6f8] ss:$24 sps:$4 sm:$0xff]  }
 0x2a8   :  { %4161 = vmatpush1.bf16.msra.mxu1 %v7590_v8  ;;  %4366 = vmatpush1.bf16.msra.mxu0 %v7593_v5  ;;  %v7652_v8 = vld [vmem:[#allocation6 + $0x724] ss:$24 sps:$4 sm:$0xff]  }
 0x2a9   :  { %4162 = vmatprep.subr.bf16.mxu1 %v7598_v11  ;;  %4367 = vmatprep.subr.bf16.mxu0 %v7601_v12  ;;  %v7655_v5 = vld [vmem:[#allocation6 + $0x72c] ss:$24 sps:$4 sm:$0xff]   ;;  %v7650_v11 = vld [vmem:[#allocation6 + $0x720] ss:$24 sps:$4 sm:$0xff]  }
 0x2aa   :  { %v7653_v12 = vld [vmem:[#allocation6 + $0x728] ss:$24 sps:$4 sm:$0xff]  }
 0x2ac   :  { %4163 = vmatpush1.bf16.msra.mxu1 %v7596_v14  ;;  %4368 = vmatpush1.bf16.msra.mxu0 %v7599_v15  ;;  %v7658_v14 = vld [vmem:[#allocation6 + $0x754] ss:$24 sps:$4 sm:$0xff]  }
 0x2ad   :  { %4164 = vmatprep.subr.bf16.mxu1 %v7604_v17  ;;  %4369 = vmatprep.subr.bf16.mxu0 %v7607_v18  ;;  %v7661_v15 = vld [vmem:[#allocation6 + $0x75c] ss:$24 sps:$4 sm:$0xff]   ;;  %v7659_v17 = vld [vmem:[#allocation6 + $0x758] ss:$24 sps:$4 sm:$0xff]  }
 0x2ae   :  { %v8665_v26 = vpop.f32.mrb[16].mxu0  ;;  %v7664_v18 = vld [vmem:[#allocation6 + $0x784] ss:$24 sps:$4 sm:$0xff]  }
 0x2af   :  { %v7164_v27 = vpop.f32.mrb[17].mxu0 }
 0x2b0   :  { %v1450_v28 = vpop.f32.mrb[18].mxu0  ;;  %4165 = vmatpush1.bf16.msra.mxu1 %v7602_v20  ;;  %4370 = vmatpush1.bf16.msra.mxu0 %v7605_v21  ;;  %v7662_v20 = vld [vmem:[#allocation6 + $0x780] ss:$24 sps:$4 sm:$0xff]   ;;  %v7676_v27 = vld [vmem:[#allocation6 + $0x7e4] ss:$24 sps:$4 sm:$0xff]  }
 0x2b1   :  { %v7165_v32 = vpop.f32.mrb[19].mxu0  ;;  %4166 = vmatprep.subr.bf16.mxu1 %v7610_v23  ;;  %4371 = vmatprep.subr.bf16.mxu0 %v7613_v24  ;;  %v7665_v21 = vld [vmem:[#allocation6 + $0x788] ss:$24 sps:$4 sm:$0xff]   ;;  %v7673_v23 = vld [vmem:[#allocation6 + $0x7bc] ss:$24 sps:$4 sm:$0xff]  }
 0x2b2   :  { %v7668_v24 = vld [vmem:[#allocation6 + $0x7b0] ss:$24 sps:$4 sm:$0xff]   ;;  %v7679_v28 = vld [vmem:[#allocation6 + $0x7ec] ss:$24 sps:$4 sm:$0xff]   ;;  %v7685_v32 = vld [vmem:[#allocation6 + $0x81c] ss:$24 sps:$4 sm:$0xff]  }
 0x2b4   :  { %4167 = vmatpush1.bf16.msra.mxu1 %v7608_v29  ;;  %4372 = vmatpush1.bf16.msra.mxu0 %v7611_v30  ;;  %v7674_v29 = vld [vmem:[#allocation6 + $0x7e0] ss:$24 sps:$4 sm:$0xff]  }
 0x2b5   :  { %4177 = vmatprep.subr.bf16.mxu1 %v7616_v33  ;;  %4382 = vmatprep.subr.bf16.mxu0 %v7619_v55  ;;  %v7677_v30 = vld [vmem:[#allocation6 + $0x7e8] ss:$24 sps:$4 sm:$0xff]   ;;  %v7683_v55 = vld [vmem:[#allocation6 + $0x818] ss:$24 sps:$4 sm:$0xff]  }
 0x2b6   :  { %v7680_v33 = vld [vmem:[#allocation6 + $0x810] ss:$24 sps:$4 sm:$0xff]  }
 0x2b7   :  { %4169 = vmatmul.mubr.bf16.vlgmr.msra.gmra.mrb[16].mxu1 %v8667_v42  ;;  %4374 = vmatmul.mubr.bf16.vlgmr.msra.gmra.mrb[20].mxu0 %v8667_v42 }
 0x2b8   :  { %4178 = vmatpush1.bf16.msra.mxu1 %v7614_v41  ;;  %4209 = vmatprep.mubr.bf16.mxu1 %v8669_v43  ;;  %v7691_v41 = vld [vmem:[#allocation6 + $0x84c] ss:$24 sps:$4 sm:$0xff]  }
 0x2b9   :  { %4383 = vmatpush1.bf16.msra.mxu0 %v7617_v37  ;;  %4414 = vmatprep.mubr.bf16.mxu0 %v8669_v43  ;;  %v7686_v37 = vld [vmem:[#allocation6 + $0x840] ss:$24 sps:$4 sm:$0xff]  }
 0x2ba   :  { %4179 = vmatprep.subr.bf16.mxu1 %v7622_v44  ;;  %4384 = vmatprep.subr.bf16.mxu0 %v7625_v45  ;;  %v854_v44 = vsub.s32 4, %v8615_v46  ;;  %v7689_v45 = vld [vmem:[#allocation6 + $0x848] ss:$24 sps:$4 sm:$0xff]  }
 0x2bc   :  { %4180 = vmatpush1.bf16.msra.mxu1 %v7620_v51  ;;  %v7694_v51 = vld [vmem:[#allocation6 + $0x874] ss:$24 sps:$4 sm:$0xff]  }
 0x2bd   :  { %4385 = vmatpush1.bf16.msra.mxu0 %v7623_v52  ;;  %4181 = vmatprep.subr.bf16.mxu1 %v7628_v53  ;;  %v7697_v52 = vld [vmem:[#allocation6 + $0x87c] ss:$24 sps:$4 sm:$0xff]   ;;  %v866_v53 = vsub.s32 7, %v8615_v46 }
 0x2be   :  { %4386 = vmatprep.subr.bf16.mxu0 %v7631_v54  ;;  %v7692_v54 = vld [vmem:[#allocation6 + $0x870] ss:$24 sps:$4 sm:$0xff]  }
 0x2c0   :  { %4182 = vmatpush1.bf16.msra.mxu1 %v7626_v56  ;;  %v855_v56 = vrot.slane %v8620_v48, %v854_v44 }
 0x2c1   :  { %4387 = vmatpush1.bf16.msra.mxu0 %v7629_v57  ;;  %4183 = vmatprep.subr.bf16.mxu1 %v7634_v58  ;;  %v7695_v57 = vld [vmem:[#allocation6 + $0x878] ss:$24 sps:$4 sm:$0xff]   ;;  %v7700_v58 = vld [vmem:[#allocation6 + $0x8a4] ss:$24 sps:$4 sm:$0xff]  }
 0x2c2   :  { %4388 = vmatprep.subr.bf16.mxu0 %v7637_v59  ;;  %v7703_v59 = vld [vmem:[#allocation6 + $0x8ac] ss:$24 sps:$4 sm:$0xff]  }
 0x2c4   :  { %4184 = vmatpush1.bf16.msra.mxu1 %v7632_v60  ;;  %v867_v60 = vrot.slane %v8620_v48, %v866_v53  ;;  %v7757_v53 = vld [vmem:[#allocation6 + $0xa5c] ss:$24 sps:$4 sm:$0xff]  }
 0x2c5   :  { %4389 = vmatpush1.bf16.msra.mxu0 %v7635_v61  ;;  %4185 = vmatprep.subr.bf16.mxu1 %v7640_v62  ;;  %v7698_v61 = vld [vmem:[#allocation6 + $0x8a0] ss:$24 sps:$4 sm:$0xff]   ;;  %v1366_v62 = vadd.f32 %v8647_v34, %v855_v56 }
 0x2c6   :  { %4390 = vmatprep.subr.bf16.mxu0 %v7643_v63  ;;  %v7701_v63 = vld [vmem:[#allocation6 + $0x8a8] ss:$24 sps:$4 sm:$0xff]   ;;  %v7755_v56 = vld [vmem:[#allocation6 + $0xa58] ss:$24 sps:$4 sm:$0xff]  }
 0x2c7   :  { %v7710_v34 = vld [vmem:[#allocation6 + $0x900] ss:$24 sps:$4 sm:$0xff]  }
 0x2c8   :  { %4186 = vmatpush1.bf16.msra.mxu1 %v7638_v0  ;;  %v7706_v0 = vld [vmem:[#allocation6 + $0x8d4] ss:$24 sps:$4 sm:$0xff]  }
 0x2c9   :  { %4391 = vmatpush1.bf16.msra.mxu0 %v7641_v1  ;;  %4187 = vmatprep.subr.bf16.mxu1 %v7646_v40  ;;  %v7709_v1 = vld [vmem:[#allocation6 + $0x8dc] ss:$24 sps:$4 sm:$0xff]   ;;  %v1409_v40 = vadd.f32 %v8653_v38, %v867_v60  ;;  %v7761_v60 = vld [vmem:[#allocation6 + $0xa88] ss:$24 sps:$4 sm:$0xff]  }
 0x2ca   :  { %4392 = vmatprep.subr.bf16.mxu0 %v7649_v2  ;;  %v7704_v2 = vld [vmem:[#allocation6 + $0x8d0] ss:$24 sps:$4 sm:$0xff]  }
 0x2cc   :  { %4188 = vmatpush1.bf16.msra.mxu1 %v7644_v4  ;;  %v1457_v4 = vmax.f32 %v1366_v62, 0.0  ;;  %v7769_v62 = vld [vmem:[#allocation6 + $0xabc] ss:$24 sps:$4 sm:$0xff]  }
 0x2cd   :  { %4393 = vmatpush1.bf16.msra.mxu0 %v7647_v6  ;;  %4189 = vmatprep.subr.bf16.mxu1 %v7652_v8  ;;  %v7707_v6 = vld [vmem:[#allocation6 + $0x8d8] ss:$24 sps:$4 sm:$0xff]   ;;  %v7712_v8 = vld [vmem:[#allocation6 + $0x904] ss:$24 sps:$4 sm:$0xff]  }
 0x2ce   :  { %4394 = vmatprep.subr.bf16.mxu0 %v7655_v5  ;;  %v7715_v5 = vld [vmem:[#allocation6 + $0x90c] ss:$24 sps:$4 sm:$0xff]  }
 0x2d0   :  { %4190 = vmatpush1.bf16.msra.mxu1 %v7650_v11  ;;  %v1460_v11 = vmax.f32 %v1409_v40, 0.0  ;;  %v7775_v40 = vld [vmem:[#allocation6 + $0xaec] ss:$24 sps:$4 sm:$0xff]  }
 0x2d1   :  { %4395 = vmatpush1.bf16.msra.mxu0 %v7653_v12  ;;  %4191 = vmatprep.subr.bf16.mxu1 %v7658_v14  ;;  %v8683_v12 = vpack.c.bf16 %v1457_v4, %v1457_v4  ;;  %v7713_v14 = vld [vmem:[#allocation6 + $0x908] ss:$24 sps:$4 sm:$0xff]  }
 0x2d2   :  { %4396 = vmatprep.subr.bf16.mxu0 %v7661_v15  ;;  %v7718_v15 = vld [vmem:[#allocation6 + $0x934] ss:$24 sps:$4 sm:$0xff]   ;;  %v8685_v38 = vpack.c.bf16 %v1460_v11, %v1460_v11  ;;  %v7773_v4 = vld [vmem:[#allocation6 + $0xae8] ss:$24 sps:$4 sm:$0xff]   ;;  %v7779_v11 = vld [vmem:[#allocation6 + $0xb18] ss:$24 sps:$4 sm:$0xff]  }
 0x2d4   :  { %4192 = vmatpush1.bf16.msra.mxu1 %v7656_v16  ;;  %v7721_v16 = vld [vmem:[#allocation6 + $0x93c] ss:$24 sps:$4 sm:$0xff]  }
 0x2d5   :  { %4397 = vmatpush1.bf16.msra.mxu0 %v7659_v17  ;;  %4193 = vmatprep.subr.bf16.mxu1 %v7664_v18  ;;  %v7716_v17 = vld [vmem:[#allocation6 + $0x930] ss:$24 sps:$4 sm:$0xff]  }
 0x2d6   :  { %4398 = vmatprep.subr.bf16.mxu0 %v7667_v19  ;;  %v7719_v18 = vld [vmem:[#allocation6 + $0x938] ss:$24 sps:$4 sm:$0xff]   ;;  %v7724_v19 = vld [vmem:[#allocation6 + $0x964] ss:$24 sps:$4 sm:$0xff]  }
 0x2d8   :  { %4194 = vmatpush1.bf16.msra.mxu1 %v7662_v20  ;;  %v7727_v20 = vld [vmem:[#allocation6 + $0x96c] ss:$24 sps:$4 sm:$0xff]  }
 0x2d9   :  { %4399 = vmatpush1.bf16.msra.mxu0 %v7665_v21  ;;  %4195 = vmatprep.subr.bf16.mxu1 %v7670_v22  ;;  %v7722_v21 = vld [vmem:[#allocation6 + $0x960] ss:$24 sps:$4 sm:$0xff]  }
 0x2da   :  { %4400 = vmatprep.subr.bf16.mxu0 %v7673_v23  ;;  %v7725_v22 = vld [vmem:[#allocation6 + $0x968] ss:$24 sps:$4 sm:$0xff]   ;;  %v7730_v23 = vld [vmem:[#allocation6 + $0x994] ss:$24 sps:$4 sm:$0xff]  }
 0x2dc   :  { %4196 = vmatpush1.bf16.msra.mxu1 %v7668_v24  ;;  %v7733_v24 = vld [vmem:[#allocation6 + $0x99c] ss:$24 sps:$4 sm:$0xff]  }
 0x2dd   :  { %4401 = vmatpush1.bf16.msra.mxu0 %v7671_v25  ;;  %4197 = vmatprep.subr.bf16.mxu1 %v7676_v27  ;;  %v7728_v25 = vld [vmem:[#allocation6 + $0x990] ss:$24 sps:$4 sm:$0xff]  }
 0x2de   :  { %4402 = vmatprep.subr.bf16.mxu0 %v7679_v28  ;;  %v7731_v27 = vld [vmem:[#allocation6 + $0x998] ss:$24 sps:$4 sm:$0xff]   ;;  %v7736_v28 = vld [vmem:[#allocation6 + $0x9c4] ss:$24 sps:$4 sm:$0xff]  }
 0x2e0   :  { %4198 = vmatpush1.bf16.msra.mxu1 %v7674_v29  ;;  %v7739_v29 = vld [vmem:[#allocation6 + $0x9cc] ss:$24 sps:$4 sm:$0xff]  }
 0x2e1   :  { %4403 = vmatpush1.bf16.msra.mxu0 %v7677_v30  ;;  %4199 = vmatprep.subr.bf16.mxu1 %v7682_v31  ;;  %v7734_v30 = vld [vmem:[#allocation6 + $0x9c0] ss:$24 sps:$4 sm:$0xff]  }
 0x2e2   :  { %4404 = vmatprep.subr.bf16.mxu0 %v7685_v32  ;;  %v7737_v31 = vld [vmem:[#allocation6 + $0x9c8] ss:$24 sps:$4 sm:$0xff]   ;;  %v7742_v32 = vld [vmem:[#allocation6 + $0x9f4] ss:$24 sps:$4 sm:$0xff]  }
 0x2e4   :  { %4200 = vmatpush1.bf16.msra.mxu1 %v7680_v33  ;;  %v7745_v33 = vld [vmem:[#allocation6 + $0x9fc] ss:$24 sps:$4 sm:$0xff]  }
 0x2e5   :  { %4405 = vmatpush1.bf16.msra.mxu0 %v7683_v55  ;;  %4201 = vmatprep.subr.bf16.mxu1 %v7688_v39  ;;  %v7740_v55 = vld [vmem:[#allocation6 + $0x9f0] ss:$24 sps:$4 sm:$0xff]  }
 0x2e6   :  { %4406 = vmatprep.subr.bf16.mxu0 %v7691_v41  ;;  %v7743_v39 = vld [vmem:[#allocation6 + $0x9f8] ss:$24 sps:$4 sm:$0xff]   ;;  %v7748_v41 = vld [vmem:[#allocation6 + $0xa24] ss:$24 sps:$4 sm:$0xff]  }
 0x2e8   :  { %4202 = vmatpush1.bf16.msra.mxu1 %v7686_v37  ;;  %v7751_v37 = vld [vmem:[#allocation6 + $0xa2c] ss:$24 sps:$4 sm:$0xff]  }
 0x2e9   :  { %4407 = vmatpush1.bf16.msra.mxu0 %v7689_v45  ;;  %4203 = vmatprep.subr.bf16.mxu1 %v7694_v51  ;;  %v7746_v45 = vld [vmem:[#allocation6 + $0xa20] ss:$24 sps:$4 sm:$0xff]  }
 0x2ea   :  { %4408 = vmatprep.subr.bf16.mxu0 %v7697_v52  ;;  %v7749_v51 = vld [vmem:[#allocation6 + $0xa28] ss:$24 sps:$4 sm:$0xff]   ;;  %v7754_v52 = vld [vmem:[#allocation6 + $0xa54] ss:$24 sps:$4 sm:$0xff]  }
 0x2ec   :  { %4204 = vmatpush1.bf16.msra.mxu1 %v7692_v54  ;;  %v7752_v54 = vld [vmem:[#allocation6 + $0xa50] ss:$24 sps:$4 sm:$0xff]  }
 0x2ed   :  { %4409 = vmatpush1.bf16.msra.mxu0 %v7695_v57  ;;  %4205 = vmatprep.subr.bf16.mxu1 %v7700_v58  ;;  %v7760_v57 = vld [vmem:[#allocation6 + $0xa84] ss:$24 sps:$4 sm:$0xff]  }
 0x2ee   :  { %4410 = vmatprep.subr.bf16.mxu0 %v7703_v59  ;;  %v7763_v58 = vld [vmem:[#allocation6 + $0xa8c] ss:$24 sps:$4 sm:$0xff]   ;;  %v7758_v59 = vld [vmem:[#allocation6 + $0xa80] ss:$24 sps:$4 sm:$0xff]  }
 0x2f0   :  { %4206 = vmatpush1.bf16.msra.mxu1 %v7698_v61  ;;  %v7766_v61 = vld [vmem:[#allocation6 + $0xab4] ss:$24 sps:$4 sm:$0xff]  }
 0x2f1   :  { %4411 = vmatpush1.bf16.msra.mxu0 %v7701_v63  ;;  %4207 = vmatprep.subr.bf16.mxu1 %v7706_v0  ;;  %v7764_v63 = vld [vmem:[#allocation6 + $0xab0] ss:$24 sps:$4 sm:$0xff]  }
 0x2f2   :  { %4412 = vmatprep.subr.bf16.mxu0 %v7709_v1  ;;  %v7767_v0 = vld [vmem:[#allocation6 + $0xab8] ss:$24 sps:$4 sm:$0xff]   ;;  %v7772_v1 = vld [vmem:[#allocation6 + $0xae4] ss:$24 sps:$4 sm:$0xff]  }
 0x2f4   :  { %4208 = vmatpush1.bf16.msra.mxu1 %v7704_v2  ;;  %v7770_v2 = vld [vmem:[#allocation6 + $0xae0] ss:$24 sps:$4 sm:$0xff]  }
 0x2f5   :  { %4413 = vmatpush1.bf16.msra.mxu0 %v7707_v6  ;;  %4218 = vmatprep.subr.bf16.mxu1 %v7712_v8  ;;  %v7778_v6 = vld [vmem:[#allocation6 + $0xb14] ss:$24 sps:$4 sm:$0xff]  }
 0x2f6   :  { %4423 = vmatprep.subr.bf16.mxu0 %v7715_v5  ;;  %v7781_v8 = vld [vmem:[#allocation6 + $0xb1c] ss:$24 sps:$4 sm:$0xff]   ;;  %v7776_v5 = vld [vmem:[#allocation6 + $0xb10] ss:$24 sps:$4 sm:$0xff]  }
 0x2f7   :  { %4210 = vmatmul.mubr.bf16.vlgmr.msra.gmra.mrb[16].mxu1 %v8683_v12 }
 0x2f8   :  { %4415 = vmatmul.mubr.bf16.vlgmr.msra.gmra.mrb[20].mxu0 %v8683_v12  ;;  %4219 = vmatpush1.bf16.msra.mxu1 %v7710_v34  ;;  %v7784_v34 = vld [vmem:[#allocation6 + $0xb44] ss:$24 sps:$4 sm:$0xff]  }
 0x2f9   :  { %4250 = vmatprep.mubr.bf16.mxu1 %v8685_v38  ;;  %4424 = vmatpush1.bf16.msra.mxu0 %v7713_v14  ;;  %v7787_v14 = vld [vmem:[#allocation6 + $0xb4c] ss:$24 sps:$4 sm:$0xff]  }
 0x2fa   :  { %4455 = vmatprep.mubr.bf16.mxu0 %v8685_v38  ;;  %4220 = vmatprep.subr.bf16.mxu1 %v7718_v15  ;;  %v7782_v15 = vld [vmem:[#allocation6 + $0xb40] ss:$24 sps:$4 sm:$0xff]  }
 0x2fb   :  { %4425 = vmatprep.subr.bf16.mxu0 %v7721_v16  ;;  %v862_v16 = vsub.s32 6, %v8615_v46 }
 0x2fc   :  { %4221 = vmatpush1.bf16.msra.mxu1 %v7716_v17  ;;  %v7785_v17 = vld [vmem:[#allocation6 + $0xb48] ss:$24 sps:$4 sm:$0xff]  }
 0x2fd   :  { %4426 = vmatpush1.bf16.msra.mxu0 %v7719_v18  ;;  %4222 = vmatprep.subr.bf16.mxu1 %v7724_v19  ;;  %v7790_v18 = vld [vmem:[#allocation6 + $0xb74] ss:$24 sps:$4 sm:$0xff]  }
 0x2fe   :  { %4427 = vmatprep.subr.bf16.mxu0 %v7727_v20  ;;  %v7793_v19 = vld [vmem:[#allocation6 + $0xb7c] ss:$24 sps:$4 sm:$0xff]   ;;  %v7788_v20 = vld [vmem:[#allocation6 + $0xb70] ss:$24 sps:$4 sm:$0xff]  }
 0x300   :  { %4223 = vmatpush1.bf16.msra.mxu1 %v7722_v21  ;;  %v863_v21 = vrot.slane %v8620_v48, %v862_v16  ;;  %v7803_v48 = vld [vmem:[#allocation6 + $0xbd8] ss:$24 sps:$4 sm:$0xff]   ;;  %v7850_v16 = vld [vmem:[#allocation6 + $0xd54] ss:$24 sps:$4 sm:$0xff]  }
 0x301   :  { %4428 = vmatpush1.bf16.msra.mxu0 %v7725_v22  ;;  %4224 = vmatprep.subr.bf16.mxu1 %v7730_v23  ;;  %v7791_v22 = vld [vmem:[#allocation6 + $0xb78] ss:$24 sps:$4 sm:$0xff]   ;;  %v7796_v23 = vld [vmem:[#allocation6 + $0xba4] ss:$24 sps:$4 sm:$0xff]  }
 0x302   :  { %4429 = vmatprep.subr.bf16.mxu0 %v7733_v24  ;;  %v7799_v24 = vld [vmem:[#allocation6 + $0xbac] ss:$24 sps:$4 sm:$0xff]  }
 0x304   :  { %4225 = vmatpush1.bf16.msra.mxu1 %v7728_v25  ;;  %v7794_v25 = vld [vmem:[#allocation6 + $0xba0] ss:$24 sps:$4 sm:$0xff]  }
 0x305   :  { %4430 = vmatpush1.bf16.msra.mxu0 %v7731_v27  ;;  %4226 = vmatprep.subr.bf16.mxu1 %v7736_v28  ;;  %v1407_v27 = vadd.f32 %v8649_v35, %v863_v21  ;;  %v7797_v28 = vld [vmem:[#allocation6 + $0xba8] ss:$24 sps:$4 sm:$0xff]   ;;  %v7856_v21 = vld [vmem:[#allocation6 + $0x14] ss:$24 sps:$4 sm:$0xff]  }
 0x306   :  { %4431 = vmatprep.subr.bf16.mxu0 %v7739_v29  ;;  %v7802_v29 = vld [vmem:[#allocation6 + $0xbd4] ss:$24 sps:$4 sm:$0xff]   ;;  %v7809_v35 = vld [vmem:[#allocation6 + $0xc08] ss:$24 sps:$4 sm:$0xff]  }
 0x308   :  { %4227 = vmatpush1.bf16.msra.mxu1 %v7734_v30  ;;  %v7805_v30 = vld [vmem:[#allocation6 + $0xbdc] ss:$24 sps:$4 sm:$0xff]  }
 0x309   :  { %4432 = vmatpush1.bf16.msra.mxu0 %v7737_v31  ;;  %4228 = vmatprep.subr.bf16.mxu1 %v7742_v32  ;;  %v7800_v31 = vld [vmem:[#allocation6 + $0xbd0] ss:$24 sps:$4 sm:$0xff]   ;;  %v1459_v32 = vmax.f32 %v1407_v27, 0.0 }
 0x30a   :  { %4433 = vmatprep.subr.bf16.mxu0 %v7745_v33  ;;  %v7808_v33 = vld [vmem:[#allocation6 + $0xc04] ss:$24 sps:$4 sm:$0xff]   ;;  %v7860_v27 = vld [vmem:[#allocation6 + $0x70] ss:$24 sps:$4 sm:$0xff]  }
 0x30c   :  { %4229 = vmatpush1.bf16.msra.mxu1 %v7740_v55  ;;  %v7811_v55 = vld [vmem:[#allocation6 + $0xc0c] ss:$24 sps:$4 sm:$0xff]  }
 0x30d   :  { %4434 = vmatpush1.bf16.msra.mxu0 %v7743_v39  ;;  %4230 = vmatprep.subr.bf16.mxu1 %v7748_v41  ;;  %v7806_v39 = vld [vmem:[#allocation6 + $0xc00] ss:$24 sps:$4 sm:$0xff]   ;;  %v8694_v41 = vpack.c.bf16 %v1459_v32, %v1459_v32  ;;  %v7871_v32 = vld [vmem:[#allocation6 + $0x104] ss:$24 sps:$4 sm:$0xff]  }
 0x30e   :  { %4435 = vmatprep.subr.bf16.mxu0 %v7751_v37  ;;  %v7814_v37 = vld [vmem:[#allocation6 + $0xc34] ss:$24 sps:$4 sm:$0xff]  }
 0x310   :  { %4231 = vmatpush1.bf16.msra.mxu1 %v7746_v45  ;;  %v7817_v45 = vld [vmem:[#allocation6 + $0xc3c] ss:$24 sps:$4 sm:$0xff]  }
 0x311   :  { %4436 = vmatpush1.bf16.msra.mxu0 %v7749_v51  ;;  %4232 = vmatprep.subr.bf16.mxu1 %v7754_v52  ;;  %v7812_v51 = vld [vmem:[#allocation6 + $0xc30] ss:$24 sps:$4 sm:$0xff]  }
 0x312   :  { %4437 = vmatprep.subr.bf16.mxu0 %v7757_v53  ;;  %v7815_v52 = vld [vmem:[#allocation6 + $0xc38] ss:$24 sps:$4 sm:$0xff]   ;;  %v7820_v53 = vld [vmem:[#allocation6 + $0xc64] ss:$24 sps:$4 sm:$0xff]  }
 0x314   :  { %4233 = vmatpush1.bf16.msra.mxu1 %v7752_v54  ;;  %v7823_v54 = vld [vmem:[#allocation6 + $0xc6c] ss:$24 sps:$4 sm:$0xff]  }
 0x315   :  { %4438 = vmatpush1.bf16.msra.mxu0 %v7755_v56  ;;  %4234 = vmatprep.subr.bf16.mxu1 %v7760_v57  ;;  %v7818_v56 = vld [vmem:[#allocation6 + $0xc60] ss:$24 sps:$4 sm:$0xff]  }
 0x316   :  { %4439 = vmatprep.subr.bf16.mxu0 %v7763_v58  ;;  %v7821_v57 = vld [vmem:[#allocation6 + $0xc68] ss:$24 sps:$4 sm:$0xff]   ;;  %v7826_v58 = vld [vmem:[#allocation6 + $0xc94] ss:$24 sps:$4 sm:$0xff]  }
 0x318   :  { %4235 = vmatpush1.bf16.msra.mxu1 %v7758_v59  ;;  %v7829_v59 = vld [vmem:[#allocation6 + $0xc9c] ss:$24 sps:$4 sm:$0xff]  }
 0x319   :  { %4440 = vmatpush1.bf16.msra.mxu0 %v7761_v60  ;;  %4236 = vmatprep.subr.bf16.mxu1 %v7766_v61  ;;  %v7824_v60 = vld [vmem:[#allocation6 + $0xc90] ss:$24 sps:$4 sm:$0xff]  }
 0x31a   :  { %4441 = vmatprep.subr.bf16.mxu0 %v7769_v62  ;;  %v7827_v61 = vld [vmem:[#allocation6 + $0xc98] ss:$24 sps:$4 sm:$0xff]   ;;  %v7832_v62 = vld [vmem:[#allocation6 + $0xcc4] ss:$24 sps:$4 sm:$0xff]  }
 0x31c   :  { %4237 = vmatpush1.bf16.msra.mxu1 %v7764_v63  ;;  %v7835_v63 = vld [vmem:[#allocation6 + $0xccc] ss:$24 sps:$4 sm:$0xff]  }
 0x31d   :  { %4442 = vmatpush1.bf16.msra.mxu0 %v7767_v0  ;;  %4238 = vmatprep.subr.bf16.mxu1 %v7772_v1  ;;  %v7830_v0 = vld [vmem:[#allocation6 + $0xcc0] ss:$24 sps:$4 sm:$0xff]  }
 0x31e   :  { %4443 = vmatprep.subr.bf16.mxu0 %v7775_v40  ;;  %v7833_v1 = vld [vmem:[#allocation6 + $0xcc8] ss:$24 sps:$4 sm:$0xff]   ;;  %v7838_v40 = vld [vmem:[#allocation6 + $0xcf4] ss:$24 sps:$4 sm:$0xff]  }
 0x320   :  { %4239 = vmatpush1.bf16.msra.mxu1 %v7770_v2  ;;  %v7841_v2 = vld [vmem:[#allocation6 + $0xcfc] ss:$24 sps:$4 sm:$0xff]  }
 0x321   :  { %4444 = vmatpush1.bf16.msra.mxu0 %v7773_v4  ;;  %4240 = vmatprep.subr.bf16.mxu1 %v7778_v6  ;;  %v7836_v4 = vld [vmem:[#allocation6 + $0xcf0] ss:$24 sps:$4 sm:$0xff]  }
 0x322   :  { %4445 = vmatprep.subr.bf16.mxu0 %v7781_v8  ;;  %v7839_v6 = vld [vmem:[#allocation6 + $0xcf8] ss:$24 sps:$4 sm:$0xff]   ;;  %v7844_v8 = vld [vmem:[#allocation6 + $0xd24] ss:$24 sps:$4 sm:$0xff]  }
 0x324   :  { %4241 = vmatpush1.bf16.msra.mxu1 %v7776_v5  ;;  %v6287_v5 = vld [vmem:[#allocation10 + $0x8] ss:$0 sm:$0xff] }
 0x325   :  { %4446 = vmatpush1.bf16.msra.mxu0 %v7779_v11  ;;  %4242 = vmatprep.subr.bf16.mxu1 %v7784_v34  ;;  %v7847_v11 = vld [vmem:[#allocation6 + $0xd2c] ss:$24 sps:$4 sm:$0xff]   ;;  %v7842_v34 = vld [vmem:[#allocation6 + $0xd20] ss:$24 sps:$4 sm:$0xff]  }
 0x326   :  { %4447 = vmatprep.subr.bf16.mxu0 %v7787_v14  ;;  %v1448_v14 = vadd.f32 %v6287_v5, %v8665_v26  ;;  %v7859_v26 = vld [vmem:[#allocation6 + $0x44] ss:$24 sps:$4 sm:$0xff]   ;;  %v8004_v5 = vld [vmem:[#allocation7 + $0x20] ss:$12 sps:$4 sm:$0xff]  }
 0x328   :  { %4243 = vmatpush1.bf16.msra.mxu1 %v7782_v15  ;;  %v7845_v15 = vld [vmem:[#allocation6 + $0xd28] ss:$24 sps:$4 sm:$0xff]  }
 0x329   :  { %4448 = vmatpush1.bf16.msra.mxu0 %v7785_v17  ;;  %4244 = vmatprep.subr.bf16.mxu1 %v7790_v18  ;;  %v7853_v17 = vld [vmem:[#allocation6 + $0xd5c] ss:$24 sps:$4 sm:$0xff]   ;;  %v7848_v18 = vld [vmem:[#allocation6 + $0xd50] ss:$24 sps:$4 sm:$0xff]  }
 0x32a   :  { %4449 = vmatprep.subr.bf16.mxu0 %v7793_v19  ;;  %v1461_v19 = vmax.f32 %v1448_v14, 0.0  ;;  %v7910_v14 = vld [vmem:[#allocation6 + $0x374] ss:$24 sps:$4 sm:$0xff]  }
 0x32c   :  { %4245 = vmatpush1.bf16.msra.mxu1 %v7788_v20  ;;  %v7851_v20 = vld [vmem:[#allocation6 + $0xd58] ss:$24 sps:$4 sm:$0xff]  }
 0x32d   :  { %4450 = vmatpush1.bf16.msra.mxu0 %v7791_v22  ;;  %4246 = vmatprep.subr.bf16.mxu1 %v7796_v23  ;;  %v7854_v22 = vld [vmem:[#allocation6 + $0x10] ss:$24 sps:$4 sm:$0xff]   ;;  %v8701_v23 = vpack.c.bf16 %v1461_v19, %v1461_v19 }
 0x32e   :  { %4451 = vmatprep.subr.bf16.mxu0 %v7799_v24  ;;  %v7857_v24 = vld [vmem:[#allocation6 + $0x40] ss:$24 sps:$4 sm:$0xff]   ;;  %v8014_v19 = vld [vmem:[#allocation7 + $0x50] ss:$12 sps:$4 sm:$0xff]  }
 0x330   :  { %4247 = vmatpush1.bf16.msra.mxu1 %v7794_v25  ;;  %v7862_v25 = vld [vmem:[#allocation6 + $0x74] ss:$24 sps:$4 sm:$0xff]  }
 0x331   :  { %4452 = vmatpush1.bf16.msra.mxu0 %v7797_v28  ;;  %4248 = vmatprep.subr.bf16.mxu1 %v7802_v29  ;;  %v7865_v28 = vld [vmem:[#allocation6 + $0xa4] ss:$24 sps:$4 sm:$0xff]   ;;  %v7863_v29 = vld [vmem:[#allocation6 + $0xa0] ss:$24 sps:$4 sm:$0xff]  }
 0x332   :  { %4453 = vmatprep.subr.bf16.mxu0 %v7805_v30  ;;  %v7868_v30 = vld [vmem:[#allocation6 + $0xd4] ss:$24 sps:$4 sm:$0xff]  }
 0x334   :  { %4249 = vmatpush1.bf16.msra.mxu1 %v7800_v31  ;;  %v7866_v31 = vld [vmem:[#allocation6 + $0xd0] ss:$24 sps:$4 sm:$0xff]  }
 0x335   :  { %4454 = vmatpush1.bf16.msra.mxu0 %v7803_v48  ;;  %4259 = vmatprep.subr.bf16.mxu1 %v7808_v33  ;;  %v7869_v48 = vld [vmem:[#allocation6 + $0x100] ss:$24 sps:$4 sm:$0xff]   ;;  %v7874_v33 = vld [vmem:[#allocation6 + $0x134] ss:$24 sps:$4 sm:$0xff]  }
 0x336   :  { %4464 = vmatprep.subr.bf16.mxu0 %v7811_v55  ;;  %v7877_v55 = vld [vmem:[#allocation6 + $0x164] ss:$24 sps:$4 sm:$0xff]  }
 0x337   :  { %4251 = vmatmul.mubr.bf16.vlgmr.msra.gmra.mrb[16].mxu1 %v8694_v41 }
 0x338   :  { %4456 = vmatmul.mubr.bf16.vlgmr.msra.gmra.mrb[20].mxu0 %v8694_v41  ;;  %4260 = vmatpush1.bf16.msra.mxu1 %v7806_v39  ;;  %v7875_v39 = vld [vmem:[#allocation6 + $0x160] ss:$24 sps:$4 sm:$0xff]  }
 0x339   :  { %4465 = vmatpush1.bf16.msra.mxu0 %v7809_v35  ;;  %4261 = vmatprep.subr.bf16.mxu1 %v7814_v37  ;;  %v7880_v35 = vld [vmem:[#allocation6 + $0x194] ss:$24 sps:$4 sm:$0xff]   ;;  %v7878_v37 = vld [vmem:[#allocation6 + $0x190] ss:$24 sps:$4 sm:$0xff]  }
 0x33a   :  { %4466 = vmatprep.subr.bf16.mxu0 %v7817_v45  ;;  %4291 = vmatprep.mubr.bf16.mxu1 %v8440_v36  ;;  %v7883_v45 = vld [vmem:[#allocation6 + $0x1c4] ss:$24 sps:$4 sm:$0xff]  }
 0x33b   :  { %4496 = vmatprep.mubr.bf16.mxu0 %v8440_v36 }
 0x33c   :  { %4262 = vmatpush1.bf16.msra.mxu1 %v7812_v51  ;;  %v7881_v51 = vld [vmem:[#allocation6 + $0x1c0] ss:$24 sps:$4 sm:$0xff]  }
 0x33d   :  { %4467 = vmatpush1.bf16.msra.mxu0 %v7815_v52  ;;  %4263 = vmatprep.subr.bf16.mxu1 %v7820_v53  ;;  %v7886_v52 = vld [vmem:[#allocation6 + $0x1f4] ss:$24 sps:$4 sm:$0xff]   ;;  %v7884_v53 = vld [vmem:[#allocation6 + $0x1f0] ss:$24 sps:$4 sm:$0xff]  }
 0x33e   :  { %4468 = vmatprep.subr.bf16.mxu0 %v7823_v54  ;;  %v7889_v54 = vld [vmem:[#allocation6 + $0x224] ss:$24 sps:$4 sm:$0xff]  }
 0x340   :  { %4264 = vmatpush1.bf16.msra.mxu1 %v7818_v56  ;;  %v7887_v56 = vld [vmem:[#allocation6 + $0x220] ss:$24 sps:$4 sm:$0xff]  }
 0x341   :  { %4469 = vmatpush1.bf16.msra.mxu0 %v7821_v57  ;;  %4265 = vmatprep.subr.bf16.mxu1 %v7826_v58  ;;  %v7892_v57 = vld [vmem:[#allocation6 + $0x254] ss:$24 sps:$4 sm:$0xff]   ;;  %v7890_v58 = vld [vmem:[#allocation6 + $0x250] ss:$24 sps:$4 sm:$0xff]  }
 0x342   :  { %4470 = vmatprep.subr.bf16.mxu0 %v7829_v59  ;;  %v7895_v59 = vld [vmem:[#allocation6 + $0x284] ss:$24 sps:$4 sm:$0xff]  }
 0x344   :  { %4266 = vmatpush1.bf16.msra.mxu1 %v7824_v60  ;;  %v7893_v60 = vld [vmem:[#allocation6 + $0x280] ss:$24 sps:$4 sm:$0xff]  }
 0x345   :  { %4471 = vmatpush1.bf16.msra.mxu0 %v7827_v61  ;;  %4267 = vmatprep.subr.bf16.mxu1 %v7832_v62  ;;  %v7898_v61 = vld [vmem:[#allocation6 + $0x2b4] ss:$24 sps:$4 sm:$0xff]   ;;  %v7896_v62 = vld [vmem:[#allocation6 + $0x2b0] ss:$24 sps:$4 sm:$0xff]  }
 0x346   :  { %4472 = vmatprep.subr.bf16.mxu0 %v7835_v63  ;;  %v7901_v63 = vld [vmem:[#allocation6 + $0x2e4] ss:$24 sps:$4 sm:$0xff]  }
 0x348   :  { %4268 = vmatpush1.bf16.msra.mxu1 %v7830_v0  ;;  %v7899_v0 = vld [vmem:[#allocation6 + $0x2e0] ss:$24 sps:$4 sm:$0xff]  }
 0x349   :  { %4473 = vmatpush1.bf16.msra.mxu0 %v7833_v1  ;;  %4269 = vmatprep.subr.bf16.mxu1 %v7838_v40  ;;  %v7995_v1 = vld [vmem:[#allocation7 + $0xc8] ss:$12 sps:$4 sm:$0xff]  }
 0x34a   :  { %4474 = vmatprep.subr.bf16.mxu0 %v7841_v2  ;;  %v7904_v40 = vld [vmem:[#allocation6 + $0x314] ss:$24 sps:$4 sm:$0xff]  }
 0x34b   :  { %v7999_v2 = vld [vmem:[#allocation7 + $0x8] ss:$12 sps:$4 sm:$0xff]  }
 0x34c   :  { %4270 = vmatpush1.bf16.msra.mxu1 %v7836_v4  ;;  %v7902_v4 = vld [vmem:[#allocation6 + $0x310] ss:$24 sps:$4 sm:$0xff]  }
 0x34d   :  { %4475 = vmatpush1.bf16.msra.mxu0 %v7839_v6  ;;  %4271 = vmatprep.subr.bf16.mxu1 %v7844_v8  ;;  %v8000_v6 = vld [vmem:[#allocation7 + $0xe0] ss:$12 sps:$4 sm:$0xff]   ;;  %v7907_v8 = vld [vmem:[#allocation6 + $0x344] ss:$24 sps:$4 sm:$0xff]  }
 0x34e   :  { %4476 = vmatprep.subr.bf16.mxu0 %v7847_v11  ;;  %v7905_v11 = vld [vmem:[#allocation6 + $0x340] ss:$24 sps:$4 sm:$0xff]  }
 0x350   :  { %4272 = vmatpush1.bf16.msra.mxu1 %v7842_v34  ;;  %v8005_v34 = vld [vmem:[#allocation7 + $0xf8] ss:$12 sps:$4 sm:$0xff]  }
 0x351   :  { %4477 = vmatpush1.bf16.msra.mxu0 %v7845_v15  ;;  %4273 = vmatprep.subr.bf16.mxu1 %v7850_v16  ;;  %v8009_v15 = vld [vmem:[#allocation7 + $0x38] ss:$12 sps:$4 sm:$0xff]   ;;  %v7908_v16 = vld [vmem:[#allocation6 + $0x370] ss:$24 sps:$4 sm:$0xff]  }
 0x352   :  { %4478 = vmatprep.subr.bf16.mxu0 %v7853_v17  ;;  %v8010_v17 = vld [vmem:[#allocation7 + $0x110] ss:$12 sps:$4 sm:$0xff]  }
 0x354   :  { %4274 = vmatpush1.bf16.msra.mxu1 %v7848_v18  ;;  %v7913_v18 = vld [vmem:[#allocation6 + $0x3a4] ss:$24 sps:$4 sm:$0xff]  }
 0x355   :  { %4479 = vmatpush1.bf16.msra.mxu0 %v7851_v20  ;;  %4505 = vmatprep.subr.bf16.mxu1 %v7856_v21  ;;  %v8015_v20 = vld [vmem:[#allocation7 + $0x128] ss:$12 sps:$4 sm:$0xff]  }
 0x356   :  { %7038 = vmatprep.subr.bf16.mxu0 %v7995_v1  ;;  %v8019_v21 = vld [vmem:[#allocation7 + $0x68] ss:$12 sps:$4 sm:$0xff]  }
 0x357   :  { %4292 = vmatmul.mubr.bf16.vlgmr.msra.gmra.mrb[16].mxu1 %v8701_v23  ;;  %v7950_v1 = vld [vmem:[#allocation6 + $0x610] ss:$24 sps:$4 sm:$0xff]  }
 0x358   :  { %4497 = vmatmul.mubr.bf16.vlgmr.msra.gmra.mrb[20].mxu0 %v8701_v23  ;;  %4506 = vmatpush1.bf16.msra.mxu1 %v7854_v22  ;;  %v7914_v22 = vld [vmem:[#allocation6 + $0x3d0] ss:$24 sps:$4 sm:$0xff]  }
 0x359   :  { %4537 = vmatprep.mubr.bf16.mxu1 %v8635_v3  ;;  %4507 = vmatprep.subr.bf16.mxu1 %v7859_v26  ;;  %v7872_v3 = vld [vmem:[#allocation6 + $0x130] ss:$24 sps:$4 sm:$0xff]   ;;  %v8020_v26 = vld [vmem:[#allocation7 + $0x140] ss:$12 sps:$4 sm:$0xff]  }
 0x35a   :  { %7039 = vmatpush3.bf16.msra.mxu0 %v7999_v2  ;;  %v7953_v2 = vld [vmem:[#allocation6 + $0x640] ss:$24 sps:$4 sm:$0xff]  }
 0x35b   :  { %7040 = vmatprep.subr.bf16.mxu0 %v8000_v6  ;;  %v7956_v6 = vld [vmem:[#allocation6 + $0x670] ss:$24 sps:$4 sm:$0xff]  }
 0x35c   :  { %4508 = vmatpush1.bf16.msra.mxu1 %v7857_v24  ;;  %v7919_v24 = vld [vmem:[#allocation6 + $0x404] ss:$24 sps:$4 sm:$0xff]  }
 0x35d   :  { %4509 = vmatprep.subr.bf16.mxu1 %v7862_v25  ;;  %v8024_v25 = vld [vmem:[#allocation7 + $0x80] ss:$12 sps:$4 sm:$0xff]  }
 0x35e   :  { %7041 = vmatpush3.bf16.msra.mxu0 %v8004_v5  ;;  %v7959_v5 = vld [vmem:[#allocation6 + $0x6a0] ss:$24 sps:$4 sm:$0xff]  }
 0x35f   :  { %7042 = vmatprep.subr.bf16.mxu0 %v8005_v34  ;;  %v7962_v34 = vld [vmem:[#allocation6 + $0x6d0] ss:$24 sps:$4 sm:$0xff]  }
 0x360   :  { %4510 = vmatpush1.bf16.msra.mxu1 %v7860_v27  ;;  %v7917_v27 = vld [vmem:[#allocation6 + $0x400] ss:$24 sps:$4 sm:$0xff]  }
 0x361   :  { %4511 = vmatprep.subr.bf16.mxu1 %v7865_v28  ;;  %v7922_v28 = vld [vmem:[#allocation6 + $0x434] ss:$24 sps:$4 sm:$0xff]  }
 0x362   :  { %7043 = vmatpush3.bf16.msra.mxu0 %v8009_v15  ;;  %v7970_v15 = vld [vmem:[#allocation6 + $0x734] ss:$24 sps:$4 sm:$0xff]  }
 0x363   :  { %7044 = vmatprep.subr.bf16.mxu0 %v8010_v17  ;;  %v7971_v17 = vld [vmem:[#allocation6 + $0x760] ss:$24 sps:$4 sm:$0xff]  }
 0x364   :  { %4512 = vmatpush1.bf16.msra.mxu1 %v7863_v29  ;;  %v8025_v29 = vld [vmem:[#allocation7 + $0x158] ss:$12 sps:$4 sm:$0xff]  }
 0x365   :  { %4513 = vmatprep.subr.bf16.mxu1 %v7868_v30  ;;  %v8029_v30 = vld [vmem:[#allocation7 + $0x98] ss:$12 sps:$4 sm:$0xff]  }
 0x366   :  { %7045 = vmatpush3.bf16.msra.mxu0 %v8014_v19  ;;  %v7974_v19 = vld [vmem:[#allocation6 + $0x790] ss:$24 sps:$4 sm:$0xff]  }
 0x367   :  { %7046 = vmatprep.subr.bf16.mxu0 %v8015_v20  ;;  %v7977_v20 = vld [vmem:[#allocation6 + $0x7c0] ss:$24 sps:$4 sm:$0xff]  }
 0x368   :  { %4514 = vmatpush1.bf16.msra.mxu1 %v7866_v31  ;;  %v7920_v31 = vld [vmem:[#allocation6 + $0x430] ss:$24 sps:$4 sm:$0xff]  }
 0x369   :  { %4515 = vmatprep.subr.bf16.mxu1 %v7871_v32  ;;  %v7925_v32 = vld [vmem:[#allocation6 + $0x464] ss:$24 sps:$4 sm:$0xff]  }
 0x36a   :  { %7047 = vmatpush3.bf16.msra.mxu0 %v8019_v21  ;;  %v7980_v21 = vld [vmem:[#allocation6 + $0x7f0] ss:$24 sps:$4 sm:$0xff]  }
 0x36b   :  { %7048 = vmatprep.subr.bf16.mxu0 %v8020_v26  ;;  %v7983_v26 = vld [vmem:[#allocation6 + $0x820] ss:$24 sps:$4 sm:$0xff]  }
 0x36c   :  { %4516 = vmatpush1.bf16.msra.mxu1 %v7869_v48  ;;  %v8030_v48 = vld [vmem:[#allocation7 + $0x170] ss:$12 sps:$4 sm:$0xff]  }
 0x36d   :  { %4517 = vmatprep.subr.bf16.mxu1 %v7874_v33  ;;  %v8034_v33 = vld [vmem:[#allocation7 + $0xb0] ss:$12 sps:$4 sm:$0xff]  }
 0x36e   :  { %7049 = vmatpush3.bf16.msra.mxu0 %v8024_v25  ;;  %v7986_v25 = vld [vmem:[#allocation6 + $0x850] ss:$24 sps:$4 sm:$0xff]  }
 0x36f   :  { %7050 = vmatprep.subr.bf16.mxu0 %v8025_v29  ;;  %v7994_v29 = vld [vmem:[#allocation6 + $0x8b4] ss:$24 sps:$4 sm:$0xff]  }
 0x370   :  { %4518 = vmatpush1.bf16.msra.mxu1 %v7872_v3  ;;  %v7923_v3 = vld [vmem:[#allocation6 + $0x460] ss:$24 sps:$4 sm:$0xff]  }
 0x371   :  { %4519 = vmatprep.subr.bf16.mxu1 %v7877_v55  ;;  %v7928_v55 = vld [vmem:[#allocation6 + $0x494] ss:$24 sps:$4 sm:$0xff]  }
 0x372   :  { %7051 = vmatpush3.bf16.msra.mxu0 %v8029_v30  ;;  %v7992_v30 = vld [vmem:[#allocation6 + $0x8b0] ss:$24 sps:$4 sm:$0xff]  }
 0x373   :  { %7052 = vmatprep.subr.bf16.mxu0 %v8030_v48  ;;  %v8003_v48 = vld [vmem:[#allocation6 + $0x914] ss:$24 sps:$4 sm:$0xff]  }
 0x374   :  { %4520 = vmatpush1.bf16.msra.mxu1 %v7875_v39  ;;  %v8035_v39 = vld [vmem:[#allocation7 + $0x248] ss:$12 sps:$4 sm:$0xff]  }
 0x375   :  { %4521 = vmatprep.subr.bf16.mxu1 %v7880_v35  ;;  %v7926_v35 = vld [vmem:[#allocation6 + $0x490] ss:$24 sps:$4 sm:$0xff]  }
 0x376   :  { %7053 = vmatpush3.bf16.msra.mxu0 %v8034_v33  ;;  %v8001_v33 = vld [vmem:[#allocation6 + $0x910] ss:$24 sps:$4 sm:$0xff]  }
 0x377   :  { %7060 = vmatprep.subr.bf16.mxu0 %v8035_v39  ;;  %v8013_v39 = vld [vmem:[#allocation6 + $0x974] ss:$24 sps:$4 sm:$0xff]  }
 0x378   :  { %4522 = vmatpush1.bf16.msra.mxu1 %v7878_v37  ;;  %v7931_v37 = vld [vmem:[#allocation6 + $0x4c4] ss:$24 sps:$4 sm:$0xff]  }
 0x379   :  { %4523 = vmatprep.subr.bf16.mxu1 %v7883_v45  ;;  %v7929_v45 = vld [vmem:[#allocation6 + $0x4c0] ss:$24 sps:$4 sm:$0xff]  }
 0x37c   :  { %4524 = vmatpush1.bf16.msra.mxu1 %v7881_v51  ;;  %v7934_v51 = vld [vmem:[#allocation6 + $0x4f4] ss:$24 sps:$4 sm:$0xff]  }
 0x37d   :  { %4525 = vmatprep.subr.bf16.mxu1 %v7886_v52  ;;  %v7932_v52 = vld [vmem:[#allocation6 + $0x4f0] ss:$24 sps:$4 sm:$0xff]  }
 0x380   :  { %4526 = vmatpush1.bf16.msra.mxu1 %v7884_v53  ;;  %v7937_v53 = vld [vmem:[#allocation6 + $0x524] ss:$24 sps:$4 sm:$0xff]  }
 0x381   :  { %4527 = vmatprep.subr.bf16.mxu1 %v7889_v54  ;;  %v7935_v54 = vld [vmem:[#allocation6 + $0x520] ss:$24 sps:$4 sm:$0xff]  }
 0x384   :  { %4528 = vmatpush1.bf16.msra.mxu1 %v7887_v56  ;;  %v7940_v56 = vld [vmem:[#allocation6 + $0x554] ss:$24 sps:$4 sm:$0xff]  }
 0x385   :  { %4529 = vmatprep.subr.bf16.mxu1 %v7892_v57  ;;  %v7938_v57 = vld [vmem:[#allocation6 + $0x550] ss:$24 sps:$4 sm:$0xff]  }
 0x388   :  { %4530 = vmatpush1.bf16.msra.mxu1 %v7890_v58  ;;  %v7943_v58 = vld [vmem:[#allocation6 + $0x584] ss:$24 sps:$4 sm:$0xff]  }
 0x389   :  { %4531 = vmatprep.subr.bf16.mxu1 %v7895_v59  ;;  %v7941_v59 = vld [vmem:[#allocation6 + $0x580] ss:$24 sps:$4 sm:$0xff]  }
 0x38c   :  { %4532 = vmatpush1.bf16.msra.mxu1 %v7893_v60  ;;  %v7946_v60 = vld [vmem:[#allocation6 + $0x5b4] ss:$24 sps:$4 sm:$0xff]  }
 0x38d   :  { %4533 = vmatprep.subr.bf16.mxu1 %v7898_v61  ;;  %v7944_v61 = vld [vmem:[#allocation6 + $0x5b0] ss:$24 sps:$4 sm:$0xff]  }
 0x390   :  { %4534 = vmatpush1.bf16.msra.mxu1 %v7896_v62  ;;  %v7949_v62 = vld [vmem:[#allocation6 + $0x5e4] ss:$24 sps:$4 sm:$0xff]  }
 0x391   :  { %4535 = vmatprep.subr.bf16.mxu1 %v7901_v63  ;;  %v7947_v63 = vld [vmem:[#allocation6 + $0x5e0] ss:$24 sps:$4 sm:$0xff]  }
 0x394   :  { %4536 = vmatpush1.bf16.msra.mxu1 %v7899_v0  ;;  %v7952_v0 = vld [vmem:[#allocation6 + $0x614] ss:$24 sps:$4 sm:$0xff]  }
 0x395   :  { %4546 = vmatprep.subr.bf16.mxu1 %v7904_v40  ;;  %v7955_v40 = vld [vmem:[#allocation6 + $0x644] ss:$24 sps:$4 sm:$0xff]  }
 0x397   :  { %4538 = vmatmul.mubr.bf16.vlgmr.msra.gmra.mrb[20].mxu1 %v8637_v7  ;;  %v7911_v7 = vld [vmem:[#allocation6 + $0x3a0] ss:$24 sps:$4 sm:$0xff]  }
 0x398   :  { %4547 = vmatpush1.bf16.msra.mxu1 %v7902_v4  ;;  %4578 = vmatprep.mubr.bf16.mxu1 %v8641_v9  ;;  %v7916_v9 = vld [vmem:[#allocation6 + $0x3d4] ss:$24 sps:$4 sm:$0xff]  }
 0x399   :  { %4548 = vmatprep.subr.bf16.mxu1 %v7907_v8  ;;  %v7958_v4 = vld [vmem:[#allocation6 + $0x674] ss:$24 sps:$4 sm:$0xff]   ;;  %v7961_v8 = vld [vmem:[#allocation6 + $0x6a4] ss:$24 sps:$4 sm:$0xff]  }
 0x39c   :  { %4549 = vmatpush1.bf16.msra.mxu1 %v7905_v11  ;;  %v7964_v11 = vld [vmem:[#allocation6 + $0x6d4] ss:$24 sps:$4 sm:$0xff]  }
 0x39d   :  { %4550 = vmatprep.subr.bf16.mxu1 %v7910_v14  ;;  %v7967_v14 = vld [vmem:[#allocation6 + $0x704] ss:$24 sps:$4 sm:$0xff]  }
 0x3a0   :  { %4551 = vmatpush1.bf16.msra.mxu1 %v7908_v16  ;;  %v7973_v16 = vld [vmem:[#allocation6 + $0x764] ss:$24 sps:$4 sm:$0xff]  }
 0x3a1   :  { %4552 = vmatprep.subr.bf16.mxu1 %v7913_v18  ;;  %v7976_v18 = vld [vmem:[#allocation6 + $0x794] ss:$24 sps:$4 sm:$0xff]  }
 0x3a4   :  { %4553 = vmatpush1.bf16.msra.mxu1 %v7911_v7  ;;  %v7979_v7 = vld [vmem:[#allocation6 + $0x7c4] ss:$24 sps:$4 sm:$0xff]  }
 0x3a5   :  { %4554 = vmatprep.subr.bf16.mxu1 %v7916_v9  ;;  %v7982_v9 = vld [vmem:[#allocation6 + $0x7f4] ss:$24 sps:$4 sm:$0xff]  }
 0x3a8   :  { %4555 = vmatpush1.bf16.msra.mxu1 %v7914_v22  ;;  %v7985_v22 = vld [vmem:[#allocation6 + $0x824] ss:$24 sps:$4 sm:$0xff]  }
 0x3a9   :  { %4556 = vmatprep.subr.bf16.mxu1 %v7919_v24  ;;  %v7988_v24 = vld [vmem:[#allocation6 + $0x854] ss:$24 sps:$4 sm:$0xff]  }
 0x3ac   :  { %4557 = vmatpush1.bf16.msra.mxu1 %v7917_v27  ;;  %v7991_v27 = vld [vmem:[#allocation6 + $0x884] ss:$24 sps:$4 sm:$0xff]  }
 0x3ad   :  { %4558 = vmatprep.subr.bf16.mxu1 %v7922_v28  ;;  %v7989_v28 = vld [vmem:[#allocation6 + $0x880] ss:$24 sps:$4 sm:$0xff]  }
 0x3b0   :  { %4559 = vmatpush1.bf16.msra.mxu1 %v7920_v31  ;;  %v7998_v31 = vld [vmem:[#allocation6 + $0x8e4] ss:$24 sps:$4 sm:$0xff]  }
 0x3b1   :  { %4560 = vmatprep.subr.bf16.mxu1 %v7925_v32  ;;  %v7996_v32 = vld [vmem:[#allocation6 + $0x8e0] ss:$24 sps:$4 sm:$0xff]  }
 0x3b4   :  { %4561 = vmatpush1.bf16.msra.mxu1 %v7923_v3  ;;  %v8008_v3 = vld [vmem:[#allocation6 + $0x944] ss:$24 sps:$4 sm:$0xff]  }
 0x3b5   :  { %4562 = vmatprep.subr.bf16.mxu1 %v7928_v55  ;;  %v8006_v55 = vld [vmem:[#allocation6 + $0x940] ss:$24 sps:$4 sm:$0xff]  }
 0x3b8   :  { %4563 = vmatpush1.bf16.msra.mxu1 %v7926_v35  ;;  %v8011_v35 = vld [vmem:[#allocation6 + $0x970] ss:$24 sps:$4 sm:$0xff]  }
 0x3b9   :  { %4564 = vmatprep.subr.bf16.mxu1 %v7931_v37  ;;  %v8018_v37 = vld [vmem:[#allocation6 + $0x9a4] ss:$24 sps:$4 sm:$0xff]  }
 0x3bc   :  { %4565 = vmatpush1.bf16.msra.mxu1 %v7929_v45  ;;  %v8016_v45 = vld [vmem:[#allocation6 + $0x9a0] ss:$24 sps:$4 sm:$0xff]  }
 0x3bd   :  { %4566 = vmatprep.subr.bf16.mxu1 %v7934_v51  ;;  %v8023_v51 = vld [vmem:[#allocation6 + $0x9d4] ss:$24 sps:$4 sm:$0xff]  }
 0x3c0   :  { %4567 = vmatpush1.bf16.msra.mxu1 %v7932_v52  ;;  %v8021_v52 = vld [vmem:[#allocation6 + $0x9d0] ss:$24 sps:$4 sm:$0xff]  }
 0x3c1   :  { %4568 = vmatprep.subr.bf16.mxu1 %v7937_v53  ;;  %v8712_v53 = vld [vmem:[#allocation10 + $0x9] sm:$0x3f] }
 0x3c4   :  { %4569 = vmatpush1.bf16.msra.mxu1 %v7935_v54  ;;  %v1912_v54 = vrot.slane %v8712_v53, %v8623_v49 }
 0x3c5   :  { %4570 = vmatprep.subr.bf16.mxu1 %v7940_v56  ;;  %v8026_v56 = vld [vmem:[#allocation6 + $0xa00] ss:$24 sps:$4 sm:$0xff]  }
 0x3c8   :  { %4571 = vmatpush1.bf16.msra.mxu1 %v7938_v57  ;;  %v1920_v57 = vrot.slane %v8712_v53, %v850_v50 }
 0x3c9   :  { %4572 = vmatprep.subr.bf16.mxu1 %v7943_v58  ;;  %v8033_v58 = vld [vmem:[#allocation6 + $0xa34] ss:$24 sps:$4 sm:$0xff]  }
 0x3cc   :  { %4573 = vmatpush1.bf16.msra.mxu1 %v7941_v59 }
 0x3cd   :  { %4574 = vmatprep.subr.bf16.mxu1 %v7946_v60 }
 0x3d0   :  { %4575 = vmatpush1.bf16.msra.mxu1 %v7944_v61 }
 0x3d1   :  { %4576 = vmatprep.subr.bf16.mxu1 %v7949_v62 }
 0x3d4   :  { %4577 = vmatpush1.bf16.msra.mxu1 %v7947_v63 }
 0x3d5   :  { %4587 = vmatprep.subr.bf16.mxu1 %v7952_v0 }
 0x3d7   :  { %4579 = vmatmul.mubr.bf16.vlgmr.msra.gmra.mrb[20].mxu1 %v8667_v42  ;;  %v7965_v42 = vld [vmem:[#allocation6 + $0x700] ss:$24 sps:$4 sm:$0xff]  }
 0x3d8   :  { %4588 = vmatpush1.bf16.msra.mxu1 %v7950_v1  ;;  %4619 = vmatprep.mubr.bf16.mxu1 %v8669_v43  ;;  %v7968_v43 = vld [vmem:[#allocation6 + $0x730] ss:$24 sps:$4 sm:$0xff]  }
 0x3d9   :  { %4589 = vmatprep.subr.bf16.mxu1 %v7955_v40  ;;  %v8031_v40 = vld [vmem:[#allocation6 + $0xa30] ss:$24 sps:$4 sm:$0xff]  }
 0x3dc   :  { %4590 = vmatpush1.bf16.msra.mxu1 %v7953_v2 }
 0x3dd   :  { %4591 = vmatprep.subr.bf16.mxu1 %v7958_v4 }
 0x3e0   :  { %4592 = vmatpush1.bf16.msra.mxu1 %v7956_v6 }
 0x3e1   :  { %4593 = vmatprep.subr.bf16.mxu1 %v7961_v8 }
 0x3e4   :  { %4594 = vmatpush1.bf16.msra.mxu1 %v7959_v5  ;;  %v8038_v5 = vld [vmem:[#allocation6 + $0xa64] ss:$24 sps:$4 sm:$0xff]  }
 0x3e5   :  { %4595 = vmatprep.subr.bf16.mxu1 %v7964_v11 }
 0x3e8   :  { %4596 = vmatpush1.bf16.msra.mxu1 %v7962_v34 }
 0x3e9   :  { %4597 = vmatprep.subr.bf16.mxu1 %v7967_v14 }
 0x3ec   :  { %4598 = vmatpush1.bf16.msra.mxu1 %v7965_v42  ;;  %v8036_v42 = vld [vmem:[#allocation6 + $0xa60] ss:$24 sps:$4 sm:$0xff]  }
 0x3ed   :  { %4599 = vmatprep.subr.bf16.mxu1 %v7970_v15  ;;  %v8039_v15 = vld [vmem:[#allocation7 + $0x188] ss:$12 sps:$4 sm:$0xff]  }
 0x3f0   :  { %4600 = vmatpush1.bf16.msra.mxu1 %v7968_v43 }
 0x3f1   :  { %4601 = vmatprep.subr.bf16.mxu1 %v7973_v16  ;;  %v8040_v16 = vld [vmem:[#allocation7 + $0x260] ss:$12 sps:$4 sm:$0xff]  }
 0x3f4   :  { %4602 = vmatpush1.bf16.msra.mxu1 %v7971_v17  ;;  %v8043_v17 = vld [vmem:[#allocation6 + $0xa94] ss:$24 sps:$4 sm:$0xff]  }
 0x3f5   :  { %4603 = vmatprep.subr.bf16.mxu1 %v7976_v18 }
 0x3f8   :  { %4604 = vmatpush1.bf16.msra.mxu1 %v7974_v19  ;;  %v8041_v19 = vld [vmem:[#allocation6 + $0xa90] ss:$24 sps:$4 sm:$0xff]  }
 0x3f9   :  { %4605 = vmatprep.subr.bf16.mxu1 %v7979_v7  ;;  %v8044_v7 = vld [vmem:[#allocation7 + $0x1a0] ss:$12 sps:$4 sm:$0xff]  }
 0x3fc   :  { %4606 = vmatpush1.bf16.msra.mxu1 %v7977_v20  ;;  %v8045_v20 = vld [vmem:[#allocation7 + $0x278] ss:$12 sps:$4 sm:$0xff]  }
 0x3fd   :  { %4607 = vmatprep.subr.bf16.mxu1 %v7982_v9  ;;  %v8048_v9 = vld [vmem:[#allocation6 + $0xac4] ss:$24 sps:$4 sm:$0xff]  }
 0x400   :  { %4608 = vmatpush1.bf16.msra.mxu1 %v7980_v21  ;;  %v8046_v21 = vld [vmem:[#allocation6 + $0xac0] ss:$24 sps:$4 sm:$0xff]  }
 0x401   :  { %4609 = vmatprep.subr.bf16.mxu1 %v7985_v22  ;;  %v8049_v22 = vld [vmem:[#allocation7 + $0x1b8] ss:$12 sps:$4 sm:$0xff]  }
 0x404   :  { %4610 = vmatpush1.bf16.msra.mxu1 %v7983_v26  ;;  %v8050_v26 = vld [vmem:[#allocation7 + $0x290] ss:$12 sps:$4 sm:$0xff]  }
 0x405   :  { %4611 = vmatprep.subr.bf16.mxu1 %v7988_v24  ;;  %v8053_v24 = vld [vmem:[#allocation6 + $0xaf4] ss:$24 sps:$4 sm:$0xff]  }
 0x408   :  { %4612 = vmatpush1.bf16.msra.mxu1 %v7986_v25  ;;  %v8051_v25 = vld [vmem:[#allocation6 + $0xaf0] ss:$24 sps:$4 sm:$0xff]  }
 0x409   :  { %4613 = vmatprep.subr.bf16.mxu1 %v7991_v27  ;;  %v8054_v27 = vld [vmem:[#allocation7 + $0x1d0] ss:$12 sps:$4 sm:$0xff]  }
 0x40c   :  { %4614 = vmatpush1.bf16.msra.mxu1 %v7989_v28  ;;  %v8055_v28 = vld [vmem:[#allocation7 + $0x2a8] ss:$12 sps:$4 sm:$0xff]  }
 0x40d   :  { %4615 = vmatprep.subr.bf16.mxu1 %v7994_v29  ;;  %v8058_v29 = vld [vmem:[#allocation6 + $0xb24] ss:$24 sps:$4 sm:$0xff]  }
 0x410   :  { %4616 = vmatpush1.bf16.msra.mxu1 %v7992_v30  ;;  %v8056_v30 = vld [vmem:[#allocation6 + $0xb20] ss:$24 sps:$4 sm:$0xff]  }
 0x411   :  { %4617 = vmatprep.subr.bf16.mxu1 %v7998_v31  ;;  %v8059_v31 = vld [vmem:[#allocation7 + $0x1e8] ss:$12 sps:$4 sm:$0xff]  }
 0x414   :  { %4618 = vmatpush1.bf16.msra.mxu1 %v7996_v32  ;;  %v8060_v32 = vld [vmem:[#allocation7 + $0x2c0] ss:$12 sps:$4 sm:$0xff]  }
 0x415   :  { %4628 = vmatprep.subr.bf16.mxu1 %v8003_v48  ;;  %v8063_v48 = vld [vmem:[#allocation6 + $0xb54] ss:$24 sps:$4 sm:$0xff]  }
 0x417   :  { %4620 = vmatmul.mubr.bf16.vlgmr.msra.gmra.mrb[20].mxu1 %v8683_v12  ;;  %v8028_v12 = vld [vmem:[#allocation6 + $0xa04] ss:$24 sps:$4 sm:$0xff]  }
 0x418   :  { %4629 = vmatpush1.bf16.msra.mxu1 %v8001_v33  ;;  %4660 = vmatprep.mubr.bf16.mxu1 %v8685_v38  ;;  %v1908_v38 = vrot.slane %v8712_v53, %v8618_v47  ;;  %v8061_v33 = vld [vmem:[#allocation6 + $0xb50] ss:$24 sps:$4 sm:$0xff]  }
 0x419   :  { %4630 = vmatprep.subr.bf16.mxu1 %v8008_v3  ;;  %v8064_v3 = vld [vmem:[#allocation7 + $0x200] ss:$12 sps:$4 sm:$0xff]  }
 0x41c   :  { %4631 = vmatpush1.bf16.msra.mxu1 %v8006_v55  ;;  %v1916_v55 = vrot.slane %v8712_v53, %v846_v10  ;;  %v8077_v10 = vld [vmem:[#allocation6 + $0xbe4] ss:$24 sps:$4 sm:$0xff]  }
 0x41d   :  { %4632 = vmatprep.subr.bf16.mxu1 %v8013_v39  ;;  %v8065_v39 = vld [vmem:[#allocation7 + $0x2d8] ss:$12 sps:$4 sm:$0xff]  }
 0x420   :  { %4633 = vmatpush1.bf16.msra.mxu1 %v8011_v35  ;;  %v8068_v35 = vld [vmem:[#allocation6 + $0xb84] ss:$24 sps:$4 sm:$0xff]  }
 0x421   :  { %4634 = vmatprep.subr.bf16.mxu1 %v8018_v37  ;;  %v8066_v37 = vld [vmem:[#allocation6 + $0xb80] ss:$24 sps:$4 sm:$0xff]  }
 0x424   :  { %4635 = vmatpush1.bf16.msra.mxu1 %v8016_v45  ;;  %v8069_v45 = vld [vmem:[#allocation7 + $0x218] ss:$12 sps:$4 sm:$0xff]  }
 0x425   :  { %4636 = vmatprep.subr.bf16.mxu1 %v8023_v51 }
 0x428   :  { %4637 = vmatpush1.bf16.msra.mxu1 %v8021_v52  ;;  %v8070_v52 = vld [vmem:[#allocation7 + $0x2f0] ss:$12 sps:$4 sm:$0xff]  }
 0x429   :  { %4638 = vmatprep.subr.bf16.mxu1 %v8028_v12  ;;  %v8073_v12 = vld [vmem:[#allocation6 + $0xbb4] ss:$24 sps:$4 sm:$0xff]  }
 0x42a   :  { %v4293_v59 = vpop.f32.mrb[16].mxu1 }
 0x42b   :  { %v7166_v60 = vadd.f32 %v4293_v59, %v1908_v38  ;;  %v8721_v61 = vpop.f32.mrb[20].mxu0  ;;  %v4295_v62 = vpop.f32.mrb[17].mxu1  ;;  %v8071_v38 = vld [vmem:[#allocation6 + $0xbb0] ss:$24 sps:$4 sm:$0xff]   ;;  %v8080_v59 = vld [vmem:[#allocation6 + $0xc14] ss:$24 sps:$4 sm:$0xff]  }
 0x42c   :  { %v7167_v63 = vadd.f32 %v4295_v62, %v1912_v54  ;;  %v4500_v0 = vpop.f32.mrb[21].mxu0  ;;  %v4297_v1 = vpop.f32.mrb[18].mxu1  ;;  %4639 = vmatpush1.bf16.msra.mxu1 %v8026_v56  ;;  %v7168_v51 = vadd.f32 %v8721_v61, %v1916_v55  ;;  %v8074_v54 = vld [vmem:[#allocation7 + $0x230] ss:$12 sps:$4 sm:$0xff]   ;;  %v8081_v62 = vld [vmem:[#allocation6 + $0xc40] ss:$24 sps:$4 sm:$0xff]  }
 0x42d   :  { %v8723_v2 = vmax.f32 %v7166_v60, 0.0  ;;  %v7169_v4 = vadd.f32 %v4500_v0, %v1920_v57  ;;  %v4502_v6 = vpop.f32.mrb[22].mxu0  ;;  %v4298_v8 = vpop.f32.mrb[19].mxu1  ;;  %4640 = vmatprep.subr.bf16.mxu1 %v8033_v58  ;;  %v8075_v57 = vld [vmem:[#allocation6 + $0xbe0] ss:$24 sps:$4 sm:$0xff]  }
 0x42e   :  { %v8725_v50 = vmax.f32 %v7167_v63, 0.0  ;;  %v4503_v11 = vpop.f32.mrb[23].mxu0  ;;  %v8739_v56 = vmax.f32 %v7168_v51, 0.0  ;;  %v8078_v60 = vld [vmem:[#allocation6 + $0xc10] ss:$24 sps:$4 sm:$0xff]   ;;  %v1928_v51 = vrot.slane %v8712_v53, %v858_v13 }
 0x42f   :  { %v8727_v34 = vmax.f32 %v7169_v4, 0.0  ;;  %v4812_v43 = vpack.c.bf16 %v8723_v2, %v8723_v2  ;;  %v8083_v61 = vld [vmem:[#allocation6 + $0xc44] ss:$24 sps:$4 sm:$0xff]   ;;  %v8086_v63 = vld [vmem:[#allocation6 + $0xc74] ss:$24 sps:$4 sm:$0xff]  }
 0x430   :  { %v4813_v14 = vpack.c.bf16 %v8725_v50, %v8725_v50  ;;  %4641 = vmatpush1.bf16.msra.mxu1 %v8031_v40  ;;  %v4814_v58 = vpack.c.bf16 %v8739_v56, %v8739_v56  ;;  %v8084_v0 = vld [vmem:[#allocation6 + $0xc70] ss:$24 sps:$4 sm:$0xff]   ;;  %v8089_v1 = vld [vmem:[#allocation6 + $0xca4] ss:$24 sps:$4 sm:$0xff]   ;;  %v8087_v40 = vld [vmem:[#allocation6 + $0xca0] ss:$24 sps:$4 sm:$0xff]  }
 0x431   :  { %4642 = vmatprep.subr.bf16.mxu1 %v8038_v5  ;;  %v4815_v18 = vpack.c.bf16 %v8727_v34, %v8727_v34  ;;  %v8092_v4 = vld [vmem:[#allocation6 + $0xcd4] ss:$24 sps:$4 sm:$0xff]   ;;  %v8090_v6 = vld [vmem:[#allocation6 + $0xcd0] ss:$24 sps:$4 sm:$0xff]   ;;  %v8095_v8 = vld [vmem:[#allocation6 + $0xd04] ss:$24 sps:$4 sm:$0xff]  }
 0x432   :  { %5145 = vmatprep.mubr.bf16.mxu0 %v4813_v14  ;;  %v8098_v5 = vld [vmem:[#allocation6 + $0xd34] ss:$24 sps:$4 sm:$0xff]   ;;  %v8101_v11 = vld [vmem:[#allocation6 + $0xd64] ss:$24 sps:$4 sm:$0xff]   ;;  %v8099_v14 = vld [vmem:[#allocation6 + $0xd60] ss:$24 sps:$4 sm:$0xff]  }
 0x433   :  { %5146 = vmatmul.mubr.bf16.vlgmr.msra.gmra.mrb[24].mxu0 %v4812_v43  ;;  %v8104_v43 = vld [vmem:[#allocation7 + $0x3e0] ss:$12 sps:$4 sm:$0xff]  }
 0x434   :  { %7061 = vmatpush3.bf16.msra.mxu0 %v8039_v15  ;;  %4643 = vmatpush1.bf16.msra.mxu1 %v8036_v42  ;;  %v8102_v42 = vld [vmem:[#allocation7 + $0x3c8] ss:$12 sps:$4 sm:$0xff]  }
 0x435   :  { %5185 = vmatprep.mubr.bf16.mxu0 %v4815_v18  ;;  %7062 = vmatprep.subr.bf16.mxu0 %v8040_v16  ;;  %v8103_v15 = vld [vmem:[#allocation7 + $0x308] ss:$12 sps:$4 sm:$0xff]   ;;  %v8105_v16 = vld [vmem:[#allocation7 + $0x320] ss:$12 sps:$4 sm:$0xff]   ;;  %v8107_v18 = vld [vmem:[#allocation7 + $0x338] ss:$12 sps:$4 sm:$0xff]  }
 0x436   :  { %4644 = vmatprep.subr.bf16.mxu1 %v8043_v17  ;;  %v8106_v17 = vld [vmem:[#allocation7 + $0x3f8] ss:$12 sps:$4 sm:$0xff]  }
 0x438   :  { %7063 = vmatpush3.bf16.msra.mxu0 %v8044_v7  ;;  %4645 = vmatpush1.bf16.msra.mxu1 %v8041_v19  ;;  %v8108_v19 = vld [vmem:[#allocation7 + $0x410] ss:$12 sps:$4 sm:$0xff]  }
 0x439   :  { %7064 = vmatprep.subr.bf16.mxu0 %v8045_v20  ;;  %4646 = vmatprep.subr.bf16.mxu1 %v8048_v9  ;;  %v8109_v7 = vld [vmem:[#allocation7 + $0x350] ss:$12 sps:$4 sm:$0xff]   ;;  %v8110_v20 = vld [vmem:[#allocation7 + $0x428] ss:$12 sps:$4 sm:$0xff]  }
 0x43a   :  { %v8111_v9 = vld [vmem:[#allocation7 + $0x368] ss:$12 sps:$4 sm:$0xff]  }
 0x43c   :  { %7065 = vmatpush3.bf16.msra.mxu0 %v8049_v22  ;;  %4647 = vmatpush1.bf16.msra.mxu1 %v8046_v21  ;;  %v8113_v21 = vld [vmem:[#allocation7 + $0x380] ss:$12 sps:$4 sm:$0xff]   ;;  %v8114_v22 = vld [vmem:[#allocation7 + $0x458] ss:$12 sps:$4 sm:$0xff]  }
 0x43d   :  { %7066 = vmatprep.subr.bf16.mxu0 %v8050_v26  ;;  %4648 = vmatprep.subr.bf16.mxu1 %v8053_v24  ;;  %v8115_v26 = vld [vmem:[#allocation7 + $0x398] ss:$12 sps:$4 sm:$0xff]   ;;  %v8116_v24 = vld [vmem:[#allocation7 + $0x470] ss:$12 sps:$4 sm:$0xff]  }
 0x440   :  { %7067 = vmatpush3.bf16.msra.mxu0 %v8054_v27  ;;  %4649 = vmatpush1.bf16.msra.mxu1 %v8051_v25  ;;  %v8117_v25 = vld [vmem:[#allocation7 + $0x3b0] ss:$12 sps:$4 sm:$0xff]  }
 0x441   :  { %7068 = vmatprep.subr.bf16.mxu0 %v8055_v28  ;;  %4650 = vmatprep.subr.bf16.mxu1 %v8058_v29 }
 0x444   :  { %7069 = vmatpush3.bf16.msra.mxu0 %v8059_v31  ;;  %4651 = vmatpush1.bf16.msra.mxu1 %v8056_v30 }
 0x445   :  { %7070 = vmatprep.subr.bf16.mxu0 %v8060_v32  ;;  %4652 = vmatprep.subr.bf16.mxu1 %v8063_v48  ;;  %v6792_v32 = vld [vmem:[#allocation10 + $0xf] ss:$0 sm:$0xff] }
 0x448   :  { %7071 = vmatpush3.bf16.msra.mxu0 %v8064_v3  ;;  %4653 = vmatpush1.bf16.msra.mxu1 %v8061_v33 }
 0x449   :  { %7072 = vmatprep.subr.bf16.mxu0 %v8065_v39  ;;  %4654 = vmatprep.subr.bf16.mxu1 %v8068_v35 }
 0x44c   :  { %7073 = vmatpush3.bf16.msra.mxu0 %v8069_v45  ;;  %4655 = vmatpush1.bf16.msra.mxu1 %v8066_v37  ;;  %v1924_v45 = vrot.slane %v8712_v53, %v854_v44 }
 0x44d   :  { %7074 = vmatprep.subr.bf16.mxu0 %v8070_v52  ;;  %4656 = vmatprep.subr.bf16.mxu1 %v8073_v12 }
 0x450   :  { %7075 = vmatpush3.bf16.msra.mxu0 %v8074_v54  ;;  %4657 = vmatpush1.bf16.msra.mxu1 %v8071_v38 }
 0x451   :  { %4658 = vmatprep.subr.bf16.mxu1 %v8077_v10  ;;  %7082 = vmatprep.subr.bf16.mxu0 %v8102_v42  ;;  %v8126_v42 = vld [vmem:[#allocation7 + $0x34] ss:$12 sps:$4 sm:$0xff]  }
 0x453   :  { %5186 = vmatmul.mubr.bf16.vlgmr.msra.gmra.mrb[28].mxu0 %v4814_v58 }
 0x454   :  { %4659 = vmatpush1.bf16.msra.mxu1 %v8075_v57  ;;  %7083 = vmatpush3.bf16.msra.mxu0 %v8103_v15  ;;  %v8124_v15 = vld [vmem:[#allocation7 + $0x30] ss:$12 sps:$4 sm:$0xff]  }
 0x455   :  { %4669 = vmatprep.subr.bf16.mxu1 %v8080_v59  ;;  %7084 = vmatprep.subr.bf16.mxu0 %v8104_v43  ;;  %v8129_v43 = vld [vmem:[#allocation7 + $0x4c] ss:$12 sps:$4 sm:$0xff]  }
 0x457   :  { %4661 = vmatmul.mubr.bf16.vlgmr.msra.gmra.mrb[20].mxu1 %v8694_v41  ;;  %v8093_v41 = vld [vmem:[#allocation6 + $0xd00] ss:$24 sps:$4 sm:$0xff]  }
 0x458   :  { %4670 = vmatpush1.bf16.msra.mxu1 %v8078_v60  ;;  %4701 = vmatprep.mubr.bf16.mxu1 %v8440_v36  ;;  %v8096_v36 = vld [vmem:[#allocation6 + $0xd30] ss:$24 sps:$4 sm:$0xff]  }
 0x459   :  { %4671 = vmatprep.subr.bf16.mxu1 %v8083_v61  ;;  %7085 = vmatpush3.bf16.msra.mxu0 %v8105_v16  ;;  %v8127_v16 = vld [vmem:[#allocation7 + $0x48] ss:$12 sps:$4 sm:$0xff]  }
 0x45a   :  { %7086 = vmatprep.subr.bf16.mxu0 %v8106_v17  ;;  %v8132_v17 = vld [vmem:[#allocation7 + $0x64] ss:$12 sps:$4 sm:$0xff]  }
 0x45c   :  { %4672 = vmatpush1.bf16.msra.mxu1 %v8081_v62 }
 0x45d   :  { %4673 = vmatprep.subr.bf16.mxu1 %v8086_v63  ;;  %7087 = vmatpush3.bf16.msra.mxu0 %v8107_v18  ;;  %v8130_v18 = vld [vmem:[#allocation7 + $0x60] ss:$12 sps:$4 sm:$0xff]  }
 0x45e   :  { %7088 = vmatprep.subr.bf16.mxu0 %v8108_v19  ;;  %v8135_v19 = vld [vmem:[#allocation7 + $0x7c] ss:$12 sps:$4 sm:$0xff]  }
 0x460   :  { %4674 = vmatpush1.bf16.msra.mxu1 %v8084_v0 }
 0x461   :  { %4675 = vmatprep.subr.bf16.mxu1 %v8089_v1  ;;  %7089 = vmatpush3.bf16.msra.mxu0 %v8109_v7  ;;  %v8133_v7 = vld [vmem:[#allocation7 + $0x78] ss:$12 sps:$4 sm:$0xff]  }
 0x462   :  { %7090 = vmatprep.subr.bf16.mxu0 %v8110_v20  ;;  %v8138_v20 = vld [vmem:[#allocation7 + $0x94] ss:$12 sps:$4 sm:$0xff]  }
 0x464   :  { %4676 = vmatpush1.bf16.msra.mxu1 %v8087_v40 }
 0x465   :  { %4677 = vmatprep.subr.bf16.mxu1 %v8092_v4  ;;  %7091 = vmatpush3.bf16.msra.mxu0 %v8111_v9  ;;  %v8136_v9 = vld [vmem:[#allocation7 + $0x90] ss:$12 sps:$4 sm:$0xff]  }
 0x468   :  { %4678 = vmatpush1.bf16.msra.mxu1 %v8090_v6 }
 0x469   :  { %4679 = vmatprep.subr.bf16.mxu1 %v8095_v8 }
 0x46c   :  { %4680 = vmatpush1.bf16.msra.mxu1 %v8093_v41  ;;  %v8441_v41 = vmov 3  }
 0x46d   :  { %4681 = vmatprep.subr.bf16.mxu1 %v8098_v5  ;;  %7253 = vset.pattern.permute.xlu0 %v8441_v41  ;;  %v8118_v5 = vld [vmem:[#allocation7] ss:$12 sps:$4 sm:$0xff]  }
 0x46e   :  { %v8177_v41 = vld [vmem:[#allocation7 + $0x1cc] ss:$12 sps:$4 sm:$0xff]  }
 0x470   :  { %4682 = vmatpush1.bf16.msra.mxu1 %v8096_v36  ;;  %v8120_v36 = vld [vmem:[#allocation7 + $0x4] ss:$12 sps:$4 sm:$0xff]  }
 0x471   :  { %4683 = vmatprep.subr.bf16.mxu1 %v8101_v11  ;;  %v8123_v11 = vld [vmem:[#allocation7 + $0x1c] ss:$12 sps:$4 sm:$0xff]  }
 0x474   :  { %4684 = vmatpush1.bf16.msra.mxu1 %v8099_v14  ;;  %v8121_v14 = vld [vmem:[#allocation7 + $0x18] ss:$12 sps:$4 sm:$0xff]  }
 0x477   :  { %4702 = vmatmul.mubr.bf16.vlgmr.msra.gmra.mrb[20].mxu1 %v8701_v23  ;;  %v8112_v23 = vld [vmem:[#allocation7 + $0x440] ss:$12 sps:$4 sm:$0xff]  }
 0x478   :  { %7092 = vmatprep.subr.bf16.mxu0 %v8112_v23  ;;  %v8141_v23 = vld [vmem:[#allocation7 + $0xac] ss:$12 sps:$4 sm:$0xff]  }
 0x479   :  { %7093 = vmatpush3.bf16.msra.mxu0 %v8113_v21  ;;  %v8139_v21 = vld [vmem:[#allocation7 + $0xa8] ss:$12 sps:$4 sm:$0xff]  }
 0x47a   :  { %7094 = vmatprep.subr.bf16.mxu0 %v8114_v22  ;;  %v8144_v22 = vld [vmem:[#allocation7 + $0xc4] ss:$12 sps:$4 sm:$0xff]  }
 0x47d   :  { %7095 = vmatpush3.bf16.msra.mxu0 %v8115_v26  ;;  %v8142_v26 = vld [vmem:[#allocation7 + $0xc0] ss:$12 sps:$4 sm:$0xff]  }
 0x47e   :  { %7096 = vmatprep.subr.bf16.mxu0 %v8116_v24  ;;  %v8147_v24 = vld [vmem:[#allocation7 + $0xdc] ss:$12 sps:$4 sm:$0xff]  }
 0x481   :  { %7097 = vmatpush3.bf16.msra.mxu0 %v8117_v25  ;;  %v8145_v25 = vld [vmem:[#allocation7 + $0xd8] ss:$12 sps:$4 sm:$0xff]  }
 0x482   :  { %5905 = vmatprep.subr.bf16.mxu0 %v8120_v36  ;;  %v8175_v36 = vld [vmem:[#allocation7 + $0x1c8] ss:$12 sps:$4 sm:$0xff]  }
 0x506   :  { %v7054_v27 = vpop.f32.mrb[24].mxu0 }
 0x507   :  { %v7055_v28 = vpop.f32.mrb[25].mxu0 }
 0x508   :  { %v7056_v29 = vadd.f32 %v7055_v28, %v7054_v27  ;;  %v7057_v30 = vpop.f32.mrb[26].mxu0  ;;  %v8150_v27 = vld [vmem:[#allocation7 + $0xf4] ss:$12 sps:$4 sm:$0xff]   ;;  %v8148_v28 = vld [vmem:[#allocation7 + $0xf0] ss:$12 sps:$4 sm:$0xff]  }
 0x509   :  { %v7058_v31 = vpop.f32.mrb[27].mxu0  ;;  %v8151_v30 = vld [vmem:[#allocation7 + $0x108] ss:$12 sps:$4 sm:$0xff]  }
 0x50a   :  { %v5148_v3 = vadd.f32 %v7056_v29, %v6792_v32  ;;  %v8153_v29 = vld [vmem:[#allocation7 + $0x10c] ss:$12 sps:$4 sm:$0xff]   ;;  %v8156_v31 = vld [vmem:[#allocation7 + $0x124] ss:$12 sps:$4 sm:$0xff]  }
 0x50b   :  { %v8154_v32 = vld [vmem:[#allocation7 + $0x120] ss:$12 sps:$4 sm:$0xff]  }
 0x526   :  { %v7076_v48 = vpop.f32.mrb[28].mxu0 }
 0x527   :  { %v7077_v33 = vpop.f32.mrb[29].mxu0 }
 0x528   :  { %v7078_v55 = vadd.f32 %v7077_v33, %v7076_v48  ;;  %v7079_v39 = vpop.f32.mrb[30].mxu0  ;;  %v8159_v48 = vld [vmem:[#allocation7 + $0x13c] ss:$12 sps:$4 sm:$0xff]   ;;  %v8157_v33 = vld [vmem:[#allocation7 + $0x138] ss:$12 sps:$4 sm:$0xff]  }
 0x529   :  { %v7080_v35 = vpop.f32.mrb[31].mxu0 }
 0x52a   :  { %v5188_v37 = vadd.f32 %v7078_v55, %v5148_v3  ;;  %v8162_v3 = vld [vmem:[#allocation7 + $0x154] ss:$12 sps:$4 sm:$0xff]   ;;  %v8160_v55 = vld [vmem:[#allocation7 + $0x150] ss:$12 sps:$4 sm:$0xff]  }
 0x54a   :  { %v4703_v52 = vpop.f32.mrb[20].mxu1 }
 0x54b   :  { %v7170_v12 = vadd.f32 %v4703_v52, %v1924_v45  ;;  %v4705_v38 = vpop.f32.mrb[21].mxu1  ;;  %v8165_v45 = vld [vmem:[#allocation7 + $0x16c] ss:$12 sps:$4 sm:$0xff]   ;;  %v8442_v52 = vmov 1  }
 0x54c   :  { %v7171_v54 = vadd.f32 %v4705_v38, %v1928_v51  ;;  %v4707_v10 = vpop.f32.mrb[22].mxu1  ;;  %v8163_v51 = vld [vmem:[#allocation7 + $0x168] ss:$12 sps:$4 sm:$0xff]   ;;  %v8443_v38 = vmov 2  }
 0x54d   :  { %v8752_v57 = vmax.f32 %v7170_v12, 0.0  ;;  %v4708_v58 = vpop.f32.mrb[23].mxu1  ;;  %v8168_v12 = vld [vmem:[#allocation7 + $0x184] ss:$12 sps:$4 sm:$0xff]  }
 0x54e   :  { %v8754_v59 = vmax.f32 %v7171_v54, 0.0 }
 0x54f   :  { %v4816_v44 = vpack.c.bf16 %v8752_v57, %v8752_v57 }
 0x550   :  { %v4817_v60 = vpack.c.bf16 %v8754_v59, %v8754_v59 }
 0x552   :  { %5225 = vmatprep.mubr.bf16.mxu0 %v4817_v60 }
 0x553   :  { %5226 = vmatmul.mubr.bf16.vlgmr.msra.gmra.mrb[32].mxu0 %v4816_v44 }
 0x554   :  { %5906 = vmatpush1.bf16.msra.mxu0 %v8118_v5  ;;  %v8268_v5 = vld [vmem:[#allocation9 + $0x58] sm:$0xff]  }
 0x555   :  { %5907 = vmatprep.subr.bf16.mxu0 %v8123_v11  ;;  %v8180_v11 = vld [vmem:[#allocation7 + $0x1e4] ss:$12 sps:$4 sm:$0xff]  }
 0x558   :  { %5908 = vmatpush1.bf16.msra.mxu0 %v8121_v14  ;;  %v8269_v14 = vld [vmem:[#allocation9 + $0x18] sm:$0xff]  }
 0x559   :  { %5909 = vmatprep.subr.bf16.mxu0 %v8126_v42  ;;  %v8270_v42 = vld [vmem:[#allocation9 + $0x60] sm:$0xff]  }
 0x55c   :  { %5910 = vmatpush1.bf16.msra.mxu0 %v8124_v15  ;;  %v8178_v15 = vld [vmem:[#allocation7 + $0x1e0] ss:$12 sps:$4 sm:$0xff]  }
 0x55d   :  { %5911 = vmatprep.subr.bf16.mxu0 %v8129_v43  ;;  %v8183_v43 = vld [vmem:[#allocation7 + $0x1fc] ss:$12 sps:$4 sm:$0xff]  }
 0x560   :  { %5912 = vmatpush1.bf16.msra.mxu0 %v8127_v16  ;;  %v8271_v16 = vld [vmem:[#allocation9 + $0x20] sm:$0xff]  }
 0x561   :  { %5913 = vmatprep.subr.bf16.mxu0 %v8132_v17  ;;  %v8272_v17 = vld [vmem:[#allocation9 + $0x68] sm:$0xff]  }
 0x564   :  { %5914 = vmatpush1.bf16.msra.mxu0 %v8130_v18  ;;  %v8181_v18 = vld [vmem:[#allocation7 + $0x1f8] ss:$12 sps:$4 sm:$0xff]  }
 0x565   :  { %5915 = vmatprep.subr.bf16.mxu0 %v8135_v19  ;;  %v8186_v19 = vld [vmem:[#allocation7 + $0x214] ss:$12 sps:$4 sm:$0xff]  }
 0x568   :  { %5916 = vmatpush1.bf16.msra.mxu0 %v8133_v7  ;;  %v8273_v7 = vld [vmem:[#allocation9 + $0x28] sm:$0xff]  }
 0x569   :  { %5917 = vmatprep.subr.bf16.mxu0 %v8138_v20  ;;  %v8184_v20 = vld [vmem:[#allocation7 + $0x210] ss:$12 sps:$4 sm:$0xff]  }
 0x56c   :  { %5918 = vmatpush1.bf16.msra.mxu0 %v8136_v9  ;;  %v8189_v9 = vld [vmem:[#allocation7 + $0x22c] ss:$12 sps:$4 sm:$0xff]  }
 0x56d   :  { %5919 = vmatprep.subr.bf16.mxu0 %v8141_v23  ;;  %v8187_v23 = vld [vmem:[#allocation7 + $0x228] ss:$12 sps:$4 sm:$0xff]  }
 0x570   :  { %5920 = vmatpush1.bf16.msra.mxu0 %v8139_v21  ;;  %v8192_v21 = vld [vmem:[#allocation7 + $0x244] ss:$12 sps:$4 sm:$0xff]  }
 0x571   :  { %5921 = vmatprep.subr.bf16.mxu0 %v8144_v22  ;;  %v8190_v22 = vld [vmem:[#allocation7 + $0x240] ss:$12 sps:$4 sm:$0xff]  }
 0x574   :  { %5922 = vmatpush1.bf16.msra.mxu0 %v8142_v26  ;;  %v8195_v26 = vld [vmem:[#allocation7 + $0x25c] ss:$12 sps:$4 sm:$0xff]  }
 0x575   :  { %5923 = vmatprep.subr.bf16.mxu0 %v8147_v24  ;;  %v8193_v24 = vld [vmem:[#allocation7 + $0x258] ss:$12 sps:$4 sm:$0xff]  }
 0x578   :  { %5924 = vmatpush1.bf16.msra.mxu0 %v8145_v25  ;;  %v8198_v25 = vld [vmem:[#allocation7 + $0x274] ss:$12 sps:$4 sm:$0xff]  }
 0x579   :  { %5925 = vmatprep.subr.bf16.mxu0 %v8150_v27  ;;  %v8196_v27 = vld [vmem:[#allocation7 + $0x270] ss:$12 sps:$4 sm:$0xff]  }
 0x57c   :  { %5926 = vmatpush1.bf16.msra.mxu0 %v8148_v28  ;;  %v8201_v28 = vld [vmem:[#allocation7 + $0x28c] ss:$12 sps:$4 sm:$0xff]  }
 0x57d   :  { %5927 = vmatprep.subr.bf16.mxu0 %v8153_v29  ;;  %v8199_v29 = vld [vmem:[#allocation7 + $0x288] ss:$12 sps:$4 sm:$0xff]  }
 0x580   :  { %5928 = vmatpush1.bf16.msra.mxu0 %v8151_v30  ;;  %v8204_v30 = vld [vmem:[#allocation7 + $0x2a4] ss:$12 sps:$4 sm:$0xff]  }
 0x581   :  { %5929 = vmatprep.subr.bf16.mxu0 %v8156_v31  ;;  %v8202_v31 = vld [vmem:[#allocation7 + $0x2a0] ss:$12 sps:$4 sm:$0xff]  }
 0x584   :  { %5930 = vmatpush1.bf16.msra.mxu0 %v8154_v32  ;;  %v8207_v32 = vld [vmem:[#allocation7 + $0x2bc] ss:$12 sps:$4 sm:$0xff]  }
 0x585   :  { %5931 = vmatprep.subr.bf16.mxu0 %v8159_v48  ;;  %v8205_v48 = vld [vmem:[#allocation7 + $0x2b8] ss:$12 sps:$4 sm:$0xff]  }
 0x588   :  { %5932 = vmatpush1.bf16.msra.mxu0 %v8157_v33  ;;  %v8210_v33 = vld [vmem:[#allocation7 + $0x2d4] ss:$12 sps:$4 sm:$0xff]  }
 0x589   :  { %5933 = vmatprep.subr.bf16.mxu0 %v8162_v3  ;;  %v8208_v3 = vld [vmem:[#allocation7 + $0x2d0] ss:$12 sps:$4 sm:$0xff]  }
 0x58c   :  { %5934 = vmatpush1.bf16.msra.mxu0 %v8160_v55  ;;  %v8213_v55 = vld [vmem:[#allocation7 + $0x2ec] ss:$12 sps:$4 sm:$0xff]  }
 0x58d   :  { %5935 = vmatprep.subr.bf16.mxu0 %v8165_v45  ;;  %v8216_v45 = vld [vmem:[#allocation7 + $0x304] ss:$12 sps:$4 sm:$0xff]  }
 0x590   :  { %5936 = vmatpush1.bf16.msra.mxu0 %v8163_v51 }
 0x591   :  { %5946 = vmatprep.subr.bf16.mxu0 %v8168_v12 }
 0x626   :  { %v7098_v46 = vpop.f32.mrb[32].mxu0 }
 0x627   :  { %v7099_v13 = vpop.f32.mrb[33].mxu0 }
 0x628   :  { %v7100_v53 = vadd.f32 %v7099_v13, %v7098_v46  ;;  %v7101_v61 = vpop.f32.mrb[34].mxu0  ;;  %v8166_v46 = vld [vmem:[#allocation7 + $0x180] ss:$12 sps:$4 sm:$0xff]   ;;  %v8171_v13 = vld [vmem:[#allocation7 + $0x19c] ss:$12 sps:$4 sm:$0xff]  }
 0x629   :  { %v7102_v62 = vpop.f32.mrb[35].mxu0 }
 0x62a   :  { %v8760_v63 = vadd.f32 %v7100_v53, %v5188_v37  ;;  %v8262_v62 = vld [vmem:[#allocation9 + $0x40] sm:$0xff]  }
 0x62b   :  { %7104 = vmatprep.subr.bf16.mxu1 %v8262_v62  ;;  %v8232_v62 = vld [vmem:[#allocation7 + $0x390] ss:$12 sps:$4 sm:$0xff]  }
 0x62c   :  { %v5234_v0 = vsel %vm5233_vm1, %v8760_v63, -inf }
 0x62d   :  { %5235 = vmax.xlane.f32.xlu0 %v5234_v0  ;;  %v8263_v0 = vld [vmem:[#allocation9] sm:$0xff]  }
 0x62e   :  { %7105 = vmatpush3.bf16.msra.mxu1 %v8263_v0  ;;  %v8237_v0 = vld [vmem:[#allocation7 + $0x3ac] ss:$12 sps:$4 sm:$0xff]  }
 0x6ba   :  { %v5236_v1 = vpop.xlane.xlu0 %5235 }
 0x6bb   :  { %v5237_v40 = vsub.f32 %v8760_v63, %v5236_v1  ;;  %v8264_v1 = vld [vmem:[#allocation9 + $0x48] sm:$0xff]  }
 0x6bc   :  { %7106 = vmatprep.subr.bf16.mxu1 %v8264_v1  ;;  %v8235_v1 = vld [vmem:[#allocation7 + $0x3a8] ss:$12 sps:$4 sm:$0xff]  }
 0x6bd   :  { %v5238_v4 = vmul.f32 1.442695, %v5237_v40  ;;  %v8169_v40 = vld [vmem:[#allocation7 + $0x198] ss:$12 sps:$4 sm:$0xff]  }
 0x6bf   :  { %8280 = vpow2.f32 %v5238_v4 }
 0x6c9   :  { %v8765_v6 = vpop.eup %8280 }
 0x6ca   :  { %v5240_v8 = vsel %vm5233_vm1, %v8765_v6, 0.0 }
 0x6cb   :  { %5241 = vadd.xlane.f32.xlu0 %v5240_v8  ;;  %v8172_v8 = vld [vmem:[#allocation7 + $0x1b0] ss:$12 sps:$4 sm:$0xff]  }
 0x758   :  { %v5242_v39 = vpop.xlane.xlu0 %5241 }
 0x759   :  { %8282 = vrcp.f32 %v5242_v39 }
 0x763   :  { %v8283_v35 = vpop.eup %8282 }
 0x764   :  { %v5244_v37 = vmul.f32 %v8283_v35, %v8765_v6  ;;  %v8266_v6 = vld [vmem:[#allocation9 + $0x50] sm:$0xff]  }
 0x765   :  { %v8211_v35 = vld [vmem:[#allocation7 + $0x2e8] ss:$12 sps:$4 sm:$0xff]  }
 0x766   :  { %5290 = vperm.xlu0 %7253, %v5244_v37   ;;  %5266 = vperm.xlu1 %7251, %v5244_v37  }
 0x76a   :  { %7252 = vset.pattern.permute.xlu1 %v8442_v52  ;;  %v8214_v52 = vld [vmem:[#allocation7 + $0x300] ss:$12 sps:$4 sm:$0xff]  }
 0x76b   :  { %5270 = vperm.xlu1 %7252, %v5244_v37  }
 0x76f   :  { %7254 = vset.pattern.permute.xlu1 %v8443_v38  ;;  %v8219_v38 = vld [vmem:[#allocation7 + $0x31c] ss:$12 sps:$4 sm:$0xff]  }
 0x770   :  { %5286 = vperm.xlu1 %7254, %v5244_v37  }
 0x774   :  { %6207 = vrot.lane.b32.xlu1 %v5244_v37, %s8444_s1 }
 0x7e5   :  { %v5267_v54 = vpop.permute.xlu1 %5266  ;;  %v5291_v39 = vpop.permute.xlu0 %5290 }
 0x7e6   :  { %v5305_v10 = vmul.f32 %v5267_v54, %v8723_v2  ;;  %v5306_v58 = vmul.f32 %v5267_v54, %v8725_v50  ;;  %v8174_v2 = vld [vmem:[#allocation7 + $0x1b4] ss:$12 sps:$4 sm:$0xff]   ;;  %v8265_v50 = vld [vmem:[#allocation9 + $0x8] sm:$0xff]   ;;  %v5310_v51 = vmul.f32 %v5291_v39, %v8754_v59  ;;  %v8228_v59 = vld [vmem:[#allocation7 + $0x364] ss:$12 sps:$4 sm:$0xff]  }
 0x7e7   :  { %7107 = vmatpush3.bf16.msra.mxu1 %v8265_v50  ;;  %v8241_v50 = vld [vmem:[#allocation7 + $0x3d8] ss:$12 sps:$4 sm:$0xff]  }
 0x7e8   :  { %v5407_v60 = vpack.c.bf16 %v5305_v10, %v5305_v10  ;;  %v5408_v44 = vpack.c.bf16 %v5306_v58, %v5306_v58  ;;  %7108 = vmatprep.subr.bf16.mxu1 %v8266_v6  ;;  %v5412_v54 = vpack.c.bf16 %v5310_v51, %v5310_v51  ;;  %v8217_v10 = vld [vmem:[#allocation7 + $0x318] ss:$12 sps:$4 sm:$0xff]   ;;  %v8222_v58 = vld [vmem:[#allocation7 + $0x334] ss:$12 sps:$4 sm:$0xff]  }
 0x7e9   :  { %v8246_v6 = vld [vmem:[#allocation7 + $0x3f4] ss:$12 sps:$4 sm:$0xff]  }
 0x7ea   :  { %5937 = vmatprep.mubr.bf16.mxu0 %v5408_v44  ;;  %v8772_v53 = vpop.permute.xlu1 %5270  ;;  %v8223_v44 = vld [vmem:[#allocation7 + $0x348] ss:$12 sps:$4 sm:$0xff]  }
 0x7eb   :  { %v5308_v61 = vmul.f32 %v8772_v53, %v8727_v34  ;;  %5938 = vmatmul.mubr.bf16.vlgmr.msra.gmra.mrb[36].mxu0 %v5407_v60  ;;  %v8267_v34 = vld [vmem:[#allocation9 + $0x10] sm:$0xff]   ;;  %v5307_v37 = vmul.f32 %v8772_v53, %v8739_v56  ;;  %v8225_v56 = vld [vmem:[#allocation7 + $0x34c] ss:$12 sps:$4 sm:$0xff]  }
 0x7ec   :  { %5947 = vmatpush1.bf16.msra.mxu0 %v8166_v46  ;;  %7109 = vmatpush3.bf16.msra.mxu1 %v8267_v34  ;;  %v8220_v60 = vld [vmem:[#allocation7 + $0x330] ss:$12 sps:$4 sm:$0xff]   ;;  %v8226_v46 = vld [vmem:[#allocation7 + $0x360] ss:$12 sps:$4 sm:$0xff]   ;;  %v8229_v53 = vld [vmem:[#allocation7 + $0x378] ss:$12 sps:$4 sm:$0xff]  }
 0x7ed   :  { %v5410_v4 = vpack.c.bf16 %v5308_v61, %v5308_v61  ;;  %5948 = vmatprep.subr.bf16.mxu0 %v8171_v13  ;;  %7110 = vmatprep.subr.bf16.mxu1 %v8268_v5  ;;  %v5409_v12 = vpack.c.bf16 %v5307_v37, %v5307_v37  ;;  %v8231_v13 = vld [vmem:[#allocation7 + $0x37c] ss:$12 sps:$4 sm:$0xff]   ;;  %v8234_v61 = vld [vmem:[#allocation7 + $0x394] ss:$12 sps:$4 sm:$0xff]   ;;  %v8252_v5 = vld [vmem:[#allocation7 + $0x424] ss:$12 sps:$4 sm:$0xff]  }
 0x7ee   :  { %v8247_v34 = vld [vmem:[#allocation7 + $0x408] ss:$12 sps:$4 sm:$0xff]  }
 0x7ef   :  { %5978 = vmatprep.mubr.bf16.mxu0 %v5410_v4  ;;  %v8238_v4 = vld [vmem:[#allocation7 + $0x3c0] ss:$12 sps:$4 sm:$0xff]  }
 0x7f0   :  { %5949 = vmatpush1.bf16.msra.mxu0 %v8169_v40  ;;  %7111 = vmatpush3.bf16.msra.mxu1 %v8269_v14  ;;  %v8240_v40 = vld [vmem:[#allocation7 + $0x3c4] ss:$12 sps:$4 sm:$0xff]  }
 0x7f1   :  { %5950 = vmatprep.subr.bf16.mxu0 %v8174_v2  ;;  %7112 = vmatprep.subr.bf16.mxu1 %v8270_v42  ;;  %v8243_v2 = vld [vmem:[#allocation7 + $0x3dc] ss:$12 sps:$4 sm:$0xff]   ;;  %v8253_v14 = vld [vmem:[#allocation7 + $0x438] ss:$12 sps:$4 sm:$0xff]   ;;  %v8258_v42 = vld [vmem:[#allocation7 + $0x454] ss:$12 sps:$4 sm:$0xff]  }
 0x7f4   :  { %5951 = vmatpush1.bf16.msra.mxu0 %v8172_v8  ;;  %7113 = vmatpush3.bf16.msra.mxu1 %v8271_v16  ;;  %v8244_v8 = vld [vmem:[#allocation7 + $0x3f0] ss:$12 sps:$4 sm:$0xff]   ;;  %v5287_v16 = vpop.permute.xlu1 %5286 }
 0x7f5   :  { %5952 = vmatprep.subr.bf16.mxu0 %v8177_v41  ;;  %7114 = vmatprep.subr.bf16.mxu1 %v8272_v17  ;;  %v8249_v41 = vld [vmem:[#allocation7 + $0x40c] ss:$12 sps:$4 sm:$0xff]   ;;  %v8259_v17 = vld [vmem:[#allocation7 + $0x468] ss:$12 sps:$4 sm:$0xff]  }
 0x7f8   :  { %5953 = vmatpush1.bf16.msra.mxu0 %v8175_v36  ;;  %7115 = vmatpush3.bf16.msra.mxu1 %v8273_v7  ;;  %v8250_v36 = vld [vmem:[#allocation7 + $0x420] ss:$12 sps:$4 sm:$0xff]   ;;  %v8274_v7 = vld [vmem:[#allocation9 + $0x70] sm:$0xff]  }
 0x7f9   :  { %5954 = vmatprep.subr.bf16.mxu0 %v8180_v11  ;;  %v8255_v11 = vld [vmem:[#allocation7 + $0x43c] ss:$12 sps:$4 sm:$0xff]   ;;  %7116 = vmatprep.subr.bf16.mxu1 %v8274_v7 }
 0x7fc   :  { %5955 = vmatpush1.bf16.msra.mxu0 %v8178_v15  ;;  %v8256_v15 = vld [vmem:[#allocation7 + $0x450] ss:$12 sps:$4 sm:$0xff]  }
 0x7fd   :  { %5956 = vmatprep.subr.bf16.mxu0 %v8183_v43  ;;  %v8261_v43 = vld [vmem:[#allocation7 + $0x46c] ss:$12 sps:$4 sm:$0xff]  }
 0x800   :  { %5957 = vmatpush1.bf16.msra.mxu0 %v8181_v18  ;;  %v5309_v18 = vmul.f32 %v5287_v16, %v8752_v57 }
 0x801   :  { %5958 = vmatprep.subr.bf16.mxu0 %v8186_v19 }
 0x802   :  { %v5411_v19 = vpack.c.bf16 %v5309_v18, %v5309_v18 }
 0x804   :  { %5959 = vmatpush1.bf16.msra.mxu0 %v8184_v20  ;;  %v8275_v20 = vld [vmem:[#allocation9 + $0x30] sm:$0xff]  }
 0x805   :  { %5960 = vmatprep.subr.bf16.mxu0 %v8189_v9  ;;  %7117 = vmatpush3.bf16.msra.mxu1 %v8275_v20  ;;  %v8276_v9 = vld [vmem:[#allocation9 + $0x78] sm:$0xff]  }
 0x806   :  { %7118 = vmatprep.subr.bf16.mxu1 %v8276_v9 }
 0x808   :  { %5961 = vmatpush1.bf16.msra.mxu0 %v8187_v23  ;;  %v8277_v23 = vld [vmem:[#allocation9 + $0x38] sm:$0xff]  }
 0x809   :  { %5962 = vmatprep.subr.bf16.mxu0 %v8192_v21  ;;  %7119 = vmatpush3.bf16.msra.mxu1 %v8277_v23  ;;  %v5413_v21 = vld [vmem:[#allocation10 + $0x10] sm:$0x3] }
 0x80c   :  { %5963 = vmatpush1.bf16.msra.mxu0 %v8190_v22  ;;  %v5418_v22 = vrot.slane %v5413_v21, %v8618_v47 }
 0x80d   :  { %5964 = vmatprep.subr.bf16.mxu0 %v8195_v26  ;;  %v5422_v26 = vrot.slane %v5413_v21, %v8623_v49  ;;  %v6208_v49 = vpop.permute.xlu1 %6207 }
 0x810   :  { %5965 = vmatpush1.bf16.msra.mxu0 %v8193_v24 }
 0x811   :  { %5966 = vmatprep.subr.bf16.mxu0 %v8198_v25 }
 0x814   :  { %5967 = vmatpush1.bf16.msra.mxu0 %v8196_v27 }
 0x815   :  { %5968 = vmatprep.subr.bf16.mxu0 %v8201_v28 }
 0x818   :  { %5969 = vmatpush1.bf16.msra.mxu0 %v8199_v29 }
 0x819   :  { %5970 = vmatprep.subr.bf16.mxu0 %v8204_v30 }
 0x81c   :  { %5971 = vmatpush1.bf16.msra.mxu0 %v8202_v31 }
 0x81d   :  { %5972 = vmatprep.subr.bf16.mxu0 %v8207_v32 }
 0x820   :  { %5973 = vmatpush1.bf16.msra.mxu0 %v8205_v48 }
 0x821   :  { %5974 = vmatprep.subr.bf16.mxu0 %v8210_v33 }
 0x824   :  { %5975 = vmatpush1.bf16.msra.mxu0 %v8208_v3  ;;  %v6937_v3 = vld [vmem:[#allocation10 + $0x12] ss:$0 sm:$0xff] }
 0x825   :  { %5976 = vmatprep.subr.bf16.mxu0 %v8213_v55 }
 0x828   :  { %5977 = vmatpush1.bf16.msra.mxu0 %v8211_v35 }
 0x829   :  { %5987 = vmatprep.subr.bf16.mxu0 %v8216_v45 }
 0x82b   :  { %5979 = vmatmul.mubr.bf16.vlgmr.msra.gmra.mrb[36].mxu0 %v5409_v12 }
 0x82c   :  { %5988 = vmatpush1.bf16.msra.mxu0 %v8214_v52  ;;  %6019 = vmatprep.mubr.bf16.mxu0 %v5412_v54 }
 0x82d   :  { %5989 = vmatprep.subr.bf16.mxu0 %v8219_v38 }
 0x830   :  { %5990 = vmatpush1.bf16.msra.mxu0 %v8217_v10 }
 0x831   :  { %5991 = vmatprep.subr.bf16.mxu0 %v8222_v58 }
 0x834   :  { %5992 = vmatpush1.bf16.msra.mxu0 %v8220_v60 }
 0x835   :  { %5993 = vmatprep.subr.bf16.mxu0 %v8225_v56 }
 0x838   :  { %5994 = vmatpush1.bf16.msra.mxu0 %v8223_v44 }
 0x839   :  { %5995 = vmatprep.subr.bf16.mxu0 %v8228_v59 }
 0x83c   :  { %5996 = vmatpush1.bf16.msra.mxu0 %v8226_v46 }
 0x83d   :  { %5997 = vmatprep.subr.bf16.mxu0 %v8231_v13 }
 0x840   :  { %5998 = vmatpush1.bf16.msra.mxu0 %v8229_v53 }
 0x841   :  { %5999 = vmatprep.subr.bf16.mxu0 %v8234_v61 }
 0x844   :  { %6000 = vmatpush1.bf16.msra.mxu0 %v8232_v62 }
 0x845   :  { %6001 = vmatprep.subr.bf16.mxu0 %v8237_v0 }
 0x848   :  { %6002 = vmatpush1.bf16.msra.mxu0 %v8235_v1 }
 0x849   :  { %6003 = vmatprep.subr.bf16.mxu0 %v8240_v40 }
 0x84c   :  { %6004 = vmatpush1.bf16.msra.mxu0 %v8238_v4 }
 0x84d   :  { %6005 = vmatprep.subr.bf16.mxu0 %v8243_v2 }
 0x850   :  { %6006 = vmatpush1.bf16.msra.mxu0 %v8241_v50 }
 0x851   :  { %6007 = vmatprep.subr.bf16.mxu0 %v8246_v6 }
 0x854   :  { %6008 = vmatpush1.bf16.msra.mxu0 %v8244_v8 }
 0x855   :  { %6009 = vmatprep.subr.bf16.mxu0 %v8249_v41 }
 0x858   :  { %6010 = vmatpush1.bf16.msra.mxu0 %v8247_v34 }
 0x859   :  { %6011 = vmatprep.subr.bf16.mxu0 %v8252_v5 }
 0x85c   :  { %6012 = vmatpush1.bf16.msra.mxu0 %v8250_v36 }
 0x85d   :  { %6013 = vmatprep.subr.bf16.mxu0 %v8255_v11 }
 0x860   :  { %6014 = vmatpush1.bf16.msra.mxu0 %v8253_v14 }
 0x861   :  { %6015 = vmatprep.subr.bf16.mxu0 %v8258_v42 }
 0x864   :  { %6016 = vmatpush1.bf16.msra.mxu0 %v8256_v15 }
 0x865   :  { %6017 = vmatprep.subr.bf16.mxu0 %v8261_v43 }
 0x868   :  { %6018 = vmatpush1.bf16.msra.mxu0 %v8259_v17 }
 0x86b   :  { %6020 = vmatmul.mubr.bf16.vlgmr.msra.gmra.mrb[36].mxu0 %v5411_v19 }
 0x93e   :  { %v6021_v24 = vpop.f32.mrb[36].mxu0 }
 0x93f   :  { %v7172_v25 = vadd.f32 %v6021_v24, %v5418_v22  ;;  %v6023_v57 = vpop.f32.mrb[37].mxu0 }
 0x940   :  { %v7173_v27 = vadd.f32 %v6023_v57, %v5422_v26  ;;  %v6025_v28 = vpop.f32.mrb[38].mxu0 }
 0x941   :  { %v6028_v29 = vmax.f32 %v7172_v25, 0.0  ;;  %v6026_v30 = vpop.f32.mrb[39].mxu0 }
 0x942   :  { %v6029_v31 = vmax.f32 %v7173_v27, 0.0 }
 0x943   :  { %v6062_v48 = vpack.c.bf16 %v6028_v29, %v6028_v29 }
 0x944   :  { %v6063_v32 = vpack.c.bf16 %v6029_v31, %v6029_v31 }
 0x946   :  { %6199 = vmatprep.mubr.bf16.mxu1 %v6063_v32 }
 0x947   :  { %6200 = vmatmul.mubr.bf16.vlgmr.msra.gmra.mrb[24].mxu1 %v6062_v48 }
 0xa1a   :  { %v7120_v33 = vpop.f32.mrb[24].mxu1 }
 0xa1b   :  { %v7121_v55 = vpop.f32.mrb[25].mxu1 }
 0xa1c   :  { %v7122_v39 = vadd.f32 %v7121_v55, %v7120_v33  ;;  %v7123_v35 = vpop.f32.mrb[26].mxu1 }
 0xa1d   :  { %v7124_v47 = vpop.f32.mrb[27].mxu1 }
 0xa1e   :  { %v6202_v37 = vadd.f32 %v7122_v39, %v6937_v3 }
 0xa20   :  { %v6210_v45 = vsel %vm5233_vm1, %v6202_v37, %v8760_v63 }
 0xa21   :  { %v6212_v51 = vsel %vm6211_vm2, %v6210_v45, %v6208_v49 }
 0xa22   :  { %v6214_v52 = vsel %vm6213_vm3, %v6212_v51, 0.0 }
 0xa23   :  { %6215 = vst [vmem:[%s8795_s8] sm:$0xff] %v6214_v52 }
 0xa24   :  { %6220 = vsyncpa [#allocation3], 1 }
 0xa25   :  { %6221 = vsyncpa [#allocation5], 1 }
 0xa26   :  { %6222 = vsyncpa [#allocation8], 1 }
 0xa27   :  { %6223 = vsyncpa [#allocation11], 1 }

</bundles_post_ra>
